<compile_context>
chip_gen: v7x
topology: tpu7x:2x2x1
jax: 0.10.0
libtpu: 0.0.40
codegen_flags: <defaults>
</compile_context>

<pallas_src>
import jax
import jax.numpy as jnp
from jax.experimental import pallas as pl
from jax.experimental.pallas import tpu as pltpu


# ---------------------------------------------------------------------------
# Fused kernel: one extractor branch (picked by grid axis 0) + domain head
# ---------------------------------------------------------------------------
def _adda_fused_kernel(x_ref, w1_ref, b1_ref, w2_ref, b2_ref,
                       scale_ref, shift_ref, wd2_ref, bd2_ref,
                       wd3_ref, bd3_ref, wdl_ref, bdl_ref, o_ref):
    # x_ref: (bt, 12, 176) bf16 zero-padded rows of this stream's batch tile
    # o_ref: (1, bt) f32 domain logits (lane-dense: batch on the lane axis)
    bt = x_ref.shape[0]
    src_gate = (pl.program_id(0) == 0).astype(jnp.float32)   # 1.0 on the source branch

    # Conv1D_1 (12->64, k=64, s=16, p=16): in-kernel im2col + ONE batched matmul.
    # Window l covers padded positions [16l, 16l+64); column index = ci*64 + t
    # (matches the host-packed w1 layout).
    windows = [x_ref[:, :, 16 * l:16 * l + 64].reshape(bt, 1, 12 * 64)
               for l in range(8)]
    p = jnp.concatenate(windows, axis=1).reshape(bt * 8, 12 * 64)   # (8bt, 768) bf16
    h1 = jnp.dot(p, w1_ref[...], preferred_element_type=jnp.float32)
    h1 = jnp.maximum(h1 + b1_ref[...], 0.0)                          # ReLU_1, (8bt, 64)

    # MaxPooling1D_1 (k=2, s=2) -> (bt, 4, 64); cast once to bf16 for Conv1D_2.
    h1r = h1.reshape(bt, 4, 2, 64)
    pooled = jnp.maximum(h1r[:, :, 0, :], h1r[:, :, 1, :]).astype(jnp.bfloat16)

    # Conv1D_2 (64->32, k=3, s=1, p=1): ONE 192-wide matmul over the three
    # zero-padded shifted views, built in bf16 (halves the relayout traffic).
    # TODO(synk): pltpu.roll(+/-1) + iota mask could replace the pad/slice copies.
    z = jnp.zeros((bt, 1, 64), jnp.bfloat16)
    ppad = jnp.concatenate([z, pooled, z], axis=1)                   # (bt, 6, 64)
    c2in = jnp.concatenate([ppad[:, 0:4], ppad[:, 1:5], ppad[:, 2:6]],
                           axis=-1).reshape(bt * 4, 192)             # (4bt, 192) bf16
    h2 = jnp.dot(c2in, w2_ref[...], preferred_element_type=jnp.float32) + b2_ref[...]

    # BN_2 folded (eval-mode running stats); ReLU_2 applies on the source branch
    # only (the reference domain extractor does not call its ReLU).
    # TODO(synk): PyTorch default train-mode batch statistics are not replicated.
    h2 = h2 * scale_ref[...] + shift_ref[...]
    h2 = h2 - src_gate * jnp.minimum(h2, 0.0)                        # relu iff source

    # MaxPooling1D_2 (k=2, s=2) + Flatten (index = l*32 + c; wd2 is pre-permuted
    # on the host so this matches PyTorch's channel-major Flatten).
    h2r = h2.reshape(bt, 2, 2, 32)
    feat = jnp.maximum(h2r[:, :, 0, :], h2r[:, :, 1, :]).reshape(bt, 64)

    # Domain predictor head: Dense_2 -> Dense_3 -> ReLU_5 -> domain_loss.
    d2 = jnp.dot(feat.astype(jnp.bfloat16), wd2_ref[...],
                 preferred_element_type=jnp.float32) + bd2_ref[...]   # (bt, 32)
    d3 = jnp.dot(d2.astype(jnp.bfloat16), wd3_ref[...],
                 preferred_element_type=jnp.float32) + bd3_ref[...]   # (bt, 5)
    d3 = jnp.maximum(d3, 0.0)
    logit = jnp.sum(d3 * wdl_ref[...], axis=1)                        # (bt,)
    o_ref[...] = logit.reshape(1, bt) + bdl_ref[...]                  # lane-dense store


# ---------------------------------------------------------------------------
# Host-side glue: per-generation tiling + the pallas_call wrapper
# ---------------------------------------------------------------------------
def _tile_config(batch):
    """Pick batch tile + scoped-VMEM limit per TPU generation (perf review):
    v7x has only 64 MiB physical VMEM; v5e has a 16 MiB scoped default and the
    lowest HBM bandwidth.  TODO(synk): sweep bt in {128, 256, 512} per chip."""
    kind = ""
    try:
        kind = jax.devices()[0].device_kind.lower()
    except Exception:
        pass
    if "v5" in kind:
        cap, vmem = 128, 96 * 1024 * 1024
    elif "v7" in kind:
        cap, vmem = 256, 48 * 1024 * 1024
    else:                                   # v6e and other generations
        cap, vmem = 256, 96 * 1024 * 1024
    if batch <= cap:
        return batch, vmem
    bt = cap
    while bt >= 128 and batch % bt:
        bt //= 2
    if bt < 128 or batch % bt:
        bt = batch        # awkward batch size: one big tile (correctness first)
    return bt, vmem


def adda_forward(x, params):
    # x: (2, B, 12, L) f32; x[0] -> source extractor, x[1] -> domain extractor
    _, B, _, L = x.shape
    l_out = (L + 2 * 16 - 64) // 16 + 1
    assert l_out == 8, "flattened feature must be 64 (Dense_2 in_features); use L=144"

    # Zero-pad for Conv1D_1 (padding=16) on the host; im2col happens in-kernel so
    # HBM only carries the raw (2, B, 12, L+32) bf16 rows (~3x less than patches).
    xp = jnp.pad(x, ((0, 0), (0, 0), (0, 0), (16, 16))).astype(jnp.bfloat16)
    lp = L + 32

    bt, vmem_limit = _tile_config(B)

    out = pl.pallas_call(
        _adda_fused_kernel,
        out_shape=jax.ShapeDtypeStruct((2, 1, B), jnp.float32),
        grid=(2, B // bt),                        # (stream, batch tile), both parallel
        in_specs=[
            pl.BlockSpec((None, bt, 12, lp), lambda s, i: (s, i, 0, 0)),  # padded rows
            pl.BlockSpec((None, 768, 64), lambda s, i: (s, 0, 0)),        # conv1 weight
            pl.BlockSpec((None, 1, 64),   lambda s, i: (s, 0, 0)),        # conv1 bias
            pl.BlockSpec((None, 192, 32), lambda s, i: (s, 0, 0)),        # conv2 weight
            pl.BlockSpec((None, 1, 32),   lambda s, i: (s, 0, 0)),        # conv2 bias
            pl.BlockSpec((None, 1, 32),   lambda s, i: (s, 0, 0)),        # BN folded scale
            pl.BlockSpec((None, 1, 32),   lambda s, i: (s, 0, 0)),        # BN folded shift
            pl.BlockSpec((64, 32), lambda s, i: (0, 0)),                  # Dense_2 weight
            pl.BlockSpec((1, 32),  lambda s, i: (0, 0)),                  # Dense_2 bias
            pl.BlockSpec((32, 5),  lambda s, i: (0, 0)),                  # Dense_3 weight
            pl.BlockSpec((1, 5),   lambda s, i: (0, 0)),                  # Dense_3 bias
            pl.BlockSpec((1, 5),   lambda s, i: (0, 0)),                  # domain_loss weight
            pl.BlockSpec((1, 1),   lambda s, i: (0, 0)),                  # domain_loss bias
        ],
        # Lane-dense output: batch on the lane axis -> one unmasked store per step.
        out_specs=pl.BlockSpec((None, 1, bt), lambda s, i: (s, 0, i)),
        compiler_params=pltpu.CompilerParams(
            dimension_semantics=("parallel", "parallel"),
            vmem_limit_bytes=vmem_limit),
        # TODO(synk): pipeline_mode=pl.Buffered(1) on the grid-invariant weight specs
        # would reclaim their second VMEM buffer (marginal; mainly helps v7x).
    )(xp, params["w1"], params["b1"], params["w2"], params["b2"],
      params["bn_scale"], params["bn_shift"],
      params["wd2"], params["bd2"], params["wd3"], params["bd3"],
      params["wdl"], params["bdl"])

    # out[0,0,:] = source logits, out[1,0,:] = domain logits == torch.cat(dim=0)
    return out.reshape(2 * B, 1)


# ---------------------------------------------------------------------------
# Deterministic parameters: PyTorch layouts -> packed kernel layouts
# ---------------------------------------------------------------------------
def _extractor_params_torch(key):
    k = jax.random.split(key, 8)
    return dict(
        w1=jax.random.normal(k[0], (64, 12, 64), jnp.float32) * 0.05,   # Conv1d (Cout,Cin,K)
        b1=jax.random.normal(k[1], (64,), jnp.float32) * 0.05,
        w2=jax.random.normal(k[2], (32, 64, 3), jnp.float32) * 0.05,
        b2=jax.random.normal(k[3], (32,), jnp.float32) * 0.05,
        gamma=1.0 + 0.1 * jax.random.normal(k[4], (32,), jnp.float32),
        beta=0.1 * jax.random.normal(k[5], (32,), jnp.float32),
        rmean=0.1 * jax.random.normal(k[6], (32,), jnp.float32),
        rvar=1.0 + 0.1 * jnp.abs(jax.random.normal(k[7], (32,), jnp.float32)),
    )


def _head_params_torch(key):
    k = jax.random.split(key, 6)
    return dict(
        wd2=jax.random.normal(k[0], (32, 64), jnp.float32) * 0.1,   # torch Linear (out, in)
        bd2=jax.random.normal(k[1], (32,), jnp.float32) * 0.1,
        wd3=jax.random.normal(k[2], (5, 32), jnp.float32) * 0.1,
        bd3=jax.random.normal(k[3], (5,), jnp.float32) * 0.1,
        wdl=jax.random.normal(k[4], (1, 5), jnp.float32) * 0.1,
        bdl=jax.random.normal(k[5], (1,), jnp.float32) * 0.1,
    )


def pack_params(src, dom, head):
    """Convert PyTorch-layout params into the stacked kernel layouts."""
    def conv_pack(p):
        scale = p["gamma"] / jnp.sqrt(p["rvar"] + 1e-5)
        shift = p["beta"] - p["rmean"] * scale
        return dict(
            w1=p["w1"].reshape(64, 12 * 64).T,                       # (768,64), row = ci*64 + t
            b1=p["b1"].reshape(1, 64),
            w2=jnp.transpose(p["w2"], (2, 1, 0)).reshape(192, 32),   # row = tap*64 + ci
            b2=p["b2"].reshape(1, 32),
            bn_scale=scale.reshape(1, 32),
            bn_shift=shift.reshape(1, 32),
        )

    s, d = conv_pack(src), conv_pack(dom)
    packed = {k: jnp.stack([s[k], d[k]], axis=0) for k in s}         # (2, ...) src/dom

    # Dense_2 consumes PyTorch's channel-major Flatten (in index = c*2 + l); the kernel
    # flattens (L=2, C=32) row-major (index = l*32 + c), so permute the input axis.
    wd2 = head["wd2"].T                                              # (64,32), row = c*2 + l
    wd2 = wd2.reshape(32, 2, 32).transpose(1, 0, 2).reshape(64, 32)  # row = l*32 + c
    packed.update(
        wd2=wd2, bd2=head["bd2"].reshape(1, 32),
        wd3=head["wd3"].T, bd3=head["bd3"].reshape(1, 5),
        wdl=head["wdl"].reshape(1, 5), bdl=head["bdl"].reshape(1, 1),
    )

    # bf16 for the MXU operands; biases / BN params / accumulation stay f32.
    for name in ("w1", "w2", "wd2", "wd3"):
        packed[name] = packed[name].astype(jnp.bfloat16)
    return packed


if __name__ == "__main__":
    key = jax.random.PRNGKey(0)
    kx, kp = jax.random.split(key)
    B, L = 2, 144   # L=144 -> conv1 out 8 -> pool 4 -> conv2 4 -> pool 2 -> flat 64
    x = jax.random.normal(kx, (2, B, 12, L), jnp.float32)
    ks, kd, kh = jax.random.split(kp, 3)
    params = pack_params(_extractor_params_torch(ks),
                         _extractor_params_torch(kd),
                         _head_params_torch(kh))
    out = jax.jit(adda_forward)(x, params)
    out = jax.block_until_ready(out)
    assert out.shape == (2 * B, 1) and out.dtype == jnp.float32
    print("KERNEL_OK")
</pallas_src>

<mosaic_0001>
module attributes {stable_mosaic.version = 11 : i64} {
  func.func @_adda_fused_kernel(%arg0: i32, %arg1: i32, %arg2: memref<1x2x12x176xbf16, #tpu.memory_space<vmem>>, %arg3: memref<1x768x64xbf16, #tpu.memory_space<vmem>>, %arg4: memref<1x1x64xf32, #tpu.memory_space<vmem>>, %arg5: memref<1x192x32xbf16, #tpu.memory_space<vmem>>, %arg6: memref<1x1x32xf32, #tpu.memory_space<vmem>>, %arg7: memref<1x1x32xf32, #tpu.memory_space<vmem>>, %arg8: memref<1x1x32xf32, #tpu.memory_space<vmem>>, %arg9: memref<64x32xbf16, #tpu.memory_space<vmem>>, %arg10: memref<1x32xf32, #tpu.memory_space<vmem>>, %arg11: memref<32x5xbf16, #tpu.memory_space<vmem>>, %arg12: memref<1x5xf32, #tpu.memory_space<vmem>>, %arg13: memref<1x5xf32, #tpu.memory_space<vmem>>, %arg14: memref<1x1xf32, #tpu.memory_space<vmem>>, %arg15: memref<1x1x2xf32, #tpu.memory_space<vmem>>) attributes {dimension_semantics = [#tpu.dimension_semantics<parallel>, #tpu.dimension_semantics<parallel>], iteration_bounds = array<i64: 2, 1>, scalar_prefetch = 0 : i64, scratch_operands = 0 : i64, tpu.core_type = #tpu.core_type<tc>, window_params = [{transform_indices = @transform_0, window_bounds = array<i64: 1, 2, 12, 176>}, {transform_indices = @transform_1, window_bounds = array<i64: 1, 768, 64>}, {transform_indices = @transform_2, window_bounds = array<i64: 1, 1, 64>}, {transform_indices = @transform_3, window_bounds = array<i64: 1, 192, 32>}, {transform_indices = @transform_4, window_bounds = array<i64: 1, 1, 32>}, {transform_indices = @transform_5, window_bounds = array<i64: 1, 1, 32>}, {transform_indices = @transform_6, window_bounds = array<i64: 1, 1, 32>}, {pipeline_mode = #tpu.pipeline_mode<synchronous>, transform_indices = @transform_7, window_bounds = array<i64: 64, 32>}, {pipeline_mode = #tpu.pipeline_mode<synchronous>, transform_indices = @transform_8, window_bounds = array<i64: 1, 32>}, {pipeline_mode = #tpu.pipeline_mode<synchronous>, transform_indices = @transform_9, window_bounds = array<i64: 32, 5>}, {pipeline_mode = #tpu.pipeline_mode<synchronous>, transform_indices = @transform_10, window_bounds = array<i64: 1, 5>}, {pipeline_mode = #tpu.pipeline_mode<synchronous>, transform_indices = @transform_11, window_bounds = array<i64: 1, 5>}, {pipeline_mode = #tpu.pipeline_mode<synchronous>, transform_indices = @transform_12, window_bounds = array<i64: 1, 1>}, {transform_indices = @transform_13, window_bounds = array<i64: 1, 1, 2>}]} {
    %c0_i32 = arith.constant 0 : i32
    %0 = arith.cmpi eq, %arg0, %c0_i32 : i32
    %1 = arith.extui %0 : i1 to i32
    %2 = arith.sitofp %1 : i32 to f32
    %c0 = arith.constant 0 : index
    %c0_0 = arith.constant 0 : index
    %c0_1 = arith.constant 0 : index
    %c0_2 = arith.constant 0 : index
    %3 = vector.load %arg2[%c0, %c0_0, %c0_1, %c0_2] : memref<1x2x12x176xbf16, #tpu.memory_space<vmem>>, vector<1x2x12x64xbf16>
    %4 = vector.shape_cast %3 : vector<1x2x12x64xbf16> to vector<2x12x64xbf16>
    %5 = vector.shape_cast %4 : vector<2x12x64xbf16> to vector<2x1x768xbf16>
    %c0_3 = arith.constant 0 : index
    %c0_4 = arith.constant 0 : index
    %c0_5 = arith.constant 0 : index
    %c16 = arith.constant 16 : index
    %6 = vector.load %arg2[%c0_3, %c0_4, %c0_5, %c16] : memref<1x2x12x176xbf16, #tpu.memory_space<vmem>>, vector<1x2x12x64xbf16>
    %7 = vector.shape_cast %6 : vector<1x2x12x64xbf16> to vector<2x12x64xbf16>
    %8 = vector.shape_cast %7 : vector<2x12x64xbf16> to vector<2x1x768xbf16>
    %c0_6 = arith.constant 0 : index
    %c0_7 = arith.constant 0 : index
    %c0_8 = arith.constant 0 : index
    %c32 = arith.constant 32 : index
    %9 = vector.load %arg2[%c0_6, %c0_7, %c0_8, %c32] : memref<1x2x12x176xbf16, #tpu.memory_space<vmem>>, vector<1x2x12x64xbf16>
    %10 = vector.shape_cast %9 : vector<1x2x12x64xbf16> to vector<2x12x64xbf16>
    %11 = vector.shape_cast %10 : vector<2x12x64xbf16> to vector<2x1x768xbf16>
    %c0_9 = arith.constant 0 : index
    %c0_10 = arith.constant 0 : index
    %c0_11 = arith.constant 0 : index
    %c48 = arith.constant 48 : index
    %12 = vector.load %arg2[%c0_9, %c0_10, %c0_11, %c48] : memref<1x2x12x176xbf16, #tpu.memory_space<vmem>>, vector<1x2x12x64xbf16>
    %13 = vector.shape_cast %12 : vector<1x2x12x64xbf16> to vector<2x12x64xbf16>
    %14 = vector.shape_cast %13 : vector<2x12x64xbf16> to vector<2x1x768xbf16>
    %c0_12 = arith.constant 0 : index
    %c0_13 = arith.constant 0 : index
    %c0_14 = arith.constant 0 : index
    %c64 = arith.constant 64 : index
    %15 = vector.load %arg2[%c0_12, %c0_13, %c0_14, %c64] : memref<1x2x12x176xbf16, #tpu.memory_space<vmem>>, vector<1x2x12x64xbf16>
    %16 = vector.shape_cast %15 : vector<1x2x12x64xbf16> to vector<2x12x64xbf16>
    %17 = vector.shape_cast %16 : vector<2x12x64xbf16> to vector<2x1x768xbf16>
    %c0_15 = arith.constant 0 : index
    %c0_16 = arith.constant 0 : index
    %c0_17 = arith.constant 0 : index
    %c80 = arith.constant 80 : index
    %18 = vector.load %arg2[%c0_15, %c0_16, %c0_17, %c80] : memref<1x2x12x176xbf16, #tpu.memory_space<vmem>>, vector<1x2x12x64xbf16>
    %19 = vector.shape_cast %18 : vector<1x2x12x64xbf16> to vector<2x12x64xbf16>
    %20 = vector.shape_cast %19 : vector<2x12x64xbf16> to vector<2x1x768xbf16>
    %c0_18 = arith.constant 0 : index
    %c0_19 = arith.constant 0 : index
    %c0_20 = arith.constant 0 : index
    %c96 = arith.constant 96 : index
    %21 = vector.load %arg2[%c0_18, %c0_19, %c0_20, %c96] : memref<1x2x12x176xbf16, #tpu.memory_space<vmem>>, vector<1x2x12x64xbf16>
    %22 = vector.shape_cast %21 : vector<1x2x12x64xbf16> to vector<2x12x64xbf16>
    %23 = vector.shape_cast %22 : vector<2x12x64xbf16> to vector<2x1x768xbf16>
    %c0_21 = arith.constant 0 : index
    %c0_22 = arith.constant 0 : index
    %c0_23 = arith.constant 0 : index
    %c112 = arith.constant 112 : index
    %24 = vector.load %arg2[%c0_21, %c0_22, %c0_23, %c112] : memref<1x2x12x176xbf16, #tpu.memory_space<vmem>>, vector<1x2x12x64xbf16>
    %25 = vector.shape_cast %24 : vector<1x2x12x64xbf16> to vector<2x12x64xbf16>
    %26 = vector.shape_cast %25 : vector<2x12x64xbf16> to vector<2x1x768xbf16>
    %27 = tpu.concatenate %5, %8, %11, %14, %17, %20, %23, %26 in 1 : vector<2x1x768xbf16>, vector<2x1x768xbf16>, vector<2x1x768xbf16>, vector<2x1x768xbf16>, vector<2x1x768xbf16>, vector<2x1x768xbf16>, vector<2x1x768xbf16>, vector<2x1x768xbf16> -> vector<2x8x768xbf16>
    %28 = vector.shape_cast %27 : vector<2x8x768xbf16> to vector<16x768xbf16>
    %c0_24 = arith.constant 0 : index
    %c0_25 = arith.constant 0 : index
    %c0_26 = arith.constant 0 : index
    %29 = vector.load %arg3[%c0_24, %c0_25, %c0_26] : memref<1x768x64xbf16, #tpu.memory_space<vmem>>, vector<1x768x64xbf16>
    %30 = vector.shape_cast %29 : vector<1x768x64xbf16> to vector<768x64xbf16>
    %cst = arith.constant dense<0.000000e+00> : vector<16x64xf32>
    %31 = tpu.matmul %28, %30, %cst {dimension_numbers = #tpu.dot_dimension_numbers<[1], [0], [0], [1], [0, 0, 1, 1], [], []>} : vector<16x768xbf16>, vector<768x64xbf16>, vector<16x64xf32> -> vector<16x64xf32>
    %c0_27 = arith.constant 0 : index
    %c0_28 = arith.constant 0 : index
    %c0_29 = arith.constant 0 : index
    %32 = vector.load %arg4[%c0_27, %c0_28, %c0_29] : memref<1x1x64xf32, #tpu.memory_space<vmem>>, vector<1x1x64xf32>
    %33 = vector.shape_cast %32 : vector<1x1x64xf32> to vector<1x64xf32>
    %34 = vector.broadcast %33 : vector<1x64xf32> to vector<16x64xf32>
    %35 = arith.addf %31, %34 : vector<16x64xf32>
    %cst_30 = arith.constant 0.000000e+00 : f32
    %36 = vector.broadcast %cst_30 : f32 to vector<16x64xf32>
    %37 = arith.maximumf %35, %36 : vector<16x64xf32>
    %38 = vector.shape_cast %37 : vector<16x64xf32> to vector<2x4x2x64xf32>
    %39 = vector.extract_strided_slice %38 {offsets = [0, 0, 0, 0], sizes = [2, 4, 1, 64], strides = [1, 1, 1, 1]} : vector<2x4x2x64xf32> to vector<2x4x1x64xf32>
    %40 = vector.shape_cast %39 : vector<2x4x1x64xf32> to vector<2x4x64xf32>
    %41 = vector.extract_strided_slice %38 {offsets = [0, 0, 1, 0], sizes = [2, 4, 1, 64], strides = [1, 1, 1, 1]} : vector<2x4x2x64xf32> to vector<2x4x1x64xf32>
    %42 = vector.shape_cast %41 : vector<2x4x1x64xf32> to vector<2x4x64xf32>
    %43 = arith.maximumf %40, %42 : vector<2x4x64xf32>
    %44 = arith.truncf %43 : vector<2x4x64xf32> to vector<2x4x64xbf16>
    %cst_31 = arith.constant 0.000000e+00 : bf16
    %45 = vector.broadcast %cst_31 : bf16 to vector<2x1x64xbf16>
    %46 = tpu.concatenate %45, %44, %45 in 1 : vector<2x1x64xbf16>, vector<2x4x64xbf16>, vector<2x1x64xbf16> -> vector<2x6x64xbf16>
    %47 = vector.extract_strided_slice %46 {offsets = [0, 0, 0], sizes = [2, 4, 64], strides = [1, 1, 1]} : vector<2x6x64xbf16> to vector<2x4x64xbf16>
    %48 = vector.extract_strided_slice %46 {offsets = [0, 1, 0], sizes = [2, 4, 64], strides = [1, 1, 1]} : vector<2x6x64xbf16> to vector<2x4x64xbf16>
    %49 = vector.extract_strided_slice %46 {offsets = [0, 2, 0], sizes = [2, 4, 64], strides = [1, 1, 1]} : vector<2x6x64xbf16> to vector<2x4x64xbf16>
    %50 = tpu.concatenate %47, %48, %49 in 2 : vector<2x4x64xbf16>, vector<2x4x64xbf16>, vector<2x4x64xbf16> -> vector<2x4x192xbf16>
    %51 = vector.shape_cast %50 : vector<2x4x192xbf16> to vector<8x192xbf16>
    %c0_32 = arith.constant 0 : index
    %c0_33 = arith.constant 0 : index
    %c0_34 = arith.constant 0 : index
    %52 = vector.load %arg5[%c0_32, %c0_33, %c0_34] : memref<1x192x32xbf16, #tpu.memory_space<vmem>>, vector<1x192x32xbf16>
    %53 = vector.shape_cast %52 : vector<1x192x32xbf16> to vector<192x32xbf16>
    %cst_35 = arith.constant dense<0.000000e+00> : vector<8x32xf32>
    %54 = tpu.matmul %51, %53, %cst_35 {dimension_numbers = #tpu.dot_dimension_numbers<[1], [0], [0], [1], [0, 0, 1, 1], [], []>} : vector<8x192xbf16>, vector<192x32xbf16>, vector<8x32xf32> -> vector<8x32xf32>
    %c0_36 = arith.constant 0 : index
    %c0_37 = arith.constant 0 : index
    %c0_38 = arith.constant 0 : index
    %55 = vector.load %arg6[%c0_36, %c0_37, %c0_38] : memref<1x1x32xf32, #tpu.memory_space<vmem>>, vector<1x1x32xf32>
    %56 = vector.shape_cast %55 : vector<1x1x32xf32> to vector<1x32xf32>
    %57 = vector.broadcast %56 : vector<1x32xf32> to vector<8x32xf32>
    %58 = arith.addf %54, %57 : vector<8x32xf32>
    %c0_39 = arith.constant 0 : index
    %c0_40 = arith.constant 0 : index
    %c0_41 = arith.constant 0 : index
    %59 = vector.load %arg7[%c0_39, %c0_40, %c0_41] : memref<1x1x32xf32, #tpu.memory_space<vmem>>, vector<1x1x32xf32>
    %60 = vector.shape_cast %59 : vector<1x1x32xf32> to vector<1x32xf32>
    %61 = vector.broadcast %60 : vector<1x32xf32> to vector<8x32xf32>
    %62 = arith.mulf %58, %61 : vector<8x32xf32>
    %c0_42 = arith.constant 0 : index
    %c0_43 = arith.constant 0 : index
    %c0_44 = arith.constant 0 : index
    %63 = vector.load %arg8[%c0_42, %c0_43, %c0_44] : memref<1x1x32xf32, #tpu.memory_space<vmem>>, vector<1x1x32xf32>
    %64 = vector.shape_cast %63 : vector<1x1x32xf32> to vector<1x32xf32>
    %65 = vector.broadcast %64 : vector<1x32xf32> to vector<8x32xf32>
    %66 = arith.addf %62, %65 : vector<8x32xf32>
    %cst_45 = arith.constant 0.000000e+00 : f32
    %67 = vector.broadcast %cst_45 : f32 to vector<8x32xf32>
    %68 = arith.minimumf %66, %67 : vector<8x32xf32>
    %69 = vector.broadcast %2 : f32 to vector<8x32xf32>
    %70 = arith.mulf %69, %68 : vector<8x32xf32>
    %71 = arith.subf %66, %70 : vector<8x32xf32>
    %72 = vector.shape_cast %71 : vector<8x32xf32> to vector<2x2x2x32xf32>
    %73 = vector.extract_strided_slice %72 {offsets = [0, 0, 0, 0], sizes = [2, 2, 1, 32], strides = [1, 1, 1, 1]} : vector<2x2x2x32xf32> to vector<2x2x1x32xf32>
    %74 = vector.shape_cast %73 : vector<2x2x1x32xf32> to vector<2x2x32xf32>
    %75 = vector.extract_strided_slice %72 {offsets = [0, 0, 1, 0], sizes = [2, 2, 1, 32], strides = [1, 1, 1, 1]} : vector<2x2x2x32xf32> to vector<2x2x1x32xf32>
    %76 = vector.shape_cast %75 : vector<2x2x1x32xf32> to vector<2x2x32xf32>
    %77 = arith.maximumf %74, %76 : vector<2x2x32xf32>
    %78 = vector.shape_cast %77 : vector<2x2x32xf32> to vector<2x64xf32>
    %79 = arith.truncf %78 : vector<2x64xf32> to vector<2x64xbf16>
    %c0_46 = arith.constant 0 : index
    %c0_47 = arith.constant 0 : index
    %80 = vector.load %arg9[%c0_46, %c0_47] : memref<64x32xbf16, #tpu.memory_space<vmem>>, vector<64x32xbf16>
    %cst_48 = arith.constant dense<0.000000e+00> : vector<2x32xf32>
    %81 = tpu.matmul %79, %80, %cst_48 {dimension_numbers = #tpu.dot_dimension_numbers<[1], [0], [0], [1], [0, 0, 1, 1], [], []>} : vector<2x64xbf16>, vector<64x32xbf16>, vector<2x32xf32> -> vector<2x32xf32>
    %c0_49 = arith.constant 0 : index
    %c0_50 = arith.constant 0 : index
    %82 = vector.load %arg10[%c0_49, %c0_50] : memref<1x32xf32, #tpu.memory_space<vmem>>, vector<1x32xf32>
    %83 = vector.broadcast %82 : vector<1x32xf32> to vector<2x32xf32>
    %84 = arith.addf %81, %83 : vector<2x32xf32>
    %85 = arith.truncf %84 : vector<2x32xf32> to vector<2x32xbf16>
    %c0_51 = arith.constant 0 : index
    %c0_52 = arith.constant 0 : index
    %86 = vector.load %arg11[%c0_51, %c0_52] : memref<32x5xbf16, #tpu.memory_space<vmem>>, vector<32x5xbf16>
    %cst_53 = arith.constant dense<0.000000e+00> : vector<2x5xf32>
    %87 = tpu.matmul %85, %86, %cst_53 {dimension_numbers = #tpu.dot_dimension_numbers<[1], [0], [0], [1], [0, 0, 1, 1], [], []>} : vector<2x32xbf16>, vector<32x5xbf16>, vector<2x5xf32> -> vector<2x5xf32>
    %c0_54 = arith.constant 0 : index
    %c0_55 = arith.constant 0 : index
    %88 = vector.load %arg12[%c0_54, %c0_55] : memref<1x5xf32, #tpu.memory_space<vmem>>, vector<1x5xf32>
    %89 = vector.broadcast %88 : vector<1x5xf32> to vector<2x5xf32>
    %90 = arith.addf %87, %89 : vector<2x5xf32>
    %cst_56 = arith.constant 0.000000e+00 : f32
    %91 = vector.broadcast %cst_56 : f32 to vector<2x5xf32>
    %92 = arith.maximumf %90, %91 : vector<2x5xf32>
    %c0_57 = arith.constant 0 : index
    %c0_58 = arith.constant 0 : index
    %93 = vector.load %arg13[%c0_57, %c0_58] : memref<1x5xf32, #tpu.memory_space<vmem>>, vector<1x5xf32>
    %94 = vector.broadcast %93 : vector<1x5xf32> to vector<2x5xf32>
    %95 = arith.mulf %92, %94 : vector<2x5xf32>
    %cst_59 = arith.constant dense<0.000000e+00> : vector<2xf32>
    %96 = vector.multi_reduction <add>, %95, %cst_59 [1] : vector<2x5xf32> to vector<2xf32>
    %97 = vector.shape_cast %96 : vector<2xf32> to vector<1x2xf32>
    %c0_60 = arith.constant 0 : index
    %c0_61 = arith.constant 0 : index
    %98 = vector.load %arg14[%c0_60, %c0_61] : memref<1x1xf32, #tpu.memory_space<vmem>>, vector<1x1xf32>
    %99 = vector.broadcast %98 : vector<1x1xf32> to vector<1x2xf32>
    %100 = arith.addf %97, %99 : vector<1x2xf32>
    %c0_62 = arith.constant 0 : index
    %c0_63 = arith.constant 0 : index
    %c0_64 = arith.constant 0 : index
    %101 = vector.load %arg15[%c0_62, %c0_63, %c0_64] : memref<1x1x2xf32, #tpu.memory_space<vmem>>, vector<1x1x2xf32>
    %102 = vector.shape_cast %101 : vector<1x1x2xf32> to vector<1x2xf32>
    %103 = vector.shape_cast %100 : vector<1x2xf32> to vector<1x1x2xf32>
    tpu.vector_store %arg15[%c0_62, %c0_63, %c0_64], %103 {strides = array<i32>} : memref<1x1x2xf32, #tpu.memory_space<vmem>>, vector<1x1x2xf32>,
    return
  }
  func.func @transform_0(%arg0: i32, %arg1: i32) -> (i32, i32, i32, i32) {
    %c0_i32 = arith.constant 0 : i32
    %c0_i32_0 = arith.constant 0 : i32
    %c0_i32_1 = arith.constant 0 : i32
    return %arg0, %arg1, %c0_i32, %c0_i32_0 : i32, i32, i32, i32
  }
  func.func @transform_1(%arg0: i32, %arg1: i32) -> (i32, i32, i32) {
    %c0_i32 = arith.constant 0 : i32
    %c0_i32_0 = arith.constant 0 : i32
    %c0_i32_1 = arith.constant 0 : i32
    return %arg0, %c0_i32, %c0_i32_0 : i32, i32, i32
  }
  func.func @transform_2(%arg0: i32, %arg1: i32) -> (i32, i32, i32) {
    %c0_i32 = arith.constant 0 : i32
    %c0_i32_0 = arith.constant 0 : i32
    %c0_i32_1 = arith.constant 0 : i32
    return %arg0, %c0_i32, %c0_i32_0 : i32, i32, i32
  }
  func.func @transform_3(%arg0: i32, %arg1: i32) -> (i32, i32, i32) {
    %c0_i32 = arith.constant 0 : i32
    %c0_i32_0 = arith.constant 0 : i32
    %c0_i32_1 = arith.constant 0 : i32
    return %arg0, %c0_i32, %c0_i32_0 : i32, i32, i32
  }
  func.func @transform_4(%arg0: i32, %arg1: i32) -> (i32, i32, i32) {
    %c0_i32 = arith.constant 0 : i32
    %c0_i32_0 = arith.constant 0 : i32
    %c0_i32_1 = arith.constant 0 : i32
    return %arg0, %c0_i32, %c0_i32_0 : i32, i32, i32
  }
  func.func @transform_5(%arg0: i32, %arg1: i32) -> (i32, i32, i32) {
    %c0_i32 = arith.constant 0 : i32
    %c0_i32_0 = arith.constant 0 : i32
    %c0_i32_1 = arith.constant 0 : i32
    return %arg0, %c0_i32, %c0_i32_0 : i32, i32, i32
  }
  func.func @transform_6(%arg0: i32, %arg1: i32) -> (i32, i32, i32) {
    %c0_i32 = arith.constant 0 : i32
    %c0_i32_0 = arith.constant 0 : i32
    %c0_i32_1 = arith.constant 0 : i32
    return %arg0, %c0_i32, %c0_i32_0 : i32, i32, i32
  }
  func.func @transform_7(%arg0: i32, %arg1: i32) -> (i32, i32) {
    %c0_i32 = arith.constant 0 : i32
    %c0_i32_0 = arith.constant 0 : i32
    %c0_i32_1 = arith.constant 0 : i32
    return %c0_i32, %c0_i32_0 : i32, i32
  }
  func.func @transform_8(%arg0: i32, %arg1: i32) -> (i32, i32) {
    %c0_i32 = arith.constant 0 : i32
    %c0_i32_0 = arith.constant 0 : i32
    %c0_i32_1 = arith.constant 0 : i32
    return %c0_i32, %c0_i32_0 : i32, i32
  }
  func.func @transform_9(%arg0: i32, %arg1: i32) -> (i32, i32) {
    %c0_i32 = arith.constant 0 : i32
    %c0_i32_0 = arith.constant 0 : i32
    %c0_i32_1 = arith.constant 0 : i32
    return %c0_i32, %c0_i32_0 : i32, i32
  }
  func.func @transform_10(%arg0: i32, %arg1: i32) -> (i32, i32) {
    %c0_i32 = arith.constant 0 : i32
    %c0_i32_0 = arith.constant 0 : i32
    %c0_i32_1 = arith.constant 0 : i32
    return %c0_i32, %c0_i32_0 : i32, i32
  }
  func.func @transform_11(%arg0: i32, %arg1: i32) -> (i32, i32) {
    %c0_i32 = arith.constant 0 : i32
    %c0_i32_0 = arith.constant 0 : i32
    %c0_i32_1 = arith.constant 0 : i32
    return %c0_i32, %c0_i32_0 : i32, i32
  }
  func.func @transform_12(%arg0: i32, %arg1: i32) -> (i32, i32) {
    %c0_i32 = arith.constant 0 : i32
    %c0_i32_0 = arith.constant 0 : i32
    %c0_i32_1 = arith.constant 0 : i32
    return %c0_i32, %c0_i32_0 : i32, i32
  }
  func.func @transform_13(%arg0: i32, %arg1: i32) -> (i32, i32, i32) {
    %c0_i32 = arith.constant 0 : i32
    %c0_i32_0 = arith.constant 0 : i32
    return %arg0, %c0_i32, %arg1 : i32, i32, i32
  }
}

</mosaic_0001>

<bundles_post_ra>
// kernel: adda_forward.1
= control target key start
LH: loop header
LB: loop body
LE: loop exit
PB: predicated region body
PF: predicated region fallthrough
CT: control target
= control target key end

     0   :  { %s7650_s0 = inlined_call_operand.hbm [shape: bf16[2,2,12,176], index: 0, kind: input, shape index: {}]   ;;  %s7651_s1 = inlined_call_operand.hbm [shape: bf16[2,768,64], index: 1, kind: input, shape index: {}]   ;;  %s7652_s2 = inlined_call_operand.hbm [shape: f32[2,1,64], index: 2, kind: input, shape index: {}]   ;;  %s7653_s3 = inlined_call_operand.hbm [shape: bf16[2,192,32], index: 3, kind: input, shape index: {}]   ;;  %s7654_s4 = inlined_call_operand.hbm [shape: f32[2,1,32], index: 4, kind: input, shape index: {}]   ;;  %s7655_s5 = inlined_call_operand.hbm [shape: f32[2,1,32], index: 5, kind: input, shape index: {}]   ;;  %s7656_s6 = inlined_call_operand.hbm [shape: f32[2,1,32], index: 6, kind: input, shape index: {}]   ;;  %s7657_s7 = inlined_call_operand.hbm [shape: bf16[64,32], index: 7, kind: input, shape index: {}]   ;;  %s7658_s8 = inlined_call_operand.hbm [shape: f32[1,32], index: 8, kind: input, shape index: {}]   ;;  %s7659_s9 = inlined_call_operand.hbm [shape: bf16[32,5], index: 9, kind: input, shape index: {}]   ;;  %s7660_s10 = inlined_call_operand.hbm [shape: f32[1,5], index: 10, kind: input, shape index: {}]   ;;  %s7661_s11 = inlined_call_operand.hbm [shape: f32[1,5], index: 11, kind: input, shape index: {}]   ;;  %s7662_s12 = inlined_call_operand.<no memory space> [shape: f32[1,1], index: 12, kind: input, shape index: {}]   ;;  %s7663_s13 = inlined_call_operand.hbm [shape: f32[2,1,2], index: 13, kind: output, shape index: {}]  }
   0x1   :  { %7758 = sst [smem:[#allocation96_spill]] %s7651_s1  ;;  %v18_v0 = vstv %s7662_s12 }
   0x2   :  { %7759 = sst [smem:[#allocation97_spill]] %s7653_s3  ;;  %19 = vst [vmem:[#allocation2] sm:$0x1] %v18_v0 }
   0x3   :  { %7760 = sst [smem:[#allocation98_spill]] %s7654_s4 }
   0x4   :  { %7761 = sst [smem:[#allocation99_spill]] %s7656_s6 }
   0x5   :  { %7762 = sst [smem:[#allocation100_spill]] %s7657_s7 }
   0x6   :  { %7763 = sst [smem:[#allocation101_spill]] %s7659_s9 }
   0x7   :  { %7764 = sst [smem:[#allocation102_spill]] %s7663_s13 }
   0x8   :  { %20 = vsyncpa [#allocation4], 0 }
   0x9   :  { %22 = vsyncpa [#allocation4 + $0x1], 0 }
   0xa   :  { %23 = vsyncpa [#allocation7], 0 }
   0xb   :  { %25 = vsyncpa [#allocation7 + $0x1], 0 }
   0xc   :  { %26 = vsyncpa [#allocation10], 0 }
   0xd   :  { %28 = vsyncpa [#allocation10 + $0x1], 0 }
   0xe   :  { %29 = vsyncpa [#allocation13], 0 }
   0xf   :  { %31 = vsyncpa [#allocation13 + $0x1], 0 }
  0x10   :  { %32 = vsyncpa [#allocation16], 0 }
  0x11   :  { %33 = vsyncpa [#allocation19], 0 }
  0x12   :  { %34 = vsyncpa [#allocation22], 0 }
  0x13   :  { %35 = vsyncpa [#allocation5], 0 }
  0x14   :  { %37 = vsyncpa [#allocation5 + $0x1], 0  ;;  %s5454_s27 = smov 0   ;;  %s5456_s28 = smov 0  }
  0x15   :  { %s5458_s29 = smov 0   ;;  %s5460_s12 = smov 0  }
  0x16   :  { %s5462_s30 = smov 0   ;;  %s5464_s14 = smov 0  }
  0x17 LB: > { %7765 = sst [smem:[#allocation32_spill]] %s5330_s27  ;;  %s5485_s15 = sadd.s32 4294967295, %s5350_s14   ;;  %s5350_s14 = sphi %s5464_s14, %s43_s14   ;;  %s5346_s30 = sphi %s5462_s30, %s7959_s30   ;;  %s5342_s12 = sphi %s5460_s12, %s7958_s12   ;;  %s5338_s29 = sphi %s5458_s29, %s7956_s29   ;;  %s5334_s28 = sphi %s5456_s28, %s7955_s28   ;;  %s5330_s27 = sphi %s5454_s27, %s7954_s27  }
  0x18   : > { %7766 = sst [smem:[#allocation33_spill]] %s5334_s28  ;;  %s4350_s16 = sadd.s32 4294967294, %s5350_s14  }
  0x19   : > { %7767 = sst [smem:[#allocation34_spill]] %s5338_s29  ;;  %p71_p0 = scmp.ne.s32.totalorder %s5338_s29, %s5334_s28 }
  0x1a   : > { %7768 = sst [smem:[#allocation35_spill]] %s5342_s12  ;;  %p72_p1 = scmp.eq.s32.totalorder %s5350_s14, 0 }
  0x1b   : > { %7769 = sst [smem:[#allocation36_spill]] %s5350_s14  ;;  %p77_p2 = scmp.ne.s32.totalorder %s5334_s28, %s5330_s27 }
  0x1c   : > { %7770 = sst [smem:[#allocation37_spill]] %s5485_s15  ;;  %p7670_p3 = scmp.eq.s32.totalorder %s5485_s15, 0 }
  0x1d   : > { %p385_p4 = scmp.eq.s32.totalorder %s5485_s15, 1  ;;  %p5496_p5 = por %p72_p1, %p71_p0 }
  0x1e   : > { %p391_p6 = scmp.eq.s32.totalorder %s4350_s16, 1  ;;  %p5502_p7 = por %p7670_p3, %p77_p2 }
  0x1f   : > { %p5506_p8 = por %p385_p4, %p71_p0  ;;  %p4351_p10 = scmp.ge.s32.totalorder %s5350_s14, 1 }
  0x20   : > { %s7772_s19 = scalar_select %p5502_p7, 1, 0 }
  0x21   : > { %s7774_s20 = scalar_select %p5506_p8, 1, 0 }
  0x22   : > { %7773 = sst [smem:[#allocation38_spill]] %s7772_s19  ;;  %p5510_p9 = por %p391_p6, %p77_p2 }
  0x23   : > { %7775 = sst [smem:[#allocation39_spill]] %s7774_s20  ;;  %p398_p11 = scmp.lt.s32.totalorder %s5350_s14, 3 }
  0x24   : > { %s7776_s21 = scalar_select %p5510_p9, 1, 0 }
  0x25   : > { %p5516_p12 = pnand %p4351_p10, %p398_p11  ;;  %s5352_s23 = smov [#allocation15]  }
  0x26   : > { %7777 = sst [smem:[#allocation40_spill]] %s7776_s21  ;;  %s410_s24 = sshll.u32 %s5352_s23, 4  ;;  %s5520_s24 = int_to_ptr.vmem [resolvable:$true] %s410_s24 }
  0x27   : > { %s7778_s22 = scalar_select %p5516_p12, 1, 0 }
  0x28   : > { %p4704_p13 = pneg %p5516_p12  ;;  %p4751_p1 = scmp.lt.s32.totalorder %s5350_s14, 2 }
  0x29   : > { %7779 = sst [smem:[#allocation41_spill]] %s7778_s22  ;;  %s5353_s26 = smov [#allocation18]  }
  0x2a   : > { %p5528_p2 = pnand %p4704_p13, %p7670_p3  ;;  %s434_s16 = sshll.u32 %s5353_s26, 4  ;;  %s5538_s16 = int_to_ptr.vmem [resolvable:$true] %s434_s16 }
  0x2b   : > { %p5534_p4 = pnand %p4751_p1, %p5496_p5  ;;  %s7782_s7 = sld [smem:[#allocation100_spill]] }
  0x2c   : > { %s7780_s25 = scalar_select %p5528_p2, 1, 0 }
  0x2d   : > { %s7781_s17 = scalar_select %p5534_p4, 1, 0 }
  0x2e   : > { %p5548_p10 = pneg %p5528_p2 }
  0x30   : > { %s7783_s12 = scalar_select %p5548_p10, 1, 0 }
  0x31   : > { %s4894_s27 = scalar_lea.hbm %s7782_s7, 512 }
  0x32   : > { %p4895_p6 = scmp.ne.s32.totalorder %s7782_s7, %s4894_s27  ;;  %p4901_p13 = scmp.lt.u32.totalorder %s4894_s27, %s7782_s7 }
  0x34   : > { %p4897_p5 = pnand %p5548_p10, %p4895_p6 }
  0x36   : > { %p4898_p11 = pneg %p4897_p5 }
  0x38   : > { %p4903_p1 = pnand %p4901_p13, %p4898_p11 }
  0x3a   : > { %4906 = shalt.err (!%p4903_p1)
}
  0x3b   : > { %s4907_s13 = scalar_lea.vmem %s5520_s24, 512  ;;  %p4915_p8 = scmp.lt.s32.totalorder %s5520_s24, %s5520_s24 }
  0x3c   : > { %p4908_p0 = scmp.ne.s32.totalorder %s5520_s24, %s4907_s13  ;;  %p4916_p7 = scmp.lt.s32.totalorder %s4907_s13, %s4907_s13 }
  0x3e   : > { %p4910_p3 = pnand %p4908_p0, %p5548_p10  ;;  %p4917_p6 = por %p4916_p7, %p4915_p8 }
  0x40   : > { %p4911_p9 = pneg %p4910_p3 }
  0x42   : > { %p4918_p5 = pnand %p4917_p6, %p4911_p9 }
  0x44   : > { %4921 = shalt.err (!%p4918_p5)
}
  0x45   : > { %s7679_s20 = smov 64   ;;  %s7681_s27 = smov 4  }
  0x46   : > { %4707 = dma.hbm_to_vmem [thread:$0]  (!%p5528_p2), %s7782_s7, 512, %s5520_s24, [#allocation16], %s7679_s20, %s7679_s20, %s7681_s27  }
  0x47   : > { %s7784_s9 = sld [smem:[#allocation101_spill]] }
  0x4d   : > { %s4922_s13 = scalar_lea.hbm %s7784_s9, 256 }
  0x4e   : > { %p4923_p3 = scmp.ne.s32.totalorder %s7784_s9, %s4922_s13  ;;  %p4929_p9 = scmp.lt.u32.totalorder %s4922_s13, %s7784_s9 }
  0x50   : > { %p4925_p7 = pnand %p4923_p3, %p5548_p10 }
  0x52   : > { %p4926_p8 = pneg %p4925_p7 }
  0x54   : > { %p4931_p0 = pnand %p4929_p9, %p4926_p8 }
  0x56   : > { %4934 = shalt.err (!%p4931_p0)
}
  0x57   : > { %s4935_s24 = scalar_lea.vmem %s5538_s16, 256  ;;  %p4943_p6 = scmp.lt.s32.totalorder %s5538_s16, %s5538_s16 }
  0x58   : > { %p4936_p11 = scmp.ne.s32.totalorder %s5538_s16, %s4935_s24  ;;  %p4944_p5 = scmp.lt.s32.totalorder %s4935_s24, %s4935_s24 }
  0x5a   : > { %p4938_p13 = pnand %p4936_p11, %p5548_p10  ;;  %p4945_p3 = por %p4944_p5, %p4943_p6 }
  0x5c   : > { %p4939_p1 = pneg %p4938_p13 }
  0x5e   : > { %p4946_p7 = pnand %p4945_p3, %p4939_p1 }
  0x60   : > { %4949 = shalt.err (!%p4946_p7)
}
  0x61   : > { %4713 = dma.hbm_to_vmem [thread:$0]  (!%p5528_p2), %s7784_s9, 256, %s5538_s16, [#allocation19], %s7679_s20, %s7679_s20, %s7681_s27  }
  0x62   : > { %s55_s19 = sadd.s32 1, %s5346_s30  ;;  %s5600_s22 = sand.u32 1, %s5338_s29  }
  0x63   : > { %p57_p8 = scmp.ge.s32.totalorder %s55_s19, 2  ;;  %s5603_s21 = sand.u32 1, %s5350_s14  }
  0x64   : > { %s4662_s23 = smul.u32 384, %s5600_s22  ;;  %s7786_s1 = sld [smem:[#allocation96_spill]] }
  0x65   : > { %s7961_s19 = smov (%p57_p8, %s55_s19), 0  ;;  %s4663_s18 = smul.u32 6144, %s5346_s30 }
  0x66   : > { %7785 = sst [smem:[#allocation42_spill]] %s7961_s19  ;;  %s59_s26 = ssub.s32 %s5346_s30, %s7961_s19 }
  0x67   : > { %s501_s13 = scalar_lea.vmem [#allocation6], %s4662_s23  ;;  %p62_p9 = scmp.eq.s32.totalorder %s59_s26, 0 }
  0x68   : > { %s508_s24 = sshll.u32 %s501_s13, 4  ;;  %s7787_s20 = sadd.s32 1, %s5338_s29  ;;  %s5616_s24 = int_to_ptr.vmem [resolvable:$true] %s508_s24 }
  0x69   : > { %s5621_s27 = scalar_select %p62_p9, %s5338_s29, %s7787_s20  }
  0x6a   : > { %s5614_s15 = scalar_lea.hbm %s7786_s1, %s4663_s18  ;;  %s7690_s7 = scalar_lea.sflag [#allocation7], %s5603_s21 }
  0x6b   : > { %7788 = sst [smem:[#allocation43_spill]] %s5621_s27  ;;  %s4950_s9 = scalar_lea.hbm %s5614_s15, 6144 }
  0x6c   : > { %p4951_p0 = scmp.ne.s32.totalorder %s5614_s15, %s4950_s9  ;;  %p5628_p11 = pneg %p5534_p4 }
  0x6d   : > { %s4955_s13 = scalar_lea.hbm %s7786_s1, 12288  ;;  %p4956_p6 = scmp.lt.u32.totalorder %s5614_s15, %s7786_s1 }
  0x6e   : > { %s7789_s23 = scalar_select %p5628_p11, 1, 0 }
  0x6f   : > { %p4953_p13 = pnand %p5628_p11, %p4951_p0  ;;  %p4957_p5 = scmp.lt.u32.totalorder %s4955_s13, %s4950_s9 }
  0x70   : > { %p4959_p7 = scmp.lt.u32.totalorder %s4950_s9, %s5614_s15 }
  0x71   : > { %p4954_p1 = pneg %p4953_p13  ;;  %p4958_p3 = por %p4957_p5, %p4956_p6 }
  0x73   : > { %p4960_p8 = por %p4959_p7, %p4958_p3 }
  0x75   : > { %p4961_p9 = pnand %p4960_p8, %p4954_p1 }
  0x77   : > { %4964 = shalt.err (!%p4961_p9)
}
  0x78   : > { %s4965_s20 = scalar_lea.vmem %s5616_s24, 6144  ;;  %s5356_s18 = smov [#allocation6]  }
  0x79   : > { %p4966_p0 = scmp.ne.s32.totalorder %s5616_s24, %s4965_s20  ;;  %s4970_s26 = sshll.u32 %s5356_s18, 4  ;;  %s4971_s26 = int_to_ptr.vmem [resolvable:$false] %s4970_s26 }
  0x7a   : > { %s4972_s28 = scalar_lea.vmem %s4971_s26, 12288  ;;  %p4973_p2 = scmp.lt.s32.totalorder %s5616_s24, %s4971_s26 }
  0x7b   : > { %p4968_p13 = pnand %p4966_p0, %p5628_p11  ;;  %p4974_p10 = scmp.lt.s32.totalorder %s4972_s28, %s4965_s20 }
  0x7d   : > { %p4969_p12 = pneg %p4968_p13  ;;  %p4975_p6 = por %p4974_p10, %p4973_p2 }
  0x7f   : > { %p4976_p5 = pnand %p4975_p6, %p4969_p12 }
  0x81   : > { %4979 = shalt.err (!%p4976_p5)
}
  0x82   : > { %s7790_s9 = smov 4   ;;  %s7791_s13 = smov 64  }
  0x83   : > { %4726 = dma.hbm_to_vmem [thread:$0]  (!%p5534_p4), %s5614_s15, 6144, %s5616_s24, %s7690_s7, %s7791_s13, %s7791_s13, %s7790_s9  }
  0x84   : > { %s4664_s16 = smul.u32 96, %s5600_s22  ;;  %s5658_s20 = sshll.u32 %s5346_s30, 4 }
  0x85   : > { %s4665_s18 = smul.u32 1536, %s5346_s30  ;;  %s7792_s3 = sld [smem:[#allocation97_spill]] }
  0x86   : > { %s539_s19 = scalar_lea.vmem [#allocation9], %s4664_s16  ;;  %s5672_s15 = scalar_lea.hbm %s7655_s5, %s5658_s20 }
  0x87   : > { %s546_s27 = sshll.u32 %s539_s19, 4  ;;  %s536_s7 = scalar_lea.sflag [#allocation10], %s5603_s21  ;;  %s5666_s27 = int_to_ptr.vmem [resolvable:$true] %s546_s27 }
  0x8b   : > { %s5664_s1 = scalar_lea.hbm %s7792_s3, %s4665_s18  ;;  %s4985_s28 = scalar_lea.hbm %s7792_s3, 3072 }
  0x8c   : > { %s4980_s14 = scalar_lea.hbm %s5664_s1, 1536  ;;  %p4986_p1 = scmp.lt.u32.totalorder %s5664_s1, %s7792_s3 }
  0x8d   : > { %p4981_p12 = scmp.ne.s32.totalorder %s5664_s1, %s4980_s14  ;;  %p4987_p3 = scmp.lt.u32.totalorder %s4985_s28, %s4980_s14 }
  0x8e   : > { %p4989_p8 = scmp.lt.u32.totalorder %s4980_s14, %s5664_s1 }
  0x8f   : > { %p4983_p2 = pnand %p4981_p12, %p5628_p11  ;;  %p4988_p7 = por %p4987_p3, %p4986_p1 }
  0x91   : > { %p4984_p10 = pneg %p4983_p2  ;;  %p4990_p9 = por %p4989_p8, %p4988_p7 }
  0x93   : > { %p4991_p0 = pnand %p4990_p9, %p4984_p10 }
  0x95   : > { %4994 = shalt.err (!%p4991_p0)
}
  0x96   : > { %s4995_s29 = scalar_lea.vmem %s5666_s27, 1536  ;;  %s5357_s19 = smov [#allocation9]  }
  0x97   : > { %p4996_p13 = scmp.ne.s32.totalorder %s5666_s27, %s4995_s29  ;;  %s5000_s24 = sshll.u32 %s5357_s19, 4  ;;  %s5001_s24 = int_to_ptr.vmem [resolvable:$false] %s5000_s24 }
  0x98   : > { %s5002_s6 = scalar_lea.vmem %s5001_s24, 3072  ;;  %p5003_p12 = scmp.lt.s32.totalorder %s5666_s27, %s5001_s24 }
  0x99   : > { %p4998_p6 = pnand %p4996_p13, %p5628_p11  ;;  %p5004_p2 = scmp.lt.s32.totalorder %s5002_s6, %s4995_s29 }
  0x9b   : > { %p4999_p5 = pneg %p4998_p6  ;;  %p5005_p1 = por %p5004_p2, %p5003_p12 }
  0x9d   : > { %p5006_p3 = pnand %p5005_p1, %p4999_p5 }
  0x9f   : > { %5009 = shalt.err (!%p5006_p3)
}
  0xa0   : > { %4732 = dma.hbm_to_vmem [thread:$0]  (!%p5534_p4), %s5664_s1, 1536, %s5666_s27, %s536_s7, %s7791_s13, %s7791_s13, %s7790_s9  }
  0xa1   : > { %s576_s14 = scalar_lea.vmem [#allocation12], %s5600_s22  ;;  %s5358_s26 = smov [#allocation17]  }
  0xa2   : > { %s583_s18 = sshll.u32 %s576_s14, 4  ;;  %s5704_s28 = sshll.u32 %s5358_s26, 4  ;;  %s5702_s18 = int_to_ptr.vmem [resolvable:$true] %s583_s18  ;;  %s425_s28 = int_to_ptr.vmem [resolvable:$true] %s5704_s28 }
  0xa3   : > { %s574_s16 = scalar_lea.sflag [#allocation13], %s5603_s21  ;;  %s5010_s29 = scalar_lea.hbm %s5672_s15, 16 }
  0xa4   : > { %p5011_p10 = scmp.ne.s32.totalorder %s5672_s15, %s5010_s29  ;;  %s5015_s6 = scalar_lea.hbm %s7655_s5, 32 }
  0xa5   : > { %p5016_p9 = scmp.lt.u32.totalorder %s5672_s15, %s7655_s5  ;;  %p5017_p0 = scmp.lt.u32.totalorder %s5015_s6, %s5010_s29 }
  0xa6   : > { %p5013_p7 = pnand %p5011_p10, %p5628_p11  ;;  %p5019_p6 = scmp.lt.u32.totalorder %s5010_s29, %s5672_s15 }
  0xa7   : > { %p5018_p13 = por %p5017_p0, %p5016_p9 }
  0xa8   : > { %p5014_p8 = pneg %p5013_p7 }
  0xa9   : > { %p5020_p5 = por %p5019_p6, %p5018_p13 }
  0xab   : > { %p5021_p12 = pnand %p5020_p5, %p5014_p8 }
  0xad   : > { %5024 = shalt.err (!%p5021_p12)
}
  0xae   : > { %s5025_s1 = scalar_lea.vmem %s5702_s18, 16  ;;  %s5359_s27 = smov [#allocation12]  }
  0xaf   : > { %p5026_p2 = scmp.ne.s32.totalorder %s5702_s18, %s5025_s1  ;;  %s5030_s9 = sshll.u32 %s5359_s27, 4  ;;  %s5031_s9 = int_to_ptr.vmem [resolvable:$false] %s5030_s9 }
  0xb0   : > { %s5032_s3 = scalar_lea.vmem %s5031_s9, 32  ;;  %p5033_p10 = scmp.lt.s32.totalorder %s5702_s18, %s5031_s9 }
  0xb1   : > { %p5028_p1 = pnand %p5026_p2, %p5628_p11  ;;  %p5034_p7 = scmp.lt.s32.totalorder %s5032_s3, %s5025_s1 }
  0xb3   : > { %p5029_p3 = pneg %p5028_p1  ;;  %p5035_p9 = por %p5034_p7, %p5033_p10 }
  0xb5   : > { %p5036_p0 = pnand %p5035_p9, %p5029_p3 }
  0xb7   : > { %5039 = shalt.err (!%p5036_p0)
}
  0xb8   : > { %4738 = dma.hbm_to_vmem [thread:$0]  (!%p5534_p4), %s5672_s15, 16, %s5702_s18, %s574_s16  }
  0xb9   : > { %s5040_s14 = scalar_lea.hbm %s7658_s8, 16  ;;  %p7793_p13 = scmp.ne.s32.totalorder %s7783_s12, 0 }
  0xba   : > { %p5041_p8 = scmp.ne.s32.totalorder %s7658_s8, %s5040_s14  ;;  %p5047_p12 = scmp.lt.u32.totalorder %s5040_s14, %s7658_s8 }
  0xbc   : > { %p5043_p6 = pnand %p5041_p8, %p7793_p13 }
  0xbe   : > { %p5044_p5 = pneg %p5043_p6 }
  0xc0   : > { %p5049_p2 = pnand %p5047_p12, %p5044_p5 }
  0xc2   : > { %5052 = shalt.err (!%p5049_p2)
}
  0xc3   : > { %s5053_s6 = scalar_lea.vmem %s425_s28, 16  ;;  %s5060_s15 = scalar_lea.vmem %s425_s28, 32 }
  0xc4   : > { %p5054_p1 = scmp.ne.s32.totalorder %s425_s28, %s5053_s6  ;;  %p5061_p7 = scmp.lt.s32.totalorder %s425_s28, %s425_s28 }
  0xc5   : > { %p5062_p9 = scmp.lt.s32.totalorder %s5060_s15, %s5053_s6 }
  0xc6   : > { %p5056_p3 = pnand %p5054_p1, %p7793_p13 }
  0xc7   : > { %p5063_p0 = por %p5062_p9, %p5061_p7 }
  0xc8   : > { %p5057_p10 = pneg %p5056_p3 }
  0xca   : > { %p5064_p4 = pnand %p5063_p0, %p5057_p10 }
  0xcc   : > { %5067 = shalt.err (!%p5064_p4)
}
  0xcd   : > { %p7794_p8 = scmp.ne.s32.totalorder %s7780_s25, 0  ;;  %s5360_s27 = smov [#allocation20]  }
  0xce   : > { %s448_s9 = sshll.u32 %s5360_s27, 4  ;;  %s5361_s3 = smov [#allocation21]   ;;  %s449_s9 = int_to_ptr.vmem [resolvable:$true] %s448_s9 }
  0xcf   : > { %4710 = dma.hbm_to_vmem [thread:$0]  (!%p7794_p8), %s7658_s8, 16, %s425_s28, [#allocation16]  }
  0xd0   : > { %s459_s4 = sshll.u32 %s5361_s3, 4  ;;  %s5068_s26 = scalar_lea.hbm %s7660_s10, 16  ;;  %s460_s4 = int_to_ptr.vmem [resolvable:$true] %s459_s4 }
  0xd1   : > { %p5069_p4 = scmp.ne.s32.totalorder %s7660_s10, %s5068_s26  ;;  %p5075_p12 = scmp.lt.u32.totalorder %s5068_s26, %s7660_s10 }
  0xd3   : > { %p5071_p6 = pnand %p5069_p4, %p7793_p13 }
  0xd5   : > { %p5072_p5 = pneg %p5071_p6 }
  0xd7   : > { %p5077_p2 = pnand %p5075_p12, %p5072_p5 }
  0xd9   : > { %5080 = shalt.err (!%p5077_p2)
}
  0xda   : > { %s5081_s28 = scalar_lea.vmem %s449_s9, 16  ;;  %s5088_s15 = scalar_lea.vmem %s449_s9, 32 }
  0xdb   : > { %p5082_p1 = scmp.ne.s32.totalorder %s449_s9, %s5081_s28  ;;  %p5089_p7 = scmp.lt.s32.totalorder %s449_s9, %s449_s9 }
  0xdc   : > { %p5090_p9 = scmp.lt.s32.totalorder %s5088_s15, %s5081_s28 }
  0xdd   : > { %p5084_p3 = pnand %p5082_p1, %p7793_p13 }
  0xde   : > { %p5091_p0 = por %p5090_p9, %p5089_p7 }
  0xdf   : > { %p5085_p10 = pneg %p5084_p3 }
  0xe1   : > { %p5092_p11 = pnand %p5091_p0, %p5085_p10 }
  0xe3   : > { %5095 = shalt.err (!%p5092_p11)
}
  0xe4   : > { %4716 = dma.hbm_to_vmem [thread:$0]  (!%p7794_p8), %s7660_s10, 16, %s449_s9, [#allocation19]  }
  0xe5   : > { %s5096_s13 = scalar_lea.hbm %s7661_s11, 16 }
  0xe6   : > { %p5097_p4 = scmp.ne.s32.totalorder %s7661_s11, %s5096_s13  ;;  %p5103_p11 = scmp.lt.u32.totalorder %s5096_s13, %s7661_s11 }
  0xe8   : > { %p5099_p6 = pnand %p5097_p4, %p7793_p13 }
  0xea   : > { %p5100_p5 = pneg %p5099_p6 }
  0xec   : > { %p5105_p12 = pnand %p5103_p11, %p5100_p5 }
  0xee   : > { %5108 = shalt.err (!%p5105_p12)
}
  0xef   : > { %s5109_s24 = scalar_lea.vmem %s460_s4, 16  ;;  %s5116_s9 = scalar_lea.vmem %s460_s4, 32 }
  0xf0   : > { %p5110_p2 = scmp.ne.s32.totalorder %s460_s4, %s5109_s24  ;;  %p5117_p10 = scmp.lt.s32.totalorder %s460_s4, %s460_s4 }
  0xf1   : > { %p5118_p7 = scmp.lt.s32.totalorder %s5116_s9, %s5109_s24 }
  0xf2   : > { %p5112_p1 = pnand %p5110_p2, %p7793_p13 }
  0xf3   : > { %p5119_p9 = por %p5118_p7, %p5117_p10 }
  0xf4   : > { %p5113_p3 = pneg %p5112_p1 }
  0xf6   : > { %p5120_p0 = pnand %p5119_p9, %p5113_p3 }
  0xf8   : > { %5123 = shalt.err (!%p5120_p0)
}
  0xf9   : > { %4719 = dma.hbm_to_vmem [thread:$0]  (!%p7794_p8), %s7661_s11, 16, %s460_s4, [#allocation22]  }
  0xfa   : > { %s4358_s15 = sshll.u32 %s5600_s22, 5  ;;  %s4567_s12 = sshll.u32 %s5346_s30, 9 }
  0xfb   : > { %s5790_s27 = scalar_lea.hbm %s7650_s0, %s4567_s12  ;;  %s477_s25 = scalar_lea.vmem [#allocation3], %s4358_s15 }
  0xfc   : > { %s487_s3 = sshll.u32 %s477_s25, 4  ;;  %s474_s13 = scalar_lea.sflag [#allocation4], %s5600_s22  ;;  %s5792_s3 = int_to_ptr.vmem [resolvable:$true] %s487_s3 }
  0xfd   : > { %s5124_s14 = scalar_lea.hbm %s5790_s27, 512  ;;  %p7795_p4 = scmp.ne.s32.totalorder %s7789_s23, 0 }
  0xfe   : > { %p5125_p13 = scmp.ne.s32.totalorder %s5790_s27, %s5124_s14  ;;  %s5129_s29 = scalar_lea.hbm %s7650_s0, 1024 }
  0xff   : > { %p5130_p5 = scmp.lt.u32.totalorder %s5790_s27, %s7650_s0  ;;  %p5131_p11 = scmp.lt.u32.totalorder %s5129_s29, %s5124_s14 }
 0x100   : > { %p5127_p8 = pnand %p5125_p13, %p7795_p4  ;;  %p5133_p2 = scmp.lt.u32.totalorder %s5124_s14, %s5790_s27 }
 0x101   : > { %p5132_p12 = por %p5131_p11, %p5130_p5 }
 0x102   : > { %p5128_p6 = pneg %p5127_p8 }
 0x103   : > { %p5134_p1 = por %p5133_p2, %p5132_p12 }
 0x105   : > { %p5135_p3 = pnand %p5134_p1, %p5128_p6 }
 0x107   : > { %5138 = shalt.err (!%p5135_p3)
}
 0x108   : > { %s5139_s9 = scalar_lea.vmem %s5792_s3, 512  ;;  %s5362_s6 = smov [#allocation3]  }
 0x109   : > { %p5140_p10 = scmp.ne.s32.totalorder %s5792_s3, %s5139_s9  ;;  %s5144_s28 = sshll.u32 %s5362_s6, 4  ;;  %s5145_s28 = int_to_ptr.vmem [resolvable:$false] %s5144_s28 }
 0x10a   : > { %s5146_s15 = scalar_lea.vmem %s5145_s28, 1024  ;;  %p5147_p0 = scmp.lt.s32.totalorder %s5792_s3, %s5145_s28 }
 0x10b   : > { %p5142_p7 = pnand %p5140_p10, %p7795_p4  ;;  %p5148_p13 = scmp.lt.s32.totalorder %s5146_s15, %s5139_s9 }
 0x10d   : > { %p5143_p9 = pneg %p5142_p7  ;;  %p5149_p8 = por %p5148_p13, %p5147_p0 }
 0x10f   : > { %p5150_p5 = pnand %p5149_p8, %p5143_p9 }
 0x111   : > { %5153 = shalt.err (!%p5150_p5)
}
 0x112   : > { %s5363_s12 = smov 128   ;;  %s5364_s18 = smov 8  }
 0x113   : > { %p7796_p6 = scmp.ne.s32.totalorder %s7781_s17, 0  ;;  %s5822_s14 = scalar_lea.hbm %s7652_s2, %s5658_s20 }
 0x114   : > { %s521_s4 = scalar_lea.vmem [#allocation8], %s5600_s22  ;;  %s7797_s24 = sld [smem:[#allocation98_spill]] }
 0x115   : > { %4723 = dma.hbm_to_vmem [thread:$0]  (!%p7796_p6), %s5790_s27, 512, %s5792_s3, %s474_s13, %s5363_s12, %s5363_s12, %s5364_s18  }
 0x116   : > { %s528_s26 = sshll.u32 %s521_s4, 4  ;;  %s5154_s6 = scalar_lea.hbm %s5822_s14, 16  ;;  %s529_s26 = int_to_ptr.vmem [resolvable:$true] %s528_s26 }
 0x117   : > { %p5155_p11 = scmp.ne.s32.totalorder %s5822_s14, %s5154_s6  ;;  %s5159_s13 = scalar_lea.hbm %s7652_s2, 32 }
 0x118   : > { %p5160_p1 = scmp.lt.u32.totalorder %s5822_s14, %s7652_s2  ;;  %p5161_p3 = scmp.lt.u32.totalorder %s5159_s13, %s5154_s6 }
 0x119   : > { %p5157_p12 = pnand %p5155_p11, %p7795_p4  ;;  %p5163_p7 = scmp.lt.u32.totalorder %s5154_s6, %s5822_s14 }
 0x11a   : > { %s5829_s9 = scalar_lea.hbm %s7797_s24, %s5658_s20  ;;  %p5162_p10 = por %p5161_p3, %p5160_p1 }
 0x11b   : > { %p5158_p2 = pneg %p5157_p12 }
 0x11c   : > { %p5164_p9 = por %p5163_p7, %p5162_p10 }
 0x11e   : > { %p5165_p0 = pnand %p5164_p9, %p5158_p2 }
 0x120   : > { %5168 = shalt.err (!%p5165_p0)
}
 0x121   : > { %s5169_s12 = scalar_lea.vmem %s529_s26, 16  ;;  %s5365_s18 = smov [#allocation8]  }
 0x122   : > { %p5170_p13 = scmp.ne.s32.totalorder %s529_s26, %s5169_s12  ;;  %s5174_s1 = sshll.u32 %s5365_s18, 4  ;;  %s5175_s1 = int_to_ptr.vmem [resolvable:$false] %s5174_s1 }
 0x123   : > { %s5176_s25 = scalar_lea.vmem %s5175_s1, 32  ;;  %p5177_p11 = scmp.lt.s32.totalorder %s529_s26, %s5175_s1 }
 0x124   : > { %p5172_p8 = pnand %p5170_p13, %p7795_p4  ;;  %p5178_p12 = scmp.lt.s32.totalorder %s5176_s25, %s5169_s12 }
 0x126   : > { %p5173_p5 = pneg %p5172_p8  ;;  %p5179_p6 = por %p5178_p12, %p5177_p11 }
 0x128   : > { %p5180_p1 = pnand %p5179_p6, %p5173_p5 }
 0x12a   : > { %5183 = shalt.err (!%p5180_p1)
}
 0x12b   : > { %p7798_p3 = scmp.ne.s32.totalorder %s7781_s17, 0  ;;  %s7799_s4 = scalar_lea.sflag [#allocation7], %s5603_s21 }
 0x12c   : > { %s559_s29 = scalar_lea.vmem [#allocation11], %s5600_s22  ;;  %s7800_s3 = sld [smem:[#allocation99_spill]] }
 0x12d   : > { %4729 = dma.hbm_to_vmem [thread:$0]  (!%p7798_p3), %s5822_s14, 16, %s529_s26, %s7799_s4  }
 0x12e   : > { %s566_s19 = sshll.u32 %s559_s29, 4  ;;  %s5184_s28 = scalar_lea.hbm %s5829_s9, 16  ;;  %s567_s19 = int_to_ptr.vmem [resolvable:$true] %s566_s19 }
 0x12f   : > { %p5185_p6 = scmp.ne.s32.totalorder %s5829_s9, %s5184_s28  ;;  %s5189_s18 = scalar_lea.hbm %s7797_s24, 32 }
 0x130   : > { %p5190_p7 = scmp.lt.u32.totalorder %s5829_s9, %s7797_s24  ;;  %p5191_p9 = scmp.lt.u32.totalorder %s5189_s18, %s5184_s28 }
 0x131   : > { %p5187_p2 = pnand %p5185_p6, %p7795_p4  ;;  %p5193_p13 = scmp.lt.u32.totalorder %s5184_s28, %s5829_s9 }
 0x132   : > { %s5855_s13 = scalar_lea.hbm %s7800_s3, %s5658_s20  ;;  %p5192_p0 = por %p5191_p9, %p5190_p7 }
 0x133   : > { %p5188_p10 = pneg %p5187_p2 }
 0x134   : > { %p5194_p8 = por %p5193_p13, %p5192_p0 }
 0x136   : > { %p5195_p5 = pnand %p5194_p8, %p5188_p10 }
 0x138   : > { %5198 = shalt.err (!%p5195_p5)
}
 0x139   : > { %s5199_s20 = scalar_lea.vmem %s567_s19, 16  ;;  %s5366_s14 = smov [#allocation11]  }
 0x13a   : > { %p5200_p11 = scmp.ne.s32.totalorder %s567_s19, %s5199_s20  ;;  %s5204_s26 = sshll.u32 %s5366_s14, 4  ;;  %s5205_s26 = int_to_ptr.vmem [resolvable:$false] %s5204_s26 }
 0x13b   : > { %s5206_s4 = scalar_lea.vmem %s5205_s26, 32  ;;  %p5207_p6 = scmp.lt.s32.totalorder %s567_s19, %s5205_s26 }
 0x13c   : > { %p5202_p12 = pnand %p5200_p11, %p7795_p4  ;;  %p5208_p2 = scmp.lt.s32.totalorder %s5206_s4, %s5199_s20 }
 0x13e   : > { %p5203_p1 = pneg %p5202_p12  ;;  %p5209_p3 = por %p5208_p2, %p5207_p6 }
 0x140   : > { %p5210_p7 = pnand %p5209_p3, %p5203_p1 }
 0x142   : > { %5213 = shalt.err (!%p5210_p7)
}
 0x143   : > { %p7801_p9 = scmp.ne.s32.totalorder %s7781_s17, 0  ;;  %s593_s29 = scalar_lea.vmem [#allocation14], %s5600_s22 }
 0x144   : > { %s600_s6 = sshll.u32 %s593_s29, 4  ;;  %s5214_s27 = scalar_lea.hbm %s5855_s13, 16  ;;  %s601_s6 = int_to_ptr.vmem [resolvable:$true] %s600_s6 }
 0x145   : > { %4735 = dma.hbm_to_vmem [thread:$0]  (!%p7801_p9), %s5829_s9, 16, %s567_s19, %s536_s7  }
 0x146   : > { %p5215_p10 = scmp.ne.s32.totalorder %s5855_s13, %s5214_s27  ;;  %s5219_s12 = scalar_lea.hbm %s7800_s3, 32 }
 0x147   : > { %p5220_p13 = scmp.lt.u32.totalorder %s5855_s13, %s7800_s3  ;;  %p5221_p8 = scmp.lt.u32.totalorder %s5219_s12, %s5214_s27 }
 0x148   : > { %p5217_p3 = pnand %p5215_p10, %p7795_p4  ;;  %p5223_p11 = scmp.lt.u32.totalorder %s5214_s27, %s5855_s13 }
 0x149   : > { %p5222_p5 = por %p5221_p8, %p5220_p13 }
 0x14a   : > { %p5218_p0 = pneg %p5217_p3 }
 0x14b   : > { %p5224_p12 = por %p5223_p11, %p5222_p5 }
 0x14d   : > { %p5225_p1 = pnand %p5224_p12, %p5218_p0 }
 0x14f   : > { %5228 = shalt.err (!%p5225_p1)
}
 0x150   : > { %s5229_s7 = scalar_lea.vmem %s601_s6, 16  ;;  %s5367_s22 = smov [#allocation14]  }
 0x151   : > { %p5230_p6 = scmp.ne.s32.totalorder %s601_s6, %s5229_s7  ;;  %s5234_s9 = sshll.u32 %s5367_s22, 4  ;;  %s5235_s9 = int_to_ptr.vmem [resolvable:$false] %s5234_s9 }
 0x152   : > { %s5236_s19 = scalar_lea.vmem %s5235_s9, 32  ;;  %p5237_p10 = scmp.lt.s32.totalorder %s601_s6, %s5235_s9 }
 0x153   : > { %p5232_p2 = pnand %p5230_p6, %p7795_p4  ;;  %p5238_p3 = scmp.lt.s32.totalorder %s5236_s19, %s5229_s7 }
 0x155   : > { %p5233_p7 = pneg %p5232_p2  ;;  %p5239_p9 = por %p5238_p3, %p5237_p10 }
 0x157   : > { %p5240_p8 = pnand %p5239_p9, %p5233_p7 }
 0x159   : > { %5243 = shalt.err (!%p5240_p8)
}
 0x15a   : > { %p7802_p13 = scmp.ne.s32.totalorder %s7781_s17, 0  ;;  %s7803_s25 = sld [smem:[#allocation41_spill]] }
 0x15c   : > { %4741 = dma.hbm_to_vmem [thread:$0]  (!%p7802_p13), %s5855_s13, 16, %s601_s6, %s574_s16  }
 0x160   : > { %p7804_p0 = scmp.ne.s32.totalorder %s7803_s25, 0 }
 0x162   : > { %609 = sbr.rel (%p7804_p0) target bundleno = 2176 (0x880), region = 72 }
 0x169   : > { %s7805_s23 = sld [smem:[#allocation33_spill]] }
 0x16a   : > { %s7806_s20 = sld [smem:[#allocation38_spill]] }
 0x16f   : > { %s5899_s14 = sand.u32 1, %s7805_s23  }
 0x170   : > { %s4368_s26 = sshll.u32 %s5899_s14, 5  ;;  %s612_s4 = scalar_lea.sflag [#allocation4], %s5899_s14 }
 0x171   : > { %s5903_s29 = scalar_lea.vmem [#allocation3], %s4368_s26  ;;  %p7807_p4 = scmp.ne.s32.totalorder %s7806_s20, 0 }
 0x173   : > { %5297 = dma.done.wait (%p7807_p4), %s612_s4, 512  }
 0x174   : > { %5299 = vsyncadd (%p7807_p4), %s612_s4, 4294966784  ;;  %s7808_s17 = sld [smem:[#allocation37_spill]]  ;;  %s4666_s16 = smul.u32 384, %s5899_s14 }
 0x176   : > { %s5911_s6 = scalar_lea.vmem [#allocation6], %s4666_s16 }
 0x17a   : > { %s620_s21 = sand.u32 1, %s7808_s17  }
 0x17b   : > { %s621_s13 = scalar_lea.sflag [#allocation7], %s620_s21 }
 0x17c   : > { %5301 = dma.done.wait (%p7807_p4), %s621_s13, 6160  }
 0x17d   : > { %5303 = vsyncadd (%p7807_p4), %s621_s13, 4294961136  ;;  %s4667_s27 = smul.u32 96, %s5899_s14  ;;  %s632_s28 = scalar_lea.vmem [#allocation8], %s5899_s14 }
 0x17e   : > { %s638_s15 = scalar_lea.sflag [#allocation10], %s620_s21 }
 0x17f   : > { %s5919_s12 = scalar_lea.vmem [#allocation9], %s4667_s27 }
 0x180   : > { %5305 = dma.done.wait (%p7807_p4), %s638_s15, 1552  }
 0x181   : > { %5307 = vsyncadd (%p7807_p4), %s638_s15, 4294965744  ;;  %s649_s18 = scalar_lea.vmem [#allocation11], %s5899_s14  ;;  %s655_s1 = scalar_lea.sflag [#allocation13], %s620_s21 }
 0x182   : > { %s657_s7 = scalar_lea.vmem [#allocation12], %s5899_s14 }
 0x183   : > { %5309 = dma.done.wait (%p7807_p4), %s655_s1, 32  }
 0x184   : > { %5311 = vsyncadd (%p7807_p4), %s655_s1, 4294967264  ;;  %s665_s22 = scalar_lea.vmem [#allocation14], %s5899_s14  ;;  %p7809_p9 = scmp.eq.s32.totalorder %s7808_s17, 0 }
 0x186   : > { %5313 = dma.done.wait (%p7809_p9), [#allocation16], 528   ;;  %p7810_p5 = pmov %p7809_p9 }
 0x188   : > { %5315 = vsyncadd (%p7810_p5), [#allocation16], 4294966768  ;;  %p7811_p11 = pmov %p7810_p5 }
 0x189   : > { %p7812_p12 = pmov %p7810_p5 }
 0x18a   : > { %5317 = dma.done.wait (%p7811_p11), [#allocation19], 272  }
 0x18b   : > { %5319 = vsyncadd (%p7812_p12), [#allocation19], 4294967024  ;;  %p7813_p1 = pmov %p7810_p5 }
 0x18d   : > { %5321 = dma.done.wait (%p7813_p1), [#allocation22], 16   ;;  %p7814_p6 = pmov %p7813_p1 }
 0x18e   : > { %v7699_v1 = vlaneseq  ;;  %v5368_v2 = vmov 1983009808   ;;  %v5369_v4 = vmov 0   ;;  %v5370_v6 = vmov 1934713408   ;;  %v1809_v12 = vld [vmem:[%s5903_s29] sm:$0xff] }
 0x18f   : > { %5323 = vsyncadd (%p7814_p6), [#allocation22], 4294967280  ;;  %v760_v3 = vunpack.c.l.s4 %v5368_v2  ;;  %4827 = vset.pattern.permute.xlu0 %v5369_v4  ;;  %v768_v7 = vunpack.c.l.s4 %v5370_v6  ;;  %v758_v13 = vld [vmem:[%s5903_s29] sm:$0xf]  ;;  %s5371_s9 = smov 48   ;;  %s5372_s19 = smov 112  }
 0x190   : > { %v5946_v5 = vshrl.u32 %v7699_v1, 7  ;;  %1817 = vrot.lane.b32.xlu0 %v1809_v12, %s5371_s9  ;;  %977 = vrot.lane.b32.xlu1 %v758_v13, %s5372_s19  ;;  %v792_v15 = vld [vmem:[%s5903_s29 + $0x10] sm:$0xf]  ;;  %s5373_s25 = smov 80   ;;  %s5374_s23 = smov 96   ;;  %vm1829_vm0 = vcmask 392192  }
 0x191   : > { %v761_v8 = vunpack.c.0.s8 %v760_v3  ;;  %v769_v9 = vunpack.c.0.s8 %v768_v7  ;;  %v1811_v16 = vld [vmem:[%s5903_s29 + $0x10] sm:$0xff]  ;;  %s5375_s20 = smov 16   ;;  %s5376_s26 = smov 32   ;;  %v1810_v24 = vld [vmem:[%s5903_s29 + $0x8] sm:$0x33]  ;;  %vm2263_vm1 = vcmask 130048  }
 0x192   : > { %7815 = vst [vmem:[#allocation44_spill] sm:$0xff] %v5946_v5  ;;  %v1812_v25 = vld [vmem:[%s5903_s29 + $0x18] sm:$0x33]  ;;  %s5377_s4 = smov 64   ;;  %v5993_v26 = vld [vmem:[%s5903_s29 + $0x8] sm:$0x3] }
 0x193   : > { %v5949_v10 = vsub.s32 %v761_v8, %v5946_v5  ;;  %v5952_v11 = vsub.s32 %v769_v9, %v5946_v5  ;;  %v5996_v27 = vld [vmem:[%s5903_s29 + $0x18] sm:$0x3]  ;;  %vm2046_vm2 = vcmask 261120   ;;  %vm924_vm3 = vcmask 523264   ;;  %s7941_s29 = sld [smem:[#allocation35_spill]]  ;;  %s7945_s16 = sld [smem:[#allocation39_spill]] }
 0x194   : > { %1821 = vrot.lane.b32.xlu0 %v1811_v16, %s5371_s9  ;;  %981 = vrot.lane.b32.xlu1 %v792_v15, %s5372_s19  ;;  %vm2720_vm4 = vcmask 1040384   ;;  %vm2721_vm5 = vsmask.f32 256  ;;  %vm2784_vm7 = vcmask 1041408   ;;  %vm2785_vm8 = vsmask.f32 1280 }
 0x195   : > { %7816 = vst [vmem:[#allocation45_spill] sm:$0xff] %v5949_v10  ;;  %7817 = vst [vmem:[#allocation46_spill] sm:$0xff] %v5952_v11  ;;  %v5959_v14 = vrot.slane %v758_v13, %v5949_v10  ;;  %v5964_v17 = vrot.slane %v792_v15, %v5949_v10  ;;  %vm2848_vm10 = vcmask 1042432   ;;  %vm2849_vm11 = vsmask.f32 2304 }
 0x196   : > { %vm6622_vm6 = vmand %vm2720_vm4, %vm2721_vm5  ;;  %vm2912_vm13 = vcmask 1043456   ;;  %vm2913_vm14 = vsmask.f32 3328  ;;  %vm3870_vm5 = vcmask 1041409  }
 0x197   : > { %v5968_v18 = vrot.slane %v5959_v14, %v5952_v11  ;;  %v5972_v19 = vrot.slane %v5964_v17, %v5952_v11  ;;  %vm6682_vm9 = vmand %vm2784_vm7, %vm2785_vm8  ;;  %vm5379_vm8 = vmmov 0  }
 0x198   : > { %1393 = vrot.lane.b32.xlu0 %v758_v13, %s5373_s25  ;;  %1397 = vrot.lane.b32.xlu1 %v792_v15, %s5373_s25  ;;  %vm6936_vm12 = vmand %vm2848_vm10, %vm2849_vm11 }
 0x199   : > { %v5978_v20 = vcombine.high %v5968_v18, %v5369_v4  ;;  %v5982_v21 = vcombine.high %v5972_v19, %v5369_v4  ;;  %v829_v28 = vshrl.u32 %v5968_v18, 16  ;;  %v854_v31 = vshrl.u32 %v5972_v19, 16  ;;  %vm6976_vm15 = vmand %vm2912_vm13, %vm2913_vm14  ;;  %p755_p2 = scmp.eq.s32.totalorder %s7941_s29, 0  ;;  %s4564_s13 = sshll.u32 %s7941_s29, 4 }
 0x19a   : > { %p7948_p10 = scmp.ne.s32.totalorder %s7945_s16, 0 }
 0x19b   : > { %v834_v22 = vshrl.u32 %v5978_v20, 16  ;;  %v858_v23 = vshrl.u32 %v5982_v21, 16  ;;  %v831_v32 = vpack.i.b16 %v5369_v4, %v829_v28  ;;  %v855_v35 = vpack.i.b16 %v5369_v4, %v854_v31  ;;  %s756_s17 = scalar_select %p755_p2, 1, 0 }
 0x19c   : > { %1185 = vrot.lane.b32.xlu0 %v758_v13, %s5374_s23  ;;  %1189 = vrot.lane.b32.xlu1 %v792_v15, %s5374_s23 }
 0x19d   : > { %v835_v29 = vpack.i.b16 %v5369_v4, %v834_v22  ;;  %v859_v30 = vpack.i.b16 %v5369_v4, %v858_v23  ;;  %v4374_v36 = vcombine.low %v831_v32, %v831_v32  ;;  %v4375_v37 = vcombine.low %v855_v35, %v855_v35  ;;  %s757_s21 = scvt.s32.f32 %s756_s17 }
 0x19f   : > { %v4376_v33 = vcombine.low %v835_v29, %v835_v29  ;;  %v4377_v34 = vcombine.low %v859_v30, %v859_v30 }
 0x1a0   : > { %2251 = vrot.lane.b32.xlu0 %v1809_v12, %s5375_s20  ;;  %2255 = vrot.lane.b32.xlu1 %v1811_v16, %s5375_s20 }
 0x1a4   : > { %2034 = vrot.lane.b32.xlu0 %v1809_v12, %s5376_s26  ;;  %2038 = vrot.lane.b32.xlu1 %v1811_v16, %s5376_s26 }
 0x1a8   : > { %1601 = vrot.lane.b32.xlu0 %v758_v13, %s5377_s4  ;;  %1605 = vrot.lane.b32.xlu1 %v792_v15, %s5377_s4 }
 0x1ac   : > { %1819 = vrot.lane.b32.xlu0 %v1810_v24, %s5371_s9  ;;  %1823 = vrot.lane.b32.xlu1 %v1812_v25, %s5371_s9  ;;  %s5380_s9 = smov [#allocation23]  }
 0x1b0   : > { %979 = vrot.lane.b32.xlu0 %v5993_v26, %s5372_s19  ;;  %983 = vrot.lane.b32.xlu1 %v5996_v27, %s5372_s19  ;;  %s5248_s19 = sshll.u32 %s5380_s9, 4  ;;  %s5249_s19 = int_to_ptr.vmem [resolvable:$false] %s5248_s19 }
 0x1b4   : > { %1395 = vrot.lane.b32.xlu0 %v5993_v26, %s5373_s25  ;;  %1399 = vrot.lane.b32.xlu1 %v5996_v27, %s5373_s25  ;;  %s5250_s25 = scalar_lea.vmem %s5249_s19, 32 }
 0x1b8   : > { %1187 = vrot.lane.b32.xlu0 %v5993_v26, %s5374_s23  ;;  %1191 = vrot.lane.b32.xlu1 %v5996_v27, %s5374_s23 }
 0x1bc   : > { %2253 = vrot.lane.b32.xlu0 %v1810_v24, %s5375_s20  ;;  %2257 = vrot.lane.b32.xlu1 %v1812_v25, %s5375_s20 }
 0x1c0   : > { %2036 = vrot.lane.b32.xlu0 %v1810_v24, %s5376_s26  ;;  %2040 = vrot.lane.b32.xlu1 %v1812_v25, %s5376_s26 }
 0x1c4   : > { %1603 = vrot.lane.b32.xlu0 %v5993_v26, %s5377_s4  ;;  %1607 = vrot.lane.b32.xlu1 %v5996_v27, %s5377_s4 }
 0x1c8   : > { %888 = vrot.lane.b32.xlu0 %v4376_v33, %s5377_s4  ;;  %890 = vrot.lane.b32.xlu1 %v4377_v34, %s5377_s4 }
 0x1cc   : > { %880 = vrot.lane.b32.xlu0 %v4374_v36, %s5377_s4  ;;  %882 = vrot.lane.b32.xlu1 %v4375_v37, %s5377_s4 }
 0x202   : > { %v6024_v38 = vpop.permute.xlu0 %1817  ;;  %v978_v39 = vpop.permute.xlu1 %977 }
 0x203   : > { %v6027_v40 = vrot.slane %v978_v39, %v5949_v10 }
 0x205   : > { %v6031_v41 = vrot.slane %v6027_v40, %v5952_v11 }
 0x206   : > { %v6033_v42 = vpop.permute.xlu0 %1821  ;;  %v982_v43 = vpop.permute.xlu1 %981 }
 0x207   : > { %v6036_v44 = vrot.slane %v982_v43, %v5949_v10  ;;  %v1055_v45 = vshrl.u32 %v6031_v41, 16  ;;  %v6096_v25 = vcombine.high %v6031_v41, %v5369_v4 }
 0x209   : > { %v6041_v46 = vrot.slane %v6036_v44, %v5952_v11  ;;  %v1056_v49 = vpack.i.b16 %v5369_v4, %v1055_v45  ;;  %v1059_v43 = vshrl.u32 %v6096_v25, 16 }
 0x20a   : > { %v1394_v47 = vpop.permute.xlu0 %1393  ;;  %v1398_v48 = vpop.permute.xlu1 %1397 }
 0x20b   : > { %v6045_v50 = vrot.slane %v1394_v47, %v5949_v10  ;;  %v6048_v51 = vrot.slane %v1398_v48, %v5949_v10  ;;  %v4386_v52 = vcombine.low %v1056_v49, %v1056_v49  ;;  %v1079_v53 = vshrl.u32 %v6041_v46, 16 }
 0x20c   : > { %v6106_v34 = vcombine.high %v6041_v46, %v5369_v4 }
 0x20d   : > { %v6053_v54 = vrot.slane %v6045_v50, %v5952_v11  ;;  %v6057_v55 = vrot.slane %v6048_v51, %v5952_v11  ;;  %1105 = vrot.lane.b32.xlu0 %v4386_v52, %s5377_s4  ;;  %v1080_v58 = vpack.i.b16 %v5369_v4, %v1079_v53 }
 0x20e   : > { %v1186_v56 = vpop.permute.xlu0 %1185  ;;  %v1190_v57 = vpop.permute.xlu1 %1189  ;;  %v1083_v48 = vshrl.u32 %v6106_v34, 16 }
 0x20f   : > { %v6062_v59 = vrot.slane %v1186_v56, %v5949_v10  ;;  %v6065_v60 = vrot.slane %v1190_v57, %v5949_v10  ;;  %v4387_v61 = vcombine.low %v1080_v58, %v1080_v58  ;;  %v1495_v62 = vshrl.u32 %v6057_v55, 16 }
 0x210   : > { %v1471_v63 = vshrl.u32 %v6053_v54, 16  ;;  %v6120_v37 = vcombine.high %v6053_v54, %v5369_v4  ;;  %v6126_v45 = vcombine.high %v6057_v55, %v5369_v4  ;;  %v1060_v57 = vpack.i.b16 %v5369_v4, %v1059_v43 }
 0x211   : > { %v6071_v0 = vrot.slane %v6062_v59, %v5952_v11  ;;  %v6075_v2 = vrot.slane %v6065_v60, %v5952_v11  ;;  %1107 = vrot.lane.b32.xlu1 %v4387_v61, %s5377_s4  ;;  %v1496_v7 = vpack.i.b16 %v5369_v4, %v1495_v62 }
 0x212   : > { %v6078_v3 = vpop.permute.xlu0 %2251  ;;  %v6080_v6 = vpop.permute.xlu1 %2255  ;;  %v1472_v8 = vpack.i.b16 %v5369_v4, %v1471_v63  ;;  %v1475_v58 = vshrl.u32 %v6120_v37, 16  ;;  %v1084_v63 = vpack.i.b16 %v5369_v4, %v1083_v48  ;;  %v1443_v48 = vcombine.high %v6048_v51, %v5369_v4 }
 0x213   : > { %v4411_v9 = vcombine.low %v1496_v7, %v1496_v7  ;;  %v1287_v16 = vshrl.u32 %v6075_v2, 16  ;;  %v1263_v22 = vshrl.u32 %v6071_v0, 16  ;;  %v6134_v53 = vcombine.high %v6071_v0, %v5369_v4 }
 0x214   : > { %v4410_v12 = vcombine.low %v1472_v8, %v1472_v8  ;;  %v6140_v61 = vcombine.high %v6075_v2, %v5369_v4  ;;  %v1499_v7 = vshrl.u32 %v6126_v45, 16  ;;  %v1825_v8 = vrot.slane %v6024_v38, 4 }
 0x215   : > { %1523 = vrot.lane.b32.xlu1 %v4411_v9, %s5377_s4  ;;  %v1288_v23 = vpack.i.b16 %v5369_v4, %v1287_v16  ;;  %v1264_v24 = vpack.i.b16 %v5369_v4, %v1263_v22  ;;  %v993_v9 = vcombine.high %v6027_v40, %v5369_v4  ;;  %v1027_v16 = vcombine.high %v6036_v44, %v5369_v4 }
 0x216   : > { %v6084_v13 = vpop.permute.xlu0 %2034  ;;  %v6086_v15 = vpop.permute.xlu1 %2038  ;;  %1521 = vrot.lane.b32.xlu0 %v4410_v12, %s5377_s4  ;;  %v1827_v12 = vrot.slane %v6033_v42, 4  ;;  %v1291_v44 = vshrl.u32 %v6140_v61, 16 }
 0x217   : > { %v4399_v30 = vcombine.low %v1288_v23, %v1288_v23  ;;  %v4398_v31 = vcombine.low %v1264_v24, %v1264_v24  ;;  %v4388_v23 = vcombine.low %v1060_v57, %v1060_v57  ;;  %v1476_v24 = vpack.i.b16 %v5369_v4, %v1475_v58 }
 0x218   : > { %v1832_v43 = vsel %vm1829_vm0, %v6033_v42, %v1827_v12  ;;  %v6182_v58 = vrot.slane %v1027_v16, %v5952_v11 }
 0x219   : > { %1315 = vrot.lane.b32.xlu1 %v4399_v30, %s5377_s4  ;;  %v1500_v30 = vpack.i.b16 %v5369_v4, %v1499_v7 }
 0x21a   : > { %v1602_v28 = vpop.permute.xlu0 %1601  ;;  %v1606_v29 = vpop.permute.xlu1 %1605  ;;  %1313 = vrot.lane.b32.xlu0 %v4398_v31, %s5377_s4  ;;  %v1830_v31 = vsel %vm1829_vm0, %v6024_v38, %v1825_v8  ;;  %v2261_v38 = vrot.slane %v6080_v6, 4  ;;  %7819 = vst [vmem:[#allocation48_spill] sm:$0xff] %v6182_v58  ;;  %v6197_v8 = vrot.slane %v1443_v48, %v5952_v11 }
 0x21b   : > { %v6099_v32 = vrot.slane %v1602_v28, %v5949_v10  ;;  %v6102_v33 = vrot.slane %v1606_v29, %v5949_v10  ;;  %v1267_v28 = vshrl.u32 %v6134_v53, 16  ;;  %v4389_v29 = vcombine.low %v1084_v63, %v1084_v63 }
 0x21c   : > { %v4413_v42 = vcombine.low %v1500_v30, %v1500_v30  ;;  %v6187_v51 = vrot.slane %v1830_v31, %v5949_v10  ;;  %v6191_v63 = vrot.slane %v1832_v43, %v5949_v10  ;;  %7821 = vst [vmem:[#allocation50_spill] sm:$0xff] %v6197_v8  ;;  %v2266_v16 = vsel %vm2263_vm1, %v6080_v6, %v2261_v38 }
 0x21d   : > { %v6112_v35 = vrot.slane %v6099_v32, %v5952_v11  ;;  %v6116_v36 = vrot.slane %v6102_v33, %v5952_v11  ;;  %v2044_v31 = vrot.slane %v6086_v15, 4  ;;  %v6219_v43 = vrot.slane %v2266_v16, %v5949_v10 }
 0x21f   : > { %v1679_v39 = vshrl.u32 %v6112_v35, 16  ;;  %v1703_v47 = vshrl.u32 %v6116_v36, 16  ;;  %v6154_v22 = vcombine.high %v6112_v35, %v5369_v4  ;;  %v6160_v40 = vcombine.high %v6116_v36, %v5369_v4 }
 0x221   : > { %v1680_v49 = vpack.i.b16 %v5369_v4, %v1679_v39  ;;  %v1704_v52 = vpack.i.b16 %v5369_v4, %v1703_v47  ;;  %v6167_v39 = vrot.slane %v993_v9, %v5952_v11  ;;  %v1409_v47 = vcombine.high %v6045_v50, %v5369_v4 }
 0x222   : > { %v1683_v57 = vshrl.u32 %v6154_v22, 16  ;;  %v1292_v50 = vpack.i.b16 %v5369_v4, %v1291_v44  ;;  %v1087_v44 = vshrl.u32 %v6182_v58, 16 }
 0x223   : > { %v4422_v56 = vcombine.low %v1680_v49, %v1680_v49  ;;  %v4423_v62 = vcombine.low %v1704_v52, %v1704_v52  ;;  %7818 = vst [vmem:[#allocation47_spill] sm:$0xff] %v6167_v39  ;;  %v2259_v49 = vrot.slane %v6078_v3, 4  ;;  %v4412_v52 = vcombine.low %v1476_v24, %v1476_v24 }
 0x224   : > { %v6194_v7 = vrot.slane %v1409_v47, %v5952_v11  ;;  %v1063_v9 = vshrl.u32 %v6167_v39, 16  ;;  %v1684_v24 = vpack.i.b16 %v5369_v4, %v1683_v57  ;;  %v6224_v47 = vrot.slane %v6191_v63, %v5952_v11 }
 0x225   : > { %1729 = vrot.lane.b32.xlu0 %v4422_v56, %s5377_s4  ;;  %1731 = vrot.lane.b32.xlu1 %v4423_v62, %s5377_s4  ;;  %v1268_v56 = vpack.i.b16 %v5369_v4, %v1267_v28  ;;  %v1707_v62 = vshrl.u32 %v6160_v40, 16  ;;  %v2264_v12 = vsel %vm2263_vm1, %v6078_v3, %v2259_v49  ;;  %v2042_v28 = vrot.slane %v6084_v13, 4 }
 0x226   : > { %7820 = vst [vmem:[#allocation49_spill] sm:$0xff] %v6194_v7  ;;  %v6213_v3 = vrot.slane %v6187_v51, %v5952_v11  ;;  %v6216_v6 = vrot.slane %v2264_v12, %v5949_v10  ;;  %7823 = vst [vmem:[#allocation52_spill] sm:$0xff] %v6224_v47  ;;  %v4424_v48 = vcombine.low %v1684_v24, %v1684_v24  ;;  %v1479_v38 = vshrl.u32 %v6194_v7, 16 }
 0x227   : > { %v1708_v30 = vpack.i.b16 %v5369_v4, %v1707_v62  ;;  %v1064_v49 = vpack.i.b16 %v5369_v4, %v1063_v9  ;;  %v1088_v57 = vpack.i.b16 %v5369_v4, %v1087_v44  ;;  %v6241_v9 = vrot.slane %v6219_v43, %v5952_v11 }
 0x228   : > { %7822 = vst [vmem:[#allocation51_spill] sm:$0xff] %v6213_v3  ;;  %v6237_v62 = vrot.slane %v6216_v6, %v5952_v11  ;;  %v1480_v16 = vpack.i.b16 %v5369_v4, %v1479_v38  ;;  %v6301_v5 = vcombine.high %v6194_v7, %v5369_v4 }
 0x229   : > { %1113 = vrot.lane.b32.xlu0 %v4388_v23, %s5377_s4  ;;  %1115 = vrot.lane.b32.xlu1 %v4389_v29, %s5377_s4  ;;  %v4400_v23 = vcombine.low %v1268_v56, %v1268_v56  ;;  %v4401_v29 = vcombine.low %v1292_v50, %v1292_v50  ;;  %v4425_v56 = vcombine.low %v1708_v30, %v1708_v30 }
 0x22a   : > { %v2049_v50 = vsel %vm2046_vm2, %v6086_v15, %v2044_v31  ;;  %7824 = vst [vmem:[#allocation53_spill] sm:$0xff] %v6237_v62  ;;  %7825 = vst [vmem:[#allocation54_spill] sm:$0xff] %v6241_v9  ;;  %v4390_v12 = vcombine.low %v1064_v49, %v1064_v49  ;;  %v1904_v15 = vshrl.u32 %v6213_v3, 16  ;;  %v4391_v24 = vcombine.low %v1088_v57, %v1088_v57 }
 0x22b   : > { %v4414_v44 = vcombine.low %v1480_v16, %v1480_v16  ;;  %v1201_v57 = vcombine.high %v6062_v59, %v5369_v4  ;;  %7832 = vst [vmem:[#allocation61_spill] sm:$0xff] %v6301_v5 }
 0x22c   : > { %v1905_v31 = vpack.i.b16 %v5369_v4, %v1904_v15  ;;  %v6278_v15 = vcombine.high %v6167_v39, %v5369_v4  ;;  %v6333_v39 = vcombine.high %v6213_v3, %v5369_v4  ;;  %v4842_v3 = vld [vmem:[%s5911_s6 + $0x78] sm:$0xff]  }
 0x22d   : > { %1529 = vrot.lane.b32.xlu0 %v4412_v52, %s5377_s4  ;;  %1531 = vrot.lane.b32.xlu1 %v4413_v42, %s5377_s4  ;;  %v2047_v52 = vsel %vm2046_vm2, %v6084_v13, %v2042_v28  ;;  %v1503_v42 = vshrl.u32 %v6197_v8, 16 }
 0x22e   : > { %v6245_v13 = vrot.slane %v2047_v52, %v5949_v10  ;;  %7828 = vst [vmem:[#allocation57_spill] sm:$0xff] %v6278_v15  ;;  %v1067_v1 = vshrl.u32 %v6278_v15, 16  ;;  %7836 = vst [vmem:[#allocation65_spill] sm:$0xff] %v6333_v39  ;;  %v6337_v15 = vpop.permute.xlu0 %1819 }
 0x22f   : > { %v1504_v28 = vpack.i.b16 %v5369_v4, %v1503_v42  ;;  %v1235_v42 = vcombine.high %v6065_v60, %v5369_v4  ;;  %v6284_v60 = vcombine.high %v6182_v58, %v5369_v4 }
 0x230   : > { %v6258_v30 = vrot.slane %v6245_v13, %v5952_v11 }
 0x231   : > { %1321 = vrot.lane.b32.xlu0 %v4400_v23, %s5377_s4  ;;  %1323 = vrot.lane.b32.xlu1 %v4401_v29, %s5377_s4  ;;  %v6250_v23 = vrot.slane %v2049_v50, %v5949_v10  ;;  %v1928_v29 = vshrl.u32 %v6224_v47, 16  ;;  %v4415_v38 = vcombine.low %v1504_v28, %v1504_v28  ;;  %v4434_v50 = vcombine.low %v1905_v31, %v1905_v31 }
 0x232   : > { %7826 = vst [vmem:[#allocation55_spill] sm:$0xff] %v6258_v30  ;;  %v2121_v16 = vshrl.u32 %v6258_v30, 16  ;;  %7829 = vst [vmem:[#allocation58_spill] sm:$0xff] %v6284_v60  ;;  %v6290_v31 = vrot.slane %v1201_v57, %v5952_v11  ;;  %v1091_v10 = vshrl.u32 %v6284_v60, 16  ;;  %v6378_v60 = vcombine.high %v6258_v30, %v5369_v4 }
 0x233   : > { %v6264_v49 = vrot.slane %v6250_v23, %v5952_v11  ;;  %v1929_v52 = vpack.i.b16 %v5369_v4, %v1928_v29  ;;  %v4828_v29 = vld [vmem:[%s5911_s6 + $0x40] sm:$0xff]  }
 0x234   : > { %7830 = vst [vmem:[#allocation59_spill] sm:$0xff] %v6290_v31  ;;  %4568 = vmatprep.subr.bf16.mxu0 %v4828_v29  ;;  %v1092_v58 = vpack.i.b16 %v5369_v4, %v1091_v10  ;;  %7842 = vst [vmem:[#allocation71_spill] sm:$0xff] %v6378_v60  ;;  %v2125_v30 = vshrl.u32 %v6378_v60, 16 }
 0x235   : > { %1737 = vrot.lane.b32.xlu0 %v4424_v48, %s5377_s4  ;;  %1739 = vrot.lane.b32.xlu1 %v4425_v56, %s5377_s4  ;;  %v2338_v48 = vshrl.u32 %v6237_v62, 16  ;;  %7827 = vst [vmem:[#allocation56_spill] sm:$0xff] %v6264_v49  ;;  %v2362_v56 = vshrl.u32 %v6241_v9, 16  ;;  %v2145_v59 = vshrl.u32 %v6264_v49, 16 }
 0x237   : > { %v2363_v28 = vpack.i.b16 %v5369_v4, %v2362_v56  ;;  %v2122_v56 = vpack.i.b16 %v5369_v4, %v2121_v16  ;;  %v2146_v57 = vpack.i.b16 %v5369_v4, %v2145_v59  ;;  %v6316_v59 = vcombine.high %v6290_v31, %v5369_v4 }
 0x239   : > { %1121 = vrot.lane.b32.xlu0 %v4390_v12, %s5377_s4  ;;  %1123 = vrot.lane.b32.xlu1 %v4391_v24, %s5377_s4  ;;  %v2339_v12 = vpack.i.b16 %v5369_v4, %v2338_v48  ;;  %v4435_v24 = vcombine.low %v1929_v52, %v1929_v52  ;;  %v6293_v48 = vrot.slane %v1235_v42, %v5952_v11  ;;  %v1275_v10 = vshrl.u32 %v6316_v59, 16 }
 0x23a   : > { %v6307_v42 = vcombine.high %v6197_v8, %v5369_v4  ;;  %v4446_v16 = vcombine.low %v2122_v56, %v2122_v56  ;;  %7834 = vst [vmem:[#allocation63_spill] sm:$0xff] %v6316_v59  ;;  %v4447_v29 = vcombine.low %v2146_v57, %v2146_v57  ;;  %v4833_v56 = vld [vmem:[%s5911_s6 + $0x10] sm:$0xff]  }
 0x23b   : > { %7831 = vst [vmem:[#allocation60_spill] sm:$0xff] %v6293_v48  ;;  %v4458_v52 = vcombine.low %v2339_v12, %v2339_v12  ;;  %v4831_v12 = vld [vmem:[%s5911_s6 + $0x8] sm:$0xff]  }
 0x23c   : > { %7833 = vst [vmem:[#allocation62_spill] sm:$0xff] %v6307_v42 }
 0x23d   : > { %1537 = vrot.lane.b32.xlu0 %v4414_v44, %s5377_s4  ;;  %1539 = vrot.lane.b32.xlu1 %v4415_v38, %s5377_s4  ;;  %v4829_v44 = vld [vmem:[%s5911_s6] sm:$0xff]   ;;  %v4830_v38 = vld [vmem:[%s5911_s6 + $0x48] sm:$0xff]  }
 0x23e   : > { %4569 = vmatpush3.bf16.msra.mxu0 %v4829_v44  ;;  %v1507_v44 = vshrl.u32 %v6307_v42, 16  ;;  %v4393_v42 = vcombine.low %v1092_v58, %v1092_v58  ;;  %v800_v58 = vcombine.high %v5964_v17, %v5369_v4  ;;  %v6362_v17 = vcombine.high %v6241_v9, %v5369_v4 }
 0x23f   : > { %4570 = vmatprep.subr.bf16.mxu0 %v4830_v38  ;;  %v6322_v38 = vcombine.high %v6293_v48, %v5369_v4 }
 0x240   : > { %7839 = vst [vmem:[#allocation68_spill] sm:$0xff] %v6362_v17 }
 0x241   : > { %1954 = vrot.lane.b32.xlu0 %v4434_v50, %s5377_s4  ;;  %1956 = vrot.lane.b32.xlu1 %v4435_v24, %s5377_s4  ;;  %v4459_v50 = vcombine.low %v2363_v28, %v2363_v28  ;;  %v1068_v24 = vpack.i.b16 %v5369_v4, %v1067_v1  ;;  %v1483_v28 = vshrl.u32 %v6301_v5, 16  ;;  %7835 = vst [vmem:[#allocation64_spill] sm:$0xff] %v6322_v38  ;;  %v4834_v1 = vld [vmem:[%s5911_s6 + $0x58] sm:$0xff]   ;;  %v1299_v5 = vshrl.u32 %v6322_v38, 16 }
 0x242   : > { %4571 = vmatpush3.bf16.msra.mxu0 %v4831_v12  ;;  %v1508_v12 = vpack.i.b16 %v5369_v4, %v1507_v44  ;;  %v1276_v44 = vpack.i.b16 %v5369_v4, %v1275_v10  ;;  %v4837_v10 = vld [vmem:[%s5911_s6 + $0x20] sm:$0xff]  }
 0x243   : > { %v1484_v57 = vpack.i.b16 %v5369_v4, %v1483_v28  ;;  %v766_v28 = vcombine.high %v5959_v14, %v5369_v4  ;;  %v6356_v14 = vcombine.high %v6237_v62, %v5369_v4 }
 0x244   : > { %v4417_v38 = vcombine.low %v1508_v12, %v1508_v12  ;;  %v4404_v12 = vcombine.low %v1276_v44, %v1276_v44  ;;  %v4838_v44 = vld [vmem:[%s5911_s6 + $0x68] sm:$0xff]  }
 0x245   : > { %2388 = vrot.lane.b32.xlu0 %v4458_v52, %s5377_s4  ;;  %2390 = vrot.lane.b32.xlu1 %v4459_v50, %s5377_s4  ;;  %v4832_v52 = vld [vmem:[%s5911_s6 + $0x50] sm:$0xff]   ;;  %v4392_v50 = vcombine.low %v1068_v24, %v1068_v24  ;;  %v4835_v24 = vld [vmem:[%s5911_s6 + $0x18] sm:$0xff]   ;;  %7838 = vst [vmem:[#allocation67_spill] sm:$0xff] %v6356_v14  ;;  %v2342_v59 = vshrl.u32 %v6356_v14, 16 }
 0x246   : > { %4572 = vmatprep.subr.bf16.mxu0 %v4832_v52  ;;  %v6351_v52 = vpop.permute.xlu1 %1823 }
 0x247   : > { %4573 = vmatpush3.bf16.msra.mxu0 %v4833_v56  ;;  %v1908_v56 = vshrl.u32 %v6333_v39, 16  ;;  %v6368_v39 = vrot.slane %v766_v28, %v5952_v11 }
 0x248   : > { %4574 = vmatprep.subr.bf16.mxu0 %v4834_v1 }
 0x249   : > { %2171 = vrot.lane.b32.xlu0 %v4446_v16, %s5377_s4  ;;  %2173 = vrot.lane.b32.xlu1 %v4447_v29, %s5377_s4  ;;  %v6341_v16 = vcombine.high %v6224_v47, %v5369_v4  ;;  %v4416_v29 = vcombine.low %v1484_v57, %v1484_v57  ;;  %v4836_v57 = vld [vmem:[%s5911_s6 + $0x60] sm:$0xff]   ;;  %7840 = vst [vmem:[#allocation69_spill] sm:$0xff] %v6368_v39  ;;  %v838_v47 = vshrl.u32 %v6368_v39, 16 }
 0x24b   : > { %7837 = vst [vmem:[#allocation66_spill] sm:$0xff] %v6341_v16  ;;  %v1932_v1 = vshrl.u32 %v6341_v16, 16  ;;  %4575 = vmatpush3.bf16.msra.mxu0 %v4835_v24  ;;  %v1909_v16 = vpack.i.b16 %v5369_v4, %v1908_v56  ;;  %v984_v24 = vpop.permute.xlu1 %983  ;;  %v4839_v56 = vld [vmem:[%s5911_s6 + $0x28] sm:$0xff]  }
 0x24c   : > { %4576 = vmatprep.subr.bf16.mxu0 %v4836_v57 }
 0x24d   : > { %1129 = vrot.lane.b32.xlu0 %v4392_v50, %s5377_s4  ;;  %1131 = vrot.lane.b32.xlu1 %v4393_v42, %s5377_s4  ;;  %v1300_v50 = vpack.i.b16 %v5369_v4, %v1299_v5  ;;  %v980_v42 = vpop.permute.xlu0 %979  ;;  %v6372_v5 = vrot.slane %v800_v58, %v5952_v11  ;;  %v1933_v28 = vpack.i.b16 %v5369_v4, %v1932_v1 }
 0x24e   : > { %v6384_v58 = vcombine.high %v6264_v49, %v5369_v4  ;;  %v6390_v14 = vrot.slane %v980_v42, %v5952_v11  ;;  %v6398_v1 = vrot.slane %v984_v24, %v5952_v11  ;;  %v2343_v42 = vpack.i.b16 %v5369_v4, %v2342_v59  ;;  %v4841_v24 = vld [vmem:[%s5911_s6 + $0x30] sm:$0xff]  }
 0x24f   : > { %7841 = vst [vmem:[#allocation70_spill] sm:$0xff] %v6372_v5  ;;  %4577 = vmatpush3.bf16.msra.mxu0 %v4837_v10  ;;  %v6402_v10 = vcombine.high %v6372_v5, %v5369_v4  ;;  %v4437_v49 = vcombine.low %v1933_v28, %v1933_v28 }
 0x250   : > { %7843 = vst [vmem:[#allocation72_spill] sm:$0xff] %v6384_v58  ;;  %7844 = vst [vmem:[#allocation73_spill] sm:$0xff] %v6390_v14  ;;  %4578 = vmatprep.subr.bf16.mxu0 %v4838_v44  ;;  %v6413_v44 = vcombine.high %v6390_v14, %v5369_v4  ;;  %v6419_v59 = vcombine.high %v6398_v1, %v5369_v4 }
 0x251   : > { %1545 = vrot.lane.b32.xlu0 %v4416_v29, %s5377_s4  ;;  %1547 = vrot.lane.b32.xlu1 %v4417_v38, %s5377_s4  ;;  %v4405_v29 = vcombine.low %v1300_v50, %v1300_v50  ;;  %v2366_v38 = vshrl.u32 %v6362_v17, 16  ;;  %v6394_v50 = vcombine.high %v6368_v39, %v5369_v4  ;;  %7846 = vst [vmem:[#allocation75_spill] sm:$0xff] %v6398_v1  ;;  %v1396_v57 = vpop.permute.xlu0 %1395  ;;  %7847 = vst [vmem:[#allocation76_spill] sm:$0xff] %v6402_v10 }
 0x252   : > { %v4436_v17 = vcombine.low %v1909_v16, %v1909_v16  ;;  %7848 = vst [vmem:[#allocation77_spill] sm:$0xff] %v6413_v44  ;;  %7849 = vst [vmem:[#allocation78_spill] sm:$0xff] %v6419_v59  ;;  %v866_v28 = vshrl.u32 %v6402_v10, 16  ;;  %v1075_v10 = vshrl.u32 %v6413_v44, 16 }
 0x253   : > { %7845 = vst [vmem:[#allocation74_spill] sm:$0xff] %v6394_v50  ;;  %v2367_v62 = vpack.i.b16 %v5369_v4, %v2366_v38  ;;  %4579 = vmatpush3.bf16.msra.mxu0 %v4839_v56  ;;  %v842_v16 = vshrl.u32 %v6394_v50, 16  ;;  %v1400_v38 = vpop.permute.xlu1 %1399  ;;  %v4460_v56 = vcombine.low %v2343_v42, %v2343_v42  ;;  %v4843_v50 = vld [vmem:[%s5911_s6 + $0x38] sm:$0xff]   ;;  %v1099_v42 = vshrl.u32 %v6419_v59, 16 }
 0x255   : > { %1337 = vrot.lane.b32.xlu0 %v4404_v12, %s5377_s4  ;;  %1339 = vrot.lane.b32.xlu1 %v4405_v29, %s5377_s4  ;;  %v4840_v12 = vld [vmem:[%s5911_s6 + $0x70] sm:$0xff]   ;;  %v2149_v29 = vshrl.u32 %v6384_v58, 16  ;;  %v2126_v58 = vpack.i.b16 %v5369_v4, %v2125_v30  ;;  %v1188_v9 = vpop.permute.xlu0 %1187  ;;  %v867_v30 = vpack.i.b16 %v5369_v4, %v866_v28 }
 0x256   : > { %4580 = vmatprep.subr.bf16.mxu0 %v4840_v12  ;;  %v843_v12 = vpack.i.b16 %v5369_v4, %v842_v16 }
 0x257   : > { %v2150_v60 = vpack.i.b16 %v5369_v4, %v2149_v29  ;;  %4581 = vmatpush3.bf16.msra.mxu0 %v4841_v24  ;;  %v1842_v29 = vcombine.high %v6187_v51, %v5369_v4  ;;  %v4448_v24 = vcombine.low %v2126_v58, %v2126_v58 }
 0x258   : > { %4582 = vmatprep.subr.bf16.mxu0 %v4842_v3  ;;  %v4381_v3 = vcombine.low %v867_v30, %v867_v30 }
 0x259   : > { %1962 = vrot.lane.b32.xlu0 %v4436_v17, %s5377_s4  ;;  %1964 = vrot.lane.b32.xlu1 %v4437_v49, %s5377_s4  ;;  %v4461_v17 = vcombine.low %v2367_v62, %v2367_v62  ;;  %v6428_v49 = vrot.slane %v1396_v57, %v5952_v11  ;;  %v6435_v62 = vrot.slane %v1400_v38, %v5952_v11 }
 0x25a   : > { %v1876_v57 = vcombine.high %v6191_v63, %v5369_v4  ;;  %v4449_v16 = vcombine.low %v2150_v60, %v2150_v60  ;;  %v4380_v38 = vcombine.low %v843_v12, %v843_v12  ;;  %v1100_v63 = vpack.i.b16 %v5369_v4, %v1099_v42  ;;  %v6454_v60 = vpop.permute.xlu0 %2253 }
 0x25b   : > { %7850 = vst [vmem:[#allocation79_spill] sm:$0xff] %v6428_v49  ;;  %7851 = vst [vmem:[#allocation80_spill] sm:$0xff] %v6435_v62  ;;  %4583 = vmatpush3.bf16.msra.mxu0 %v4843_v50  ;;  %v6445_v28 = vcombine.high %v6428_v49, %v5369_v4  ;;  %v6451_v51 = vcombine.high %v6435_v62, %v5369_v4  ;;  %v6457_v58 = vrot.slane %v1842_v29, %v5952_v11 }
 0x25c   : > { %v1271_v50 = vshrl.u32 %v6290_v31, 16  ;;  %v6461_v12 = vrot.slane %v1876_v57, %v5952_v11  ;;  %v4397_v42 = vcombine.low %v1100_v63, %v1100_v63 }
 0x25d   : > { %2396 = vrot.lane.b32.xlu0 %v4460_v56, %s5377_s4  ;;  %2398 = vrot.lane.b32.xlu1 %v4461_v17, %s5377_s4  ;;  %v1192_v56 = vpop.permute.xlu1 %1191  ;;  %7852 = vst [vmem:[#allocation81_spill] sm:$0xff] %v6445_v28  ;;  %v1076_v17 = vpack.i.b16 %v5369_v4, %v1075_v10  ;;  %7853 = vst [vmem:[#allocation82_spill] sm:$0xff] %v6451_v51  ;;  %v1295_v10 = vshrl.u32 %v6293_v48, 16  ;;  %v1515_v29 = vshrl.u32 %v6451_v51, 16 }
 0x25e   : > { %v1272_v59 = vpack.i.b16 %v5369_v4, %v1271_v50  ;;  %v6473_v57 = vcombine.high %v6457_v58, %v5369_v4  ;;  %v6476_v31 = vpop.permute.xlu0 %2036  ;;  %v1936_v8 = vshrl.u32 %v6461_v12, 16 }
 0x25f   : > { %v4396_v30 = vcombine.low %v1076_v17, %v1076_v17  ;;  %v1296_v48 = vpack.i.b16 %v5369_v4, %v1295_v10 }
 0x260   : > { %7854 = vst [vmem:[#allocation83_spill] sm:$0xff] %v6473_v57  ;;  %v4402_v63 = vcombine.low %v1272_v59, %v1272_v59  ;;  %v1916_v50 = vshrl.u32 %v6473_v57, 16  ;;  %v6497_v59 = vrot.slane %v1188_v9, %v5952_v11  ;;  %v1617_v9 = vcombine.high %v6099_v32, %v5369_v4 }
 0x261   : > { %2179 = vrot.lane.b32.xlu0 %v4448_v24, %s5377_s4  ;;  %2181 = vrot.lane.b32.xlu1 %v4449_v16, %s5377_s4  ;;  %v1491_v24 = vshrl.u32 %v6445_v28, 16  ;;  %v6467_v16 = vpop.permute.xlu1 %2257  ;;  %v4403_v51 = vcombine.low %v1296_v48, %v1296_v48 }
 0x262   : > { %v1917_v48 = vpack.i.b16 %v5369_v4, %v1916_v50  ;;  %v1071_v50 = vshrl.u32 %v6390_v14, 16 }
 0x263   : > { %v1492_v17 = vpack.i.b16 %v5369_v4, %v1491_v24  ;;  %v6493_v24 = vpop.permute.xlu0 %1603 }
 0x265   : > { %904 = vrot.lane.b32.xlu0 %v4380_v38, %s5377_s4  ;;  %906 = vrot.lane.b32.xlu1 %v4381_v3, %s5377_s4  ;;  %v6480_v38 = vcombine.high %v6461_v12, %v5369_v4  ;;  %v1516_v3 = vpack.i.b16 %v5369_v4, %v1515_v29  ;;  %v6487_v28 = vpop.permute.xlu1 %2040  ;;  %v4420_v44 = vcombine.low %v1492_v17, %v1492_v17 }
 0x266   : > { %7856 = vst [vmem:[#allocation85_spill] sm:$0xff] %v6487_v28  ;;  %v6501_v29 = vrot.slane %v1192_v56, %v5952_v11  ;;  %v839_v17 = vpack.i.b16 %v5369_v4, %v838_v47  ;;  %v6515_v56 = vcombine.high %v6497_v59, %v5369_v4  ;;  %v1095_v47 = vshrl.u32 %v6398_v1, 16 }
 0x267   : > { %7855 = vst [vmem:[#allocation84_spill] sm:$0xff] %v6480_v38  ;;  %v1940_v10 = vshrl.u32 %v6480_v38, 16  ;;  %v6524_v38 = vpop.permute.xlu0 %888 }
 0x268   : > { %7857 = vst [vmem:[#allocation86_spill] sm:$0xff] %v6515_v56  ;;  %v4378_v32 = vcombine.low %v839_v17, %v839_v17  ;;  %v1283_v1 = vshrl.u32 %v6515_v56, 16 }
 0x269   : > { %1145 = vrot.lane.b32.xlu0 %v4396_v30, %s5377_s4  ;;  %1147 = vrot.lane.b32.xlu1 %v4397_v42, %s5377_s4  ;;  %v4421_v30 = vcombine.low %v1516_v3, %v1516_v3  ;;  %v862_v42 = vshrl.u32 %v6372_v5, 16 }
 0x26b   : > { %v863_v3 = vpack.i.b16 %v5369_v4, %v862_v42  ;;  %v6542_v17 = vpop.permute.xlu0 %880 }
 0x26d   : > { %1329 = vrot.lane.b32.xlu0 %v4402_v63, %s5377_s4  ;;  %1331 = vrot.lane.b32.xlu1 %v4403_v51, %s5377_s4  ;;  %v1941_v63 = vpack.i.b16 %v5369_v4, %v1940_v10  ;;  %v6507_v51 = vpop.permute.xlu1 %1607  ;;  %v4440_v10 = vcombine.low %v1917_v48, %v1917_v48  ;;  %v4379_v14 = vcombine.low %v863_v3, %v863_v3  ;;  %v1487_v3 = vshrl.u32 %v6428_v49, 16 }
 0x26e   : > { %v6529_v48 = vrot.slane %v1617_v9, %v5952_v11 }
 0x26f   : > { %v4441_v42 = vcombine.low %v1941_v63, %v1941_v63  ;;  %v1096_v63 = vpack.i.b16 %v5369_v4, %v1095_v47 }
 0x271   : > { %1561 = vrot.lane.b32.xlu0 %v4420_v44, %s5377_s4  ;;  %1563 = vrot.lane.b32.xlu1 %v4421_v30, %s5377_s4  ;;  %v1651_v44 = vcombine.high %v6102_v33, %v5369_v4  ;;  %v6522_v30 = vcombine.high %v6501_v29, %v5369_v4  ;;  %v1072_v33 = vpack.i.b16 %v5369_v4, %v1071_v50  ;;  %v6536_v5 = vpop.permute.xlu1 %890 }
 0x272   : > { %v1284_v50 = vpack.i.b16 %v5369_v4, %v1283_v1  ;;  %v4395_v47 = vcombine.low %v1096_v63, %v1096_v63  ;;  %v6563_v1 = vrot.slane %v5996_v27, %v5952_v11  ;;  %v853_v27 = vpack.i.b16 %v5369_v4, %v5972_v19 }
 0x273   : > { %7858 = vst [vmem:[#allocation87_spill] sm:$0xff] %v6522_v30  ;;  %v6534_v57 = vrot.slane %v1651_v44, %v5952_v11  ;;  %v4394_v9 = vcombine.low %v1072_v33, %v1072_v33  ;;  %v6548_v44 = vcombine.high %v6529_v48, %v5369_v4  ;;  %v6567_v33 = vpack.i.b16 %v5369_v4, %v5968_v18 }
 0x274   : > { %v2310_v19 = vcombine.high %v6219_v43, %v5369_v4 }
 0x275   : > { %1978 = vrot.lane.b32.xlu0 %v4440_v10, %s5377_s4  ;;  %1980 = vrot.lane.b32.xlu1 %v4441_v42, %s5377_s4  ;;  %v1307_v10 = vshrl.u32 %v6522_v30, 16  ;;  %7859 = vst [vmem:[#allocation88_spill] sm:$0xff] %v6548_v44  ;;  %v1511_v42 = vshrl.u32 %v6435_v62, 16  ;;  %v883_v63 = vpop.permute.xlu1 %882  ;;  %v4408_v62 = vcombine.low %v1284_v50, %v1284_v50  ;;  %v1828_v50 = vrot.slane %v6351_v52, 4 }
 0x276   : > { %v931_v7 = vsel %vm924_vm3, %v853_v27, %v883_v63  ;;  %v1279_v27 = vshrl.u32 %v6497_v59, 16 }
 0x277   : > { %v1308_v30 = vpack.i.b16 %v5369_v4, %v1307_v10  ;;  %v1054_v10 = vpack.i.b16 %v5369_v4, %v6031_v41  ;;  %v1512_v39 = vpack.i.b16 %v5369_v4, %v1511_v42  ;;  %v1833_v63 = vsel %vm1829_vm0, %v6351_v52, %v1828_v50 }
 0x278   : > { %v2059_v52 = vcombine.high %v6245_v13, %v5369_v4  ;;  %v1494_v50 = vpack.i.b16 %v5369_v4, %v6057_v55  ;;  %v1286_v55 = vpack.i.b16 %v5369_v4, %v6075_v2  ;;  %v1711_v2 = vshrl.u32 %v6534_v57, 16 }
 0x279   : > { %896 = vrot.lane.b32.xlu0 %v4378_v32, %s5377_s4  ;;  %898 = vrot.lane.b32.xlu1 %v4379_v14, %s5377_s4  ;;  %v6554_v32 = vcombine.high %v6534_v57, %v5369_v4  ;;  %v6558_v14 = vrot.slane %v5993_v26, %v5952_v11  ;;  %v1488_v26 = vpack.i.b16 %v5369_v4, %v1487_v3 }
 0x27a   : > { %v4409_v56 = vcombine.low %v1308_v30, %v1308_v30  ;;  %v1826_v30 = vrot.slane %v6337_v15, 4 }
 0x27b   : > { %7860 = vst [vmem:[#allocation89_spill] sm:$0xff] %v6554_v32  ;;  %v1715_v18 = vshrl.u32 %v6554_v32, 16  ;;  %v6586_v3 = vcombine.high %v6558_v14, %v5369_v4  ;;  %v4419_v32 = vcombine.low %v1512_v39, %v1512_v39 }
 0x27c   : > { %v1831_v39 = vsel %vm1829_vm0, %v6337_v15, %v1826_v30  ;;  %v1303_v15 = vshrl.u32 %v6501_v29, 16  ;;  %v1937_v30 = vpack.i.b16 %v5369_v4, %v1936_v8  ;;  %v6643_v8 = vrot.slane %v1833_v63, %v5952_v11 }
 0x27d   : > { %1137 = vrot.lane.b32.xlu0 %v4394_v9, %s5377_s4  ;;  %1139 = vrot.lane.b32.xlu1 %v4395_v47, %s5377_s4  ;;  %v1691_v9 = vshrl.u32 %v6548_v44, 16  ;;  %v2276_v47 = vcombine.high %v6216_v6, %v5369_v4  ;;  %v6595_v6 = vcombine.high %v6563_v1, %v5369_v4  ;;  %v1716_v44 = vpack.i.b16 %v5369_v4, %v1715_v18 }
 0x27e   : > { %7864 = vst [vmem:[#allocation91_spill] sm:$0xff] %v6643_v8  ;;  %v1280_v63 = vpack.i.b16 %v5369_v4, %v1279_v27  ;;  %vm3581_vm0 = vcmask 1042434  }
 0x27f   : > { %v1106_v49 = vpop.permute.xlu0 %1105  ;;  %v1692_v42 = vpack.i.b16 %v5369_v4, %v1691_v9  ;;  %v874_v18 = vshrl.u32 %v6595_v6, 16 }
 0x280   : > { %v6581_v41 = vsel %vm924_vm3, %v1054_v10, %v1106_v49  ;;  %v1078_v49 = vpack.i.b16 %v5369_v4, %v6041_v46  ;;  %v1912_v10 = vshrl.u32 %v6457_v58, 16  ;;  %v850_v46 = vshrl.u32 %v6586_v3, 16 }
 0x281   : > { %1353 = vrot.lane.b32.xlu0 %v4408_v62, %s5377_s4  ;;  %1355 = vrot.lane.b32.xlu1 %v4409_v56, %s5377_s4  ;;  %v4418_v62 = vcombine.low %v1488_v26, %v1488_v26  ;;  %v6604_v56 = vrot.slane %v2276_v47, %v5952_v11  ;;  %v6611_v26 = vrot.slane %v2310_v19, %v5952_v11  ;;  %v4887_v47 = vld [vmem:[%s5919_s12 + $0x58] sm:$0xff]  }
 0x282   : > { %v4428_v19 = vcombine.low %v1692_v42, %v1692_v42  ;;  %v1470_v42 = vpack.i.b16 %v5369_v4, %v6053_v54  ;;  %v875_v13 = vpack.i.b16 %v5369_v4, %v874_v18  ;;  %v1687_v18 = vshrl.u32 %v6529_v48, 16 }
 0x283   : > { %v1108_v43 = vpop.permute.xlu1 %1107 }
 0x284   : > { %v1154_v28 = vsel %vm924_vm3, %v1078_v49, %v1108_v43  ;;  %v1913_v49 = vpack.i.b16 %v5369_v4, %v1912_v10  ;;  %v851_v10 = vpack.i.b16 %v5369_v4, %v850_v46  ;;  %v1262_v46 = vpack.i.b16 %v5369_v4, %v6071_v0 }
 0x285   : > { %1553 = vrot.lane.b32.xlu0 %v4418_v62, %s5377_s4  ;;  %v2480_v9 = vshll.u32 %v1154_v28, 16  ;;  %1555 = vrot.lane.b32.xlu1 %v4419_v32, %s5377_s4  ;;  %v4429_v32 = vcombine.low %v1716_v44, %v1716_v44  ;;  %v4385_v0 = vcombine.low %v875_v13, %v875_v13 }
 0x287   : > { %v2729_v28 = vsel %vm6622_vm6, %v931_v7, %v2480_v9  ;;  %v1524_v62 = vpop.permute.xlu1 %1523  ;;  %v6640_v7 = vrot.slane %v1831_v39, %v5952_v11  ;;  %v4438_v9 = vcombine.low %v1913_v49, %v1913_v49  ;;  %v4439_v39 = vcombine.low %v1937_v30, %v1937_v30 }
 0x288   : > { %v1522_v43 = vpop.permute.xlu0 %1521  ;;  %v1570_v54 = vsel %vm924_vm3, %v1494_v50, %v1524_v62  ;;  %v2468_v50 = vshll.u32 %v6581_v41, 16  ;;  %v2093_v49 = vcombine.high %v6250_v23, %v5369_v4  ;;  %v927_v41 = vsel %vm924_vm3, %v6567_v33, %v6542_v17 }
 0x289   : > { %1753 = vrot.lane.b32.xlu0 %v4428_v19, %s5377_s4  ;;  %7863 = vst [vmem:[#allocation90_spill] sm:$0xff] %v6640_v7  ;;  %1755 = vrot.lane.b32.xlu1 %v4429_v32, %s5377_s4  ;;  %v1567_v44 = vsel %vm924_vm3, %v1470_v42, %v1522_v43  ;;  %v1304_v19 = vpack.i.b16 %v5369_v4, %v1303_v15  ;;  %v2546_v62 = vshll.u32 %v1570_v54, 16 }
 0x28a   : > { %v4384_v32 = vcombine.low %v851_v10, %v851_v10  ;;  %v2528_v42 = vshll.u32 %v1567_v44, 16  ;;  %v6664_v27 = vcombine.high %v6640_v7, %v5369_v4  ;;  %v6668_v15 = vcombine.high %v6643_v8, %v5369_v4 }
 0x28b   : > { %v1316_v30 = vpop.permute.xlu1 %1315  ;;  %v6675_v10 = vrot.slane %v6507_v51, %v5952_v11  ;;  %v4407_v54 = vcombine.low %v1304_v19, %v1304_v19  ;;  %v1712_v33 = vpack.i.b16 %v5369_v4, %v1711_v2  ;;  %v2723_v51 = vsel %vm6622_vm6, %v927_v41, %v2468_v50 }
 0x28c   : > { %v1314_v43 = vpop.permute.xlu0 %1313  ;;  %v1362_v23 = vsel %vm924_vm3, %v1286_v55, %v1316_v30  ;;  %v2548_v55 = vrot.slane %v2546_v62, 7  ;;  %v2530_v30 = vrot.slane %v2528_v42, 7  ;;  %v1948_v62 = vshrl.u32 %v6668_v15, 16 }
 0x28d   : > { %1970 = vrot.lane.b32.xlu0 %v4438_v9, %s5377_s4  ;;  %1972 = vrot.lane.b32.xlu1 %v4439_v39, %s5377_s4  ;;  %v1359_v13 = vsel %vm924_vm3, %v1262_v46, %v1314_v43  ;;  %v2522_v44 = vrot.slane %v1362_v23, 7  ;;  %v4406_v39 = vcombine.low %v1280_v63, %v1280_v63  ;;  %v1688_v46 = vpack.i.b16 %v5369_v4, %v1687_v18 }
 0x28e   : > { %v2516_v9 = vrot.slane %v1359_v13, 7  ;;  %v6696_v43 = vcombine.high %v6604_v56, %v5369_v4  ;;  %v6705_v18 = vcombine.high %v6611_v26, %v5369_v4  ;;  %v6712_v42 = vrot.slane %v6493_v24, %v5952_v11 }
 0x28f   : > { %v2762_v19 = vsel %vm2720_vm4, %v2729_v28, %v2522_v44  ;;  %v6708_v28 = vrot.slane %v2059_v52, %v5952_v11  ;;  %v6718_v41 = vpack.i.b16 %v5369_v4, %v5982_v21  ;;  %v6722_v23 = vrot.slane %v2093_v49, %v5952_v11 }
 0x290   : > { %v2738_v63 = vsel %vm2720_vm4, %v2723_v51, %v2516_v9  ;;  %7867 = vst [vmem:[#allocation92_spill] sm:$0xff] %v6696_v43  ;;  %v2793_v2 = vsel %vm6682_vm9, %v2762_v19, %v2548_v55  ;;  %7868 = vst [vmem:[#allocation93_spill] sm:$0xff] %v6705_v18  ;;  %v2260_v52 = vrot.slane %v6454_v60, 4  ;;  %v6727_v13 = vcombine.high %v6675_v10, %v5369_v4  ;;  %v4844_v19 = vld [vmem:[%s5911_s6 + $0xc0] sm:$0xff]  }
 0x291   : > { %920 = vrot.lane.b32.xlu0 %v4384_v32, %s5377_s4  ;;  %922 = vrot.lane.b32.xlu1 %v4385_v0, %s5377_s4  ;;  %v1924_v32 = vshrl.u32 %v6664_v27, 16  ;;  %v2787_v50 = vsel %vm6682_vm9, %v2738_v63, %v2530_v30  ;;  %v833_v0 = vpack.i.b16 %v5369_v4, %v5978_v20  ;;  %7869 = vst [vmem:[#allocation94_spill] sm:$0xff] %v6722_v23  ;;  %v2350_v49 = vshrl.u32 %v6696_v43, 16  ;;  %v4845_v43 = vld [vmem:[%s5911_s6 + $0x80] sm:$0xff]  }
 0x292   : > { %v1678_v20 = vpack.i.b16 %v5369_v4, %v6112_v35  ;;  %v1702_v21 = vpack.i.b16 %v5369_v4, %v6116_v36  ;;  %v4426_v44 = vcombine.low %v1688_v46, %v1688_v46  ;;  %v4427_v55 = vcombine.low %v1712_v33, %v1712_v33  ;;  %4590 = vmatprep.subr.bf16.mxu1 %v4844_v19  ;;  %v4846_v19 = vld [vmem:[%s5911_s6 + $0xc8] sm:$0xff]  }
 0x293   : > { %v1925_v9 = vpack.i.b16 %v5369_v4, %v1924_v32  ;;  %v1949_v30 = vpack.i.b16 %v5369_v4, %v1948_v62  ;;  %v6742_v35 = vcombine.high %v6712_v42, %v5369_v4  ;;  %v846_v63 = vshrl.u32 %v6558_v14, 16  ;;  %4591 = vmatpush3.bf16.msra.mxu1 %v4845_v43  ;;  %v4847_v43 = vld [vmem:[%s5911_s6 + $0x88] sm:$0xff]  }
 0x294   : > { %v1723_v32 = vshrl.u32 %v6727_v13, 16  ;;  %4592 = vmatprep.subr.bf16.mxu1 %v4846_v19 }
 0x295   : > { %1345 = vrot.lane.b32.xlu0 %v4406_v39, %s5377_s4  ;;  %1347 = vrot.lane.b32.xlu1 %v4407_v54, %s5377_s4  ;;  %v2374_v54 = vshrl.u32 %v6705_v18, 16  ;;  %v4445_v18 = vcombine.low %v1949_v30, %v1949_v30  ;;  %v1082_v30 = vpack.i.b16 %v5369_v4, %v6106_v34 }
 0x297   : > { %v1730_v24 = vpop.permute.xlu0 %1729  ;;  %v1732_v39 = vpop.permute.xlu1 %1731  ;;  %4593 = vmatpush3.bf16.msra.mxu1 %v4847_v43 }
 0x298   : > { %v1775_v51 = vsel %vm924_vm3, %v1678_v20, %v1730_v24  ;;  %v1778_v36 = vsel %vm924_vm3, %v1702_v21, %v1732_v39  ;;  %v870_v20 = vshrl.u32 %v6563_v1, 16  ;;  %v4444_v39 = vcombine.low %v1925_v9, %v1925_v9 }
 0x299   : > { %v2588_v46 = vrot.slane %v1775_v51, 6  ;;  %1745 = vrot.lane.b32.xlu0 %v4426_v44, %s5377_s4  ;;  %v2594_v62 = vrot.slane %v1778_v36, 6  ;;  %1747 = vrot.lane.b32.xlu1 %v4427_v55, %s5377_s4  ;;  %v2351_v51 = vpack.i.b16 %v5369_v4, %v2350_v49  ;;  %v2375_v55 = vpack.i.b16 %v5369_v4, %v2374_v54  ;;  %v4848_v49 = vld [vmem:[%s5911_s6 + $0xd0] sm:$0xff]  }
 0x29a   : > { %v6765_v24 = vsel %vm2263_vm1, %v6454_v60, %v2260_v52  ;;  %v1058_v9 = vpack.i.b16 %v5369_v4, %v6096_v25  ;;  %v1474_v60 = vpack.i.b16 %v5369_v4, %v6120_v37  ;;  %v871_v52 = vpack.i.b16 %v5369_v4, %v870_v20  ;;  %4594 = vmatprep.subr.bf16.mxu1 %v4848_v49 }
 0x29b   : > { %v6753_v21 = vsel %vm2784_vm7, %v2787_v50, %v2588_v46  ;;  %v1114_v44 = vpop.permute.xlu0 %1113  ;;  %v6758_v33 = vsel %vm2784_vm7, %v2793_v2, %v2594_v62  ;;  %v1116_v36 = vpop.permute.xlu1 %1115  ;;  %v1699_v50 = vshrl.u32 %v6742_v35, 16  ;;  %v847_v2 = vpack.i.b16 %v5369_v4, %v846_v63 }
 0x29c   : > { %v935_v25 = vsel %vm924_vm3, %v833_v0, %v6524_v38  ;;  %v1157_v54 = vsel %vm924_vm3, %v1058_v9, %v1114_v44  ;;  %v1498_v46 = vpack.i.b16 %v5369_v4, %v6126_v45  ;;  %v4464_v34 = vcombine.low %v2351_v51, %v2351_v51 }
 0x29d   : > { %1994 = vrot.lane.b32.xlu0 %v4444_v39, %s5377_s4  ;;  %1996 = vrot.lane.b32.xlu1 %v4445_v18, %s5377_s4  ;;  %v1160_v18 = vsel %vm924_vm3, %v1082_v30, %v1116_v36  ;;  %v4465_v37 = vcombine.low %v2375_v55, %v2375_v55  ;;  %v1724_v20 = vpack.i.b16 %v5369_v4, %v1723_v32  ;;  %v2470_v51 = vshll.u32 %v1157_v54, 16 }
 0x29e   : > { %v939_v38 = vsel %vm924_vm3, %v6718_v41, %v6536_v5  ;;  %v1266_v45 = vpack.i.b16 %v5369_v4, %v6134_v53  ;;  %v4382_v0 = vcombine.low %v847_v2, %v847_v2  ;;  %v1700_v44 = vpack.i.b16 %v5369_v4, %v1699_v50 }
 0x29f   : > { %v1530_v63 = vpop.permute.xlu0 %1529  ;;  %v1532_v62 = vpop.permute.xlu1 %1531  ;;  %v4383_v32 = vcombine.low %v871_v52, %v871_v52  ;;  %v2482_v19 = vshll.u32 %v1160_v18, 16  ;;  %v1290_v5 = vpack.i.b16 %v5369_v4, %v6140_v61  ;;  %v1706_v53 = vpack.i.b16 %v5369_v4, %v6160_v40  ;;  %v4849_v52 = vld [vmem:[%s5911_s6 + $0x90] sm:$0xff]   ;;  %v4850_v40 = vld [vmem:[%s5911_s6 + $0xd8] sm:$0xff]  }
 0x2a0   : > { %v1573_v39 = vsel %vm924_vm3, %v1474_v60, %v1530_v63  ;;  %v1576_v36 = vsel %vm924_vm3, %v1498_v46, %v1532_v62  ;;  %v6804_v50 = vcombine.high %v6708_v28, %v5369_v4  ;;  %v1682_v30 = vpack.i.b16 %v5369_v4, %v6154_v22  ;;  %4595 = vmatpush3.bf16.msra.mxu1 %v4849_v52 }
 0x2a1   : > { %2412 = vrot.lane.b32.xlu0 %v4464_v34, %s5377_s4  ;;  %v2531_v55 = vshll.u32 %v1573_v39, 16  ;;  %2414 = vrot.lane.b32.xlu1 %v4465_v37, %s5377_s4  ;;  %v4433_v60 = vcombine.low %v1724_v20, %v1724_v20  ;;  %v6811_v61 = vcombine.high %v6722_v23, %v5369_v4  ;;  %v2549_v54 = vshll.u32 %v1576_v36, 16  ;;  %v4851_v37 = vld [vmem:[%s5911_s6 + $0x98] sm:$0xff]   ;;  %v4853_v20 = vld [vmem:[%s5911_s6 + $0x140] sm:$0xff]  }
 0x2a2   : > { %v4432_v49 = vcombine.low %v1700_v44, %v1700_v44  ;;  %v2724_v22 = vsel %vm6622_vm6, %v935_v25, %v2470_v51  ;;  %v7870_v62 = vshrl.u32 %v6640_v7, 16  ;;  %v2730_v43 = vsel %vm6622_vm6, %v939_v38, %v2482_v19  ;;  %4596 = vmatprep.subr.bf16.mxu1 %v4850_v40  ;;  %v4852_v36 = vld [vmem:[%s5911_s6 + $0xe0] sm:$0xff]   ;;  %4612 = vmatprep.subr.bf16.mxu0 %v4853_v20 }
 0x2a3   : > { %v1322_v41 = vpop.permute.xlu0 %1321  ;;  %v1324_v9 = vpop.permute.xlu1 %1323  ;;  %v2533_v34 = vrot.slane %v2531_v55, 7  ;;  %v7871_v44 = vshrl.u32 %v6643_v8, 16  ;;  %v2133_v51 = vshrl.u32 %v6804_v50, 16  ;;  %v2157_v38 = vshrl.u32 %v6811_v61, 16  ;;  %v4854_v20 = vld [vmem:[%s5911_s6 + $0xa0] sm:$0xff]  }
 0x2a4   : > { %v1365_v2 = vsel %vm924_vm3, %v1266_v45, %v1322_v41  ;;  %v1368_v46 = vsel %vm924_vm3, %v1290_v5, %v1324_v9  ;;  %v1921_v39 = vpack.i.b16 %v5369_v4, %v7870_v62  ;;  %v6840_v19 = vrot.slane %v6765_v24, %v5952_v11  ;;  %4597 = vmatpush3.bf16.msra.mxu1 %v4851_v37 }
 0x2a5   : > { %v2517_v63 = vrot.slane %v1365_v2, 7  ;;  %912 = vrot.lane.b32.xlu0 %v4382_v0, %s5377_s4  ;;  %v2523_v18 = vrot.slane %v1368_v46, 7  ;;  %914 = vrot.lane.b32.xlu1 %v4383_v32, %s5377_s4  ;;  %v1945_v25 = vpack.i.b16 %v5369_v4, %v7871_v44  ;;  %v2551_v9 = vrot.slane %v2549_v54, 7  ;;  %v7874_v46 = vld [vmem:[#allocation85_spill] sm:$0xff] }
 0x2a6   : > { %7872 = vst [vmem:[#allocation95_spill] sm:$0xff] %v6840_v19  ;;  %v7873_v40 = vrot.slane %v6476_v31, 4  ;;  %v4442_v24 = vcombine.low %v1921_v39, %v1921_v39  ;;  %4598 = vmatprep.subr.bf16.mxu1 %v4852_v36  ;;  %v2158_v39 = vpack.i.b16 %v5369_v4, %v2157_v38  ;;  %v2370_v37 = vshrl.u32 %v6611_v26, 16 }
 0x2a7   : > { %v2742_v45 = vsel %vm2720_vm4, %v2724_v22, %v2517_v63  ;;  %v1738_v0 = vpop.permute.xlu0 %1737  ;;  %v2766_v55 = vsel %vm2720_vm4, %v2730_v43, %v2523_v18  ;;  %v1740_v32 = vpop.permute.xlu1 %1739  ;;  %v2045_v63 = vrot.slane %v7874_v46, 4  ;;  %v4856_v43 = vld [vmem:[%s5911_s6 + $0xe8] sm:$0xff]   ;;  %v1719_v36 = vshrl.u32 %v6675_v10, 16 }
 0x2a8   : > { %v1781_v5 = vsel %vm924_vm3, %v1682_v30, %v1738_v0  ;;  %v2788_v41 = vsel %vm6682_vm9, %v2742_v45, %v2533_v34  ;;  %v1784_v2 = vsel %vm924_vm3, %v1706_v53, %v1740_v32  ;;  %v2048_v30 = vsel %vm2046_vm2, %v6476_v31, %v7873_v40  ;;  %4599 = vmatpush3.bf16.msra.mxu1 %v4854_v20  ;;  %v4860_v20 = vld [vmem:[%s5911_s6 + $0xf0] sm:$0xff]  }
 0x2a9   : > { %v2589_v52 = vrot.slane %v1781_v5, 6  ;;  %1769 = vrot.lane.b32.xlu0 %v4432_v49, %s5377_s4  ;;  %v2595_v22 = vrot.slane %v1784_v2, 6  ;;  %1771 = vrot.lane.b32.xlu1 %v4433_v60, %s5377_s4  ;;  %v2794_v53 = vsel %vm6682_vm9, %v2766_v55, %v2551_v9  ;;  %v2134_v34 = vpack.i.b16 %v5369_v4, %v2133_v51  ;;  %v7877_v55 = vld [vmem:[#allocation49_spill] sm:$0xff] }
 0x2aa   : > { %v2346_v31 = vshrl.u32 %v6604_v56, 16  ;;  %v4443_v60 = vcombine.low %v1945_v25, %v1945_v25  ;;  %v6869_v45 = vrot.slane %v2048_v30, %v5952_v11  ;;  %v7876_v0 = vrot.slane %v6467_v16, 4  ;;  %4600 = vmatprep.subr.bf16.mxu1 %v4856_v43 }
 0x2ab   : > { %v6853_v54 = vsel %vm2784_vm7, %v2788_v41, %v2589_v52  ;;  %v6855_v49 = vpop.permute.xlu0 %1121  ;;  %v6860_v18 = vsel %vm2784_vm7, %v2794_v53, %v2595_v22  ;;  %v6862_v62 = vpop.permute.xlu1 %1123  ;;  %v1695_v51 = vshrl.u32 %v6712_v42, 16  ;;  %v2050_v25 = vsel %vm2046_vm2, %v7874_v46, %v2045_v63  ;;  %v4858_v22 = vld [vmem:[%s5911_s6 + $0xa8] sm:$0xff]  }
 0x2ac   : > { %7875 = vst [vmem:[#allocation85_spill] sm:$0xff] %v6869_v45  ;;  %v2267_v44 = vsel %vm2263_vm1, %v6467_v16, %v7876_v0  ;;  %v1478_v32 = vpack.i.b16 %v5369_v4, %v7877_v55  ;;  %v6885_v5 = vcombine.high %v6840_v19, %v5369_v4  ;;  %v7878_v16 = vld [vmem:[#allocation50_spill] sm:$0xff]  ;;  %v4452_v9 = vcombine.low %v2134_v34, %v2134_v34 }
 0x2ad   : > { %1986 = vrot.lane.b32.xlu0 %v4442_v24, %s5377_s4  ;;  %1988 = vrot.lane.b32.xlu1 %v4443_v60, %s5377_s4  ;;  %v1502_v41 = vpack.i.b16 %v5369_v4, %v7878_v16  ;;  %v2347_v2 = vpack.i.b16 %v5369_v4, %v2346_v31  ;;  %v6891_v52 = vrot.slane %v2267_v44, %v5952_v11  ;;  %v7881_v31 = vld [vmem:[#allocation52_spill] sm:$0xff]  ;;  %v2129_v55 = vshrl.u32 %v6708_v28, 16 }
 0x2ae   : > { %v4453_v46 = vcombine.low %v2158_v39, %v2158_v39  ;;  %v2371_v63 = vpack.i.b16 %v5369_v4, %v2370_v37  ;;  %v6900_v24 = vcombine.high %v6869_v45, %v5369_v4  ;;  %v6903_v53 = vrot.slane %v2050_v25, %v5952_v11  ;;  %v7882_v39 = vld [vmem:[#allocation51_spill] sm:$0xff]  ;;  %4601 = vmatpush3.bf16.msra.mxu1 %v4858_v22 }
 0x2af   : > { %v1538_v38 = vpop.permute.xlu0 %1537  ;;  %7879 = vst [vmem:[#allocation49_spill] sm:$0xff] %v6891_v52  ;;  %v1540_v40 = vpop.permute.xlu1 %1539  ;;  %v1927_v60 = vpack.i.b16 %v5369_v4, %v7881_v31  ;;  %v1903_v37 = vpack.i.b16 %v5369_v4, %v7882_v39  ;;  %v1720_v43 = vpack.i.b16 %v5369_v4, %v1719_v36  ;;  %v1696_v0 = vpack.i.b16 %v5369_v4, %v1695_v51  ;;  %v4862_v51 = vld [vmem:[%s5911_s6 + $0xb0] sm:$0xff]   ;;  %v4864_v31 = vld [vmem:[%s5911_s6 + $0xf8] sm:$0xff]   ;;  %v7887_v39 = vld [vmem:[#allocation53_spill] sm:$0xff] }
 0x2b0   : > { %v6894_v30 = vsel %vm924_vm3, %v1478_v32, %v1538_v38  ;;  %7880 = vst [vmem:[#allocation50_spill] sm:$0xff] %v6903_v53  ;;  %v6906_v34 = vsel %vm924_vm3, %v1502_v41, %v1540_v40  ;;  %v4462_v25 = vcombine.low %v2347_v2, %v2347_v2  ;;  %4602 = vmatprep.subr.bf16.mxu1 %v4860_v20  ;;  %v2153_v36 = vshrl.u32 %v6722_v23, 16 }
 0x2b1   : > { %2195 = vrot.lane.b32.xlu0 %v4452_v9, %s5377_s4  ;;  %2197 = vrot.lane.b32.xlu1 %v4453_v46, %s5377_s4  ;;  %v6920_v32 = vcombine.high %v6891_v52, %v5369_v4  ;;  %v4463_v38 = vcombine.low %v2371_v63, %v2371_v63  ;;  %v6927_v9 = vcombine.high %v6903_v53, %v5369_v4  ;;  %v7884_v46 = vld [vmem:[#allocation54_spill] sm:$0xff]  ;;  %v2358_v8 = vshrl.u32 %v6885_v5, 16 }
 0x2b2   : > { %v2361_v22 = vpack.i.b16 %v5369_v4, %v7884_v46  ;;  %4603 = vmatpush3.bf16.msra.mxu1 %v4862_v51  ;;  %v2130_v11 = vpack.i.b16 %v5369_v4, %v2129_v55  ;;  %v2154_v23 = vpack.i.b16 %v5369_v4, %v2153_v36  ;;  %v7889_v55 = vld [vmem:[#allocation55_spill] sm:$0xff]  ;;  %v2132_v17 = vpack.i.b16 %v5369_v4, %v6804_v50 }
 0x2b3   : > { %v1955_v44 = vpop.permute.xlu0 %1954  ;;  %v1957_v16 = vpop.permute.xlu1 %1956  ;;  %7883 = vst [vmem:[#allocation52_spill] sm:$0xff] %v6927_v9  ;;  %4604 = vmatprep.subr.bf16.mxu1 %v4864_v31  ;;  %v2120_v31 = vpack.i.b16 %v5369_v4, %v7889_v55  ;;  %vm3584_vm1 = vcmask 1043459  }
 0x2b4   : > { %v2000_v41 = vsel %vm924_vm3, %v1903_v37, %v1955_v44  ;;  %v2003_v2 = vsel %vm924_vm3, %v1927_v60, %v1957_v16  ;;  %v2337_v60 = vpack.i.b16 %v5369_v4, %v7887_v39  ;;  %v4431_v37 = vcombine.low %v1720_v43, %v1720_v43 }
 0x2b5   : > { %v2600_v40 = vshll.u32 %v2000_v41, 16  ;;  %2404 = vrot.lane.b32.xlu0 %v4462_v25, %s5377_s4  ;;  %v2618_v20 = vshll.u32 %v2003_v2, 16  ;;  %2406 = vrot.lane.b32.xlu1 %v4463_v38, %s5377_s4  ;;  %v4430_v44 = vcombine.low %v1696_v0, %v1696_v0  ;;  %v7888_v41 = vld [vmem:[#allocation56_spill] sm:$0xff]  ;;  %v2382_v43 = vshrl.u32 %v6920_v32, 16  ;;  %v4866_v0 = vld [vmem:[%s5911_s6 + $0xb8] sm:$0xff]  }
 0x2b6   : > { %v2144_v46 = vpack.i.b16 %v5369_v4, %v7888_v41  ;;  %4605 = vmatpush3.bf16.msra.mxu1 %v4866_v0  ;;  %v4451_v41 = vcombine.low %v2154_v23, %v2154_v23 }
 0x2b7   : > { %v2602_v25 = vrot.slane %v2600_v40, 6  ;;  %v2389_v16 = vpop.permute.xlu0 %2388  ;;  %v2620_v2 = vrot.slane %v2618_v20, 6  ;;  %v2391_v7 = vpop.permute.xlu1 %2390  ;;  %v2165_v20 = vshrl.u32 %v6927_v9, 16  ;;  %3764 = vmatprep.subr.bf16.mxu1 %v5369_v4 }
 0x2b8   : > { %v2434_v38 = vsel %vm924_vm3, %v2337_v60, %v2389_v16  ;;  %v2437_v40 = vsel %vm924_vm3, %v2361_v22, %v2391_v7  ;;  %v4450_v7 = vcombine.low %v2130_v11, %v2130_v11  ;;  %v2359_v22 = vpack.i.b16 %v5369_v4, %v2358_v8  ;;  %v7890_v11 = vld [vmem:[#allocation58_spill] sm:$0xff] }
 0x2b9   : > { %v2851_v51 = vsel %vm6936_vm12, %v6753_v21, %v2602_v25  ;;  %1761 = vrot.lane.b32.xlu0 %v4430_v44, %s5377_s4  ;;  %v2857_v36 = vsel %vm6936_vm12, %v6758_v33, %v2620_v2  ;;  %v2672_v39 = vshll.u32 %v2434_v38, 16  ;;  %1763 = vrot.lane.b32.xlu1 %v4431_v37, %s5377_s4  ;;  %v2690_v21 = vshll.u32 %v2437_v40, 16  ;;  %v4878_v40 = vld [vmem:[%s5919_s12 + $0x10] sm:$0xff]  }
 0x2ba   : > { %v2141_v44 = vshrl.u32 %v6900_v24, 16  ;;  %v2354_v25 = vshrl.u32 %v6840_v19, 16  ;;  %v2383_v37 = vpack.i.b16 %v5369_v4, %v2382_v43  ;;  %v2378_v2 = vshrl.u32 %v6891_v52, 16  ;;  %v7893_v43 = vld [vmem:[#allocation57_spill] sm:$0xff] }
 0x2bb   : > { %v2172_v60 = vpop.permute.xlu0 %2171  ;;  %v2174_v16 = vpop.permute.xlu1 %2173  ;;  %v1090_v8 = vpack.i.b16 %v5369_v4, %v7890_v11  ;;  %v2674_v55 = vrot.slane %v2672_v39, 5 }
 0x2bc   : > { %v2217_v33 = vsel %vm924_vm3, %v2120_v31, %v2172_v60  ;;  %v2220_v38 = vsel %vm924_vm3, %v2144_v46, %v2174_v16  ;;  %v1066_v31 = vpack.i.b16 %v5369_v4, %v7893_v43  ;;  %v2166_v46 = vpack.i.b16 %v5369_v4, %v2165_v20  ;;  %v7894_v20 = vld [vmem:[#allocation61_spill] sm:$0xff] }
 0x2bd   : > { %v2660_v0 = vrot.slane %v2217_v33, 5  ;;  %2187 = vrot.lane.b32.xlu0 %v4450_v7, %s5377_s4  ;;  %v2666_v23 = vrot.slane %v2220_v38, 5  ;;  %2189 = vrot.lane.b32.xlu1 %v4451_v41, %s5377_s4  ;;  %v2692_v60 = vrot.slane %v2690_v21, 5  ;;  %v4468_v33 = vcombine.low %v2359_v22, %v2359_v22 }
 0x2be   : > { %v2142_v11 = vpack.i.b16 %v5369_v4, %v2141_v44  ;;  %v4469_v38 = vcombine.low %v2383_v37, %v2383_v37  ;;  %v2137_v22 = vshrl.u32 %v6869_v45, 16  ;;  %v7895_v44 = vld [vmem:[#allocation62_spill] sm:$0xff] }
 0x2bf   : > { %v2866_v7 = vsel %vm2848_vm10, %v2851_v51, %v2660_v0  ;;  %v1130_v16 = vpop.permute.xlu0 %1129  ;;  %v2890_v52 = vsel %vm2848_vm10, %v2857_v36, %v2666_v23  ;;  %v1132_v19 = vpop.permute.xlu1 %1131  ;;  %v1482_v36 = vpack.i.b16 %v5369_v4, %v7894_v20  ;;  %v1506_v37 = vpack.i.b16 %v5369_v4, %v7895_v44 }
 0x2c0   : > { %v6988_v39 = vsel %vm924_vm3, %v1066_v31, %v1130_v16  ;;  %v2915_v41 = vsel %vm6976_vm15, %v2866_v7, %v2674_v55  ;;  %v6993_v43 = vsel %vm924_vm3, %v1090_v8, %v1132_v19  ;;  %v2921_v51 = vsel %vm6976_vm15, %v2890_v52, %v2692_v60  ;;  %v7896_v16 = vld [vmem:[#allocation63_spill] sm:$0xff] }
 0x2c1   : > { %2428 = vrot.lane.b32.xlu0 %v4468_v33, %s5377_s4  ;;  %2430 = vrot.lane.b32.xlu1 %v4469_v38, %s5377_s4  ;;  %v7001_v21 = vcombine.low %v2915_v41, %v2921_v51  ;;  %v4456_v19 = vcombine.low %v2142_v11, %v2142_v11  ;;  %v2355_v8 = vpack.i.b16 %v5369_v4, %v2354_v25  ;;  %v2161_v55 = vshrl.u32 %v6903_v53, 16  ;;  %v7897_v11 = vld [vmem:[#allocation64_spill] sm:$0xff] }
 0x2c2   : > { %v4457_v31 = vcombine.low %v2166_v46, %v2166_v46  ;;  %v2379_v60 = vpack.i.b16 %v5369_v4, %v2378_v2  ;;  %v1274_v33 = vpack.i.b16 %v5369_v4, %v7896_v16  ;;  %v1298_v25 = vpack.i.b16 %v5369_v4, %v7897_v11 }
 0x2c3   : > { %v1546_v0 = vpop.permute.xlu0 %1545  ;;  %v1548_v23 = vpop.permute.xlu1 %1547  ;;  %v4466_v41 = vcombine.low %v2355_v8, %v2355_v8  ;;  %v2138_v51 = vpack.i.b16 %v5369_v4, %v2137_v22 }
 0x2c4   : > { %v1585_v52 = vsel %vm924_vm3, %v1482_v36, %v1546_v0  ;;  %v7011_v7 = vsel %vm924_vm3, %v1506_v37, %v1548_v23  ;;  %v4467_v20 = vcombine.low %v2379_v60, %v2379_v60  ;;  %v2162_v36 = vpack.i.b16 %v5369_v4, %v2161_v55  ;;  %v7898_v37 = vld [vmem:[#allocation65_spill] sm:$0xff] }
 0x2c5   : > { %2211 = vrot.lane.b32.xlu0 %v4456_v19, %s5377_s4  ;;  %2213 = vrot.lane.b32.xlu1 %v4457_v31, %s5377_s4  ;;  %v1907_v0 = vpack.i.b16 %v5369_v4, %v7898_v37  ;;  %v7899_v19 = vld [vmem:[#allocation66_spill] sm:$0xff]  ;;  %v4454_v23 = vcombine.low %v2138_v51, %v2138_v51 }
 0x2c6   : > { %v1931_v22 = vpack.i.b16 %v5369_v4, %v7899_v19  ;;  %v4455_v16 = vcombine.low %v2162_v36, %v2162_v36 }
 0x2c7   : > { %v1338_v38 = vpop.permute.xlu0 %1337  ;;  %v1340_v46 = vpop.permute.xlu1 %1339 }
 0x2c8   : > { %v7021_v2 = vsel %vm924_vm3, %v1274_v33, %v1338_v38  ;;  %v7025_v44 = vsel %vm924_vm3, %v1298_v25, %v1340_v46  ;;  %v7900_v25 = vld [vmem:[#allocation67_spill] sm:$0xff]  ;;  %v7901_v46 = vld [vmem:[#allocation68_spill] sm:$0xff] }
 0x2c9   : > { %2420 = vrot.lane.b32.xlu0 %v4466_v41, %s5377_s4  ;;  %2422 = vrot.lane.b32.xlu1 %v4467_v20, %s5377_s4  ;;  %v2341_v38 = vpack.i.b16 %v5369_v4, %v7900_v25  ;;  %v2365_v20 = vpack.i.b16 %v5369_v4, %v7901_v46 }
 0x2cb   : > { %v1963_v8 = vpop.permute.xlu0 %1962  ;;  %v1965_v31 = vpop.permute.xlu1 %1964 }
 0x2cc   : > { %v2006_v60 = vsel %vm924_vm3, %v1907_v0, %v1963_v8  ;;  %v2009_v55 = vsel %vm924_vm3, %v1931_v22, %v1965_v31 }
 0x2cd   : > { %v2603_v33 = vshll.u32 %v2006_v60, 16  ;;  %2203 = vrot.lane.b32.xlu0 %v4454_v23, %s5377_s4  ;;  %v2621_v11 = vshll.u32 %v2009_v55, 16  ;;  %2205 = vrot.lane.b32.xlu1 %v4455_v16, %s5377_s4  ;;  %v7902_v23 = vld [vmem:[#allocation71_spill] sm:$0xff]  ;;  %v2537_v16 = vshll.u32 %v1585_v52, 16  ;;  %v2474_v52 = vshll.u32 %v6988_v39, 16 }
 0x2ce   : > { %v2124_v31 = vpack.i.b16 %v5369_v4, %v7902_v23  ;;  %v7906_v23 = vld [vmem:[#allocation77_spill] sm:$0xff] }
 0x2cf   : > { %v2605_v41 = vrot.slane %v2603_v33, 6  ;;  %v2397_v51 = vpop.permute.xlu0 %2396  ;;  %v2623_v37 = vrot.slane %v2621_v11, 6  ;;  %v2399_v19 = vpop.permute.xlu1 %2398  ;;  %v7903_v33 = vld [vmem:[#allocation72_spill] sm:$0xff] }
 0x2d0   : > { %v2440_v36 = vsel %vm924_vm3, %v2341_v38, %v2397_v51  ;;  %v2443_v0 = vsel %vm924_vm3, %v2365_v20, %v2399_v19  ;;  %v2148_v11 = vpack.i.b16 %v5369_v4, %v7903_v33  ;;  %v7904_v20 = vld [vmem:[#allocation74_spill] sm:$0xff]  ;;  %v7905_v19 = vld [vmem:[#allocation76_spill] sm:$0xff] }
 0x2d1   : > { %v2852_v22 = vsel %vm6936_vm12, %v6853_v54, %v2605_v41  ;;  %v2675_v8 = vshll.u32 %v2440_v36, 16  ;;  %v2858_v60 = vsel %vm6936_vm12, %v6860_v18, %v2623_v37  ;;  %v2693_v55 = vshll.u32 %v2443_v0, 16 }
 0x2d2   : > { %v841_v54 = vpack.i.b16 %v5369_v4, %v7904_v20  ;;  %v865_v36 = vpack.i.b16 %v5369_v4, %v7905_v19  ;;  %v1074_v18 = vpack.i.b16 %v5369_v4, %v7906_v23  ;;  %v2555_v37 = vshll.u32 %v7011_v7, 16 }
 0x2d3   : > { %v2180_v25 = vpop.permute.xlu0 %2179  ;;  %v2182_v38 = vpop.permute.xlu1 %2181  ;;  %v2677_v0 = vrot.slane %v2675_v8, 5  ;;  %v2695_v20 = vrot.slane %v2693_v55, 5 }
 0x2d4   : > { %v2223_v46 = vsel %vm924_vm3, %v2124_v31, %v2180_v25  ;;  %v2226_v41 = vsel %vm924_vm3, %v2148_v11, %v2182_v38  ;;  %v2486_v31 = vshll.u32 %v6993_v43, 16  ;;  %v7064_v25 = vrot.slane %v2537_v16, 7 }
 0x2d5   : > { %v2661_v51 = vrot.slane %v2223_v46, 5  ;;  %v2667_v33 = vrot.slane %v2226_v41, 5  ;;  %v2519_v46 = vrot.slane %v7021_v2, 7  ;;  %v2525_v43 = vrot.slane %v7025_v44, 7  ;;  %v4855_v41 = vld [vmem:[%s5911_s6 + $0x100] sm:$0xff]  }
 0x2d6   : > { %v7078_v2 = vrot.slane %v2555_v37, 7 }
 0x2d7   : > { %v905_v11 = vpop.permute.xlu0 %904  ;;  %v2870_v38 = vsel %vm2848_vm10, %v2852_v22, %v2661_v51  ;;  %v907_v19 = vpop.permute.xlu1 %906  ;;  %v2894_v39 = vsel %vm2848_vm10, %v2858_v60, %v2667_v33  ;;  %v2552_v51 = vshll.u32 %v6906_v34, 16 }
 0x2d8   : > { %v951_v23 = vsel %vm924_vm3, %v841_v54, %v905_v11  ;;  %v2916_v7 = vsel %vm6976_vm15, %v2870_v38, %v2677_v0  ;;  %v955_v8 = vsel %vm924_vm3, %v865_v36, %v907_v19  ;;  %v2922_v22 = vsel %vm6976_vm15, %v2894_v39, %v2695_v20  ;;  %v7907_v36 = vld [vmem:[#allocation78_spill] sm:$0xff]  ;;  %v4857_v0 = vld [vmem:[%s5911_s6 + $0x148] sm:$0xff]  }
 0x2d9   : > { %v2726_v16 = vsel %vm6622_vm6, %v951_v23, %v2474_v52  ;;  %v2732_v55 = vsel %vm6622_vm6, %v955_v8, %v2486_v31  ;;  %v4472_v54 = vcombine.low %v2916_v7, %v2922_v22  ;;  %v1098_v52 = vpack.i.b16 %v5369_v4, %v7907_v36  ;;  %v4859_v38 = vld [vmem:[%s5911_s6 + $0x108] sm:$0xff]   ;;  %v4861_v19 = vld [vmem:[%s5911_s6 + $0x150] sm:$0xff]   ;;  %v4865_v22 = vld [vmem:[%s5911_s6 + $0x158] sm:$0xff]  }
 0x2da   : > { %v7083_v60 = vsel %vm2720_vm4, %v2726_v16, %v2519_v46  ;;  %v7087_v44 = vsel %vm2720_vm4, %v2732_v55, %v2525_v43  ;;  %v7908_v39 = vld [vmem:[#allocation81_spill] sm:$0xff]  ;;  %v4863_v43 = vld [vmem:[%s5911_s6 + $0x110] sm:$0xff]  }
 0x2db   : > { %v1146_v37 = vpop.permute.xlu0 %1145  ;;  %v1148_v31 = vpop.permute.xlu1 %1147  ;;  %3386 = vmatprep.mubr.bf16.mxu0 %v4472_v54  ;;  %v1490_v7 = vpack.i.b16 %v5369_v4, %v7908_v39  ;;  %v4868_v39 = vld [vmem:[%s5911_s6 + $0x160] sm:$0xff]  }
 0x2dc   : > { %v7101_v20 = vsel %vm924_vm3, %v1074_v18, %v1146_v37  ;;  %v7104_v11 = vsel %vm924_vm3, %v1098_v52, %v1148_v31  ;;  %3387 = vmatmul.mubr.bf16.vlgmr.msra.gmra.mrb[0].mxu0 %v7001_v21  ;;  %v7909_v18 = vld [vmem:[#allocation82_spill] sm:$0xff]  ;;  %v4867_v52 = vld [vmem:[%s5911_s6 + $0x118] sm:$0xff]   ;;  %v7911_v37 = vld [vmem:[#allocation48_spill] sm:$0xff] }
 0x2dd   : > { %4613 = vmatpush3.bf16.msra.mxu0 %v4855_v41  ;;  %v1514_v8 = vpack.i.b16 %v5369_v4, %v7909_v18  ;;  %v7910_v41 = vld [vmem:[#allocation47_spill] sm:$0xff]  ;;  %v7913_v18 = vld [vmem:[#allocation60_spill] sm:$0xff] }
 0x2de   : > { %4614 = vmatprep.subr.bf16.mxu0 %v4857_v0  ;;  %v1062_v36 = vpack.i.b16 %v5369_v4, %v7910_v41  ;;  %v1086_v0 = vpack.i.b16 %v5369_v4, %v7911_v37  ;;  %v7912_v31 = vld [vmem:[#allocation59_spill] sm:$0xff]  ;;  %v2534_v37 = vshll.u32 %v6894_v30, 16 }
 0x2df   : > { %v1330_v46 = vpop.permute.xlu0 %1329  ;;  %v1332_v23 = vpop.permute.xlu1 %1331 }
 0x2e0   : > { %v1166_v41 = vsel %vm924_vm3, %v1086_v0, %v6862_v62  ;;  %v7146_v0 = vrot.slane %v2534_v37, 7  ;;  %v7916_v37 = vld [vmem:[#allocation86_spill] sm:$0xff] }
 0x2e1   : > { %4615 = vmatpush3.bf16.msra.mxu0 %v4859_v38  ;;  %v1270_v38 = vpack.i.b16 %v5369_v4, %v7912_v31  ;;  %v2484_v45 = vshll.u32 %v1166_v41, 16 }
 0x2e2   : > { %4616 = vmatprep.subr.bf16.mxu0 %v4861_v19 }
 0x2e3   : > { %v1562_v16 = vpop.permute.xlu0 %1561  ;;  %v1564_v21 = vpop.permute.xlu1 %1563  ;;  %v1371_v31 = vsel %vm924_vm3, %v1270_v38, %v1330_v46 }
 0x2e4   : > { %v7116_v55 = vsel %vm924_vm3, %v1490_v7, %v1562_v16  ;;  %v7119_v54 = vsel %vm924_vm3, %v1514_v8, %v1564_v21  ;;  %v1163_v7 = vsel %vm924_vm3, %v1062_v36, %v6855_v49  ;;  %v1294_v8 = vpack.i.b16 %v5369_v4, %v7913_v18  ;;  %v4869_v36 = vld [vmem:[%s5911_s6 + $0x120] sm:$0xff]  }
 0x2e5   : > { %4617 = vmatpush3.bf16.msra.mxu0 %v4863_v43  ;;  %v7914_v43 = vld [vmem:[#allocation69_spill] sm:$0xff]  ;;  %v2472_v18 = vshll.u32 %v1163_v7, 16  ;;  %v2518_v62 = vrot.slane %v1371_v31, 7  ;;  %v1282_v31 = vpack.i.b16 %v5369_v4, %v7916_v37  ;;  %v7920_v37 = vld [vmem:[#allocation79_spill] sm:$0xff] }
 0x2e6   : > { %4618 = vmatprep.subr.bf16.mxu0 %v4865_v22  ;;  %v837_v21 = vpack.i.b16 %v5369_v4, %v7914_v43  ;;  %v7915_v22 = vld [vmem:[#allocation70_spill] sm:$0xff]  ;;  %v1374_v49 = vsel %vm924_vm3, %v1294_v8, %v1332_v23  ;;  %v4870_v43 = vld [vmem:[%s5911_s6 + $0x168] sm:$0xff]  }
 0x2e7   : > { %v1979_v19 = vpop.permute.xlu0 %1978  ;;  %v1981_v16 = vpop.permute.xlu1 %1980  ;;  %v861_v33 = vpack.i.b16 %v5369_v4, %v7915_v22  ;;  %v2524_v38 = vrot.slane %v1374_v49, 7  ;;  %v4873_v22 = vld [vmem:[%s5911_s6 + $0x130] sm:$0xff]   ;;  %v7917_v49 = vld [vmem:[#allocation87_spill] sm:$0xff] }
 0x2e9   : > { %4619 = vmatpush3.bf16.msra.mxu0 %v4867_v52  ;;  %v7151_v52 = vrot.slane %v2552_v51, 7  ;;  %v4872_v51 = vld [vmem:[%s5911_s6 + $0x170] sm:$0xff]  }
 0x2ea   : > { %4620 = vmatprep.subr.bf16.mxu0 %v4868_v39 }
 0x2eb   : > { %v897_v53 = vpop.permute.xlu0 %896  ;;  %v899_v30 = vpop.permute.xlu1 %898 }
 0x2ec   : > { %v943_v46 = vsel %vm924_vm3, %v837_v21, %v897_v53  ;;  %v947_v34 = vsel %vm924_vm3, %v861_v33, %v899_v30  ;;  %v4871_v53 = vld [vmem:[%s5911_s6 + $0x128] sm:$0xff]  }
 0x2ed   : > { %v2725_v23 = vsel %vm6622_vm6, %v943_v46, %v2472_v18  ;;  %v2731_v39 = vsel %vm6622_vm6, %v947_v34, %v2484_v45  ;;  %4621 = vmatpush3.bf16.msra.mxu0 %v4869_v36  ;;  %v1306_v36 = vpack.i.b16 %v5369_v4, %v7917_v49  ;;  %v7918_v46 = vld [vmem:[#allocation83_spill] sm:$0xff] }
 0x2ee   : > { %v7156_v7 = vsel %vm2720_vm4, %v2725_v23, %v2518_v62  ;;  %v7160_v8 = vsel %vm2720_vm4, %v2731_v39, %v2524_v38  ;;  %4622 = vmatprep.subr.bf16.mxu0 %v4870_v43  ;;  %v4874_v43 = vld [vmem:[%s5911_s6 + $0x178] sm:$0xff]   ;;  %v1915_v38 = vpack.i.b16 %v5369_v4, %v7918_v46  ;;  %v7919_v23 = vld [vmem:[#allocation84_spill] sm:$0xff] }
 0x2ef   : > { %v7166_v21 = vpop.permute.xlu0 %1137  ;;  %v7173_v41 = vpop.permute.xlu1 %1139  ;;  %v1939_v39 = vpack.i.b16 %v5369_v4, %v7919_v23  ;;  %v4875_v45 = vld [vmem:[%s5911_s6 + $0x138] sm:$0xff]   ;;  %v7922_v23 = vld [vmem:[#allocation88_spill] sm:$0xff]  ;;  %s752_s6 = scalar_lea.vmem [#allocation23], %s5899_s14 }
 0x2f0   : > { %v2018_v49 = vsel %vm924_vm3, %v1915_v38, %v1979_v19  ;;  %v7923_v38 = vld [vmem:[#allocation89_spill] sm:$0xff]  ;;  %s4106_s27 = sshll.u32 %s752_s6, 4  ;;  %s7603_s27 = int_to_ptr.vmem [resolvable:$true] %s4106_s27 }
 0x2f1   : > { %4623 = vmatpush3.bf16.msra.mxu0 %v4871_v53  ;;  %v1486_v53 = vpack.i.b16 %v5369_v4, %v7920_v37  ;;  %v2609_v46 = vshll.u32 %v2018_v49, 16  ;;  %v1714_v37 = vpack.i.b16 %v5369_v4, %v7923_v38  ;;  %v873_v38 = vpack.i.b16 %v5369_v4, %v6595_v6  ;;  %p5251_p13 = scmp.lt.s32.totalorder %s7603_s27, %s5249_s19 }
 0x2f2   : > { %4624 = vmatprep.subr.bf16.mxu0 %v4872_v51  ;;  %v7921_v51 = vld [vmem:[#allocation80_spill] sm:$0xff] }
 0x2f3   : > { %v1354_v18 = vpop.permute.xlu0 %1353  ;;  %v1356_v62 = vpop.permute.xlu1 %1355  ;;  %v1510_v33 = vpack.i.b16 %v5369_v4, %v7921_v51 }
 0x2f4   : > { %v1389_v30 = vsel %vm924_vm3, %v1282_v31, %v1354_v18  ;;  %v1392_v34 = vsel %vm924_vm3, %v1306_v36, %v1356_v62  ;;  %v2021_v31 = vsel %vm924_vm3, %v1939_v39, %v1981_v16 }
 0x2f5   : > { %4625 = vmatpush3.bf16.msra.mxu0 %v4873_v22  ;;  %v1690_v22 = vpack.i.b16 %v5369_v4, %v7922_v23  ;;  %v2627_v19 = vshll.u32 %v2021_v31, 16  ;;  %v7925_v23 = vsel %vm6682_vm9, %v7087_v44, %v7078_v2  ;;  %v2561_v44 = vshll.u32 %v7119_v54, 16 }
 0x2f6   : > { %4626 = vmatprep.subr.bf16.mxu0 %v4874_v43 }
 0x2f7   : > { %v1554_v9 = vpop.permute.xlu0 %1553  ;;  %v1556_v18 = vpop.permute.xlu1 %1555 }
 0x2f8   : > { %v7195_v36 = vsel %vm924_vm3, %v1486_v53, %v1554_v9  ;;  %v7198_v62 = vsel %vm924_vm3, %v1510_v33, %v1556_v18  ;;  %v7206_v53 = vrot.slane %v2609_v46, 6  ;;  %v7208_v18 = vrot.slane %v2627_v19, 6 }
 0x2f9   : > { %4627 = vmatpush3.bf16.msra.mxu0 %v4875_v45  ;;  %v7924_v45 = vsel %vm6682_vm9, %v7083_v60, %v7064_v25  ;;  %v849_v19 = vpack.i.b16 %v5369_v4, %v6586_v3  ;;  %v2543_v60 = vshll.u32 %v7116_v55, 16 }
 0x2fb   : > { %v1754_v51 = vpop.permute.xlu0 %1753  ;;  %v1756_v43 = vpop.permute.xlu1 %1755  ;;  %v7245_v6 = vrot.slane %v2543_v60, 7 }
 0x2fc   : > { %v1793_v16 = vsel %vm924_vm3, %v1690_v22, %v1754_v51  ;;  %v1796_v39 = vsel %vm924_vm3, %v1714_v37, %v1756_v43  ;;  %v2478_v37 = vshll.u32 %v7101_v20, 16  ;;  %v2490_v51 = vshll.u32 %v7104_v11, 16 }
 0x2fd   : > { %v2591_v9 = vrot.slane %v1793_v16, 6  ;;  %v2597_v33 = vrot.slane %v1796_v39, 6  ;;  %v2521_v43 = vrot.slane %v1389_v30, 7  ;;  %v1911_v16 = vpack.i.b16 %v5369_v4, %v6457_v58 }
 0x2fe   : > { %v1935_v20 = vpack.i.b16 %v5369_v4, %v6461_v12 }
 0x2ff   : > { %v7216_v49 = vsel %vm2784_vm7, %v7924_v45, %v2591_v9  ;;  %v1971_v31 = vpop.permute.xlu0 %1970  ;;  %v7224_v46 = vsel %vm2784_vm7, %v7925_v23, %v2597_v33  ;;  %v1973_v22 = vpop.permute.xlu1 %1972  ;;  %v2527_v9 = vrot.slane %v1392_v34, 7  ;;  %v7250_v45 = vrot.slane %v2561_v44, 7 }
 0x300   : > { %v2854_v25 = vsel %vm6936_vm12, %v7216_v49, %v7206_v53  ;;  %v2860_v2 = vsel %vm6936_vm12, %v7224_v46, %v7208_v18  ;;  %v2012_v30 = vsel %vm924_vm3, %v1911_v16, %v1971_v31  ;;  %v2015_v60 = vsel %vm924_vm3, %v1935_v20, %v1973_v22 }
 0x301   : > { %v2606_v44 = vshll.u32 %v2012_v30, 16  ;;  %v1686_v31 = vpack.i.b16 %v5369_v4, %v6529_v48  ;;  %v7926_v48 = vsel %vm6682_vm9, %v7156_v7, %v7146_v0  ;;  %v7927_v20 = vsel %vm6682_vm9, %v7160_v8, %v7151_v52  ;;  %v7928_v7 = vld [vmem:[#allocation73_spill] sm:$0xff] }
 0x302   : > { %v1278_v8 = vpack.i.b16 %v5369_v4, %v6497_v59  ;;  %v2369_v53 = vpack.i.b16 %v5369_v4, %v6611_v26  ;;  %v1694_v49 = vpack.i.b16 %v5369_v4, %v6712_v42  ;;  %v1718_v46 = vpack.i.b16 %v5369_v4, %v6675_v10  ;;  %v7932_v10 = vld [vmem:[#allocation94_spill] sm:$0xff] }
 0x303   : > { %v921_v3 = vpop.permute.xlu0 %920  ;;  %v923_v55 = vpop.permute.xlu1 %922  ;;  %v2128_v42 = vpack.i.b16 %v5369_v4, %v6708_v28  ;;  %v2357_v28 = vpack.i.b16 %v5369_v4, %v6885_v5 }
 0x304   : > { %v967_v39 = vsel %vm924_vm3, %v849_v19, %v921_v3  ;;  %v971_v33 = vsel %vm924_vm3, %v873_v38, %v923_v55  ;;  %v1710_v3 = vpack.i.b16 %v5369_v4, %v6534_v57 }
 0x305   : > { %v2728_v54 = vsel %vm6622_vm6, %v967_v39, %v2478_v37  ;;  %v2734_v11 = vsel %vm6622_vm6, %v971_v33, %v2490_v51  ;;  %v2624_v37 = vshll.u32 %v2015_v60, 16  ;;  %v7278_v39 = vrot.slane %v2606_v44, 6 }
 0x306   : > { %v7257_v58 = vsel %vm2720_vm4, %v2728_v54, %v2521_v43  ;;  %v7261_v34 = vsel %vm2720_vm4, %v2734_v11, %v2527_v9  ;;  %v1070_v44 = vpack.i.b16 %v5369_v4, %v7928_v7 }
 0x307   : > { %v2792_v23 = vsel %vm6682_vm9, %v7257_v58, %v7245_v6  ;;  %v1346_v19 = vpop.permute.xlu0 %1345  ;;  %v2798_v12 = vsel %vm6682_vm9, %v7261_v34, %v7250_v45  ;;  %v1348_v38 = vpop.permute.xlu1 %1347  ;;  %v7280_v33 = vrot.slane %v2624_v37, 6  ;;  %v2156_v34 = vpack.i.b16 %v5369_v4, %v6811_v61 }
 0x308   : > { %v1383_v59 = vsel %vm924_vm3, %v1278_v8, %v1346_v19 }
 0x30b   : > { %v1746_v51 = vpop.permute.xlu0 %1745  ;;  %v1748_v43 = vpop.permute.xlu1 %1747 }
 0x30c   : > { %v1787_v16 = vsel %vm924_vm3, %v1686_v31, %v1746_v51  ;;  %v1790_v22 = vsel %vm924_vm3, %v1710_v3, %v1748_v43  ;;  %v7929_v31 = vld [vmem:[#allocation75_spill] sm:$0xff]  ;;  %v1175_v3 = vsel %vm924_vm3, %v1070_v44, %v7166_v21  ;;  %v1302_v51 = vpack.i.b16 %v5369_v4, %v6501_v29 }
 0x30d   : > { %v2590_v55 = vrot.slane %v1787_v16, 6  ;;  %v2596_v9 = vrot.slane %v1790_v22, 6  ;;  %v1094_v52 = vpack.i.b16 %v5369_v4, %v7929_v31  ;;  %v1923_v43 = vpack.i.b16 %v5369_v4, %v6664_v27 }
 0x30e   : > { %v845_v22 = vpack.i.b16 %v5369_v4, %v6558_v14  ;;  %v869_v21 = vpack.i.b16 %v5369_v4, %v6563_v1  ;;  %v1386_v29 = vsel %vm924_vm3, %v1302_v51, %v1348_v38  ;;  %v1947_v27 = vpack.i.b16 %v5369_v4, %v6668_v15 }
 0x30f   : > { %v7288_v54 = vsel %vm2784_vm7, %v7926_v48, %v2590_v55  ;;  %v1995_v57 = vpop.permute.xlu0 %1994  ;;  %v7296_v11 = vsel %vm2784_vm7, %v7927_v20, %v2596_v9  ;;  %v1997_v30 = vpop.permute.xlu1 %1996  ;;  %v1178_v55 = vsel %vm924_vm3, %v1094_v52, %v7173_v41  ;;  %v2540_v9 = vshll.u32 %v7195_v36, 16 }
 0x310   : > { %v2853_v60 = vsel %vm6936_vm12, %v7288_v54, %v7278_v39  ;;  %v2859_v0 = vsel %vm6936_vm12, %v7296_v11, %v7280_v33  ;;  %v2558_v48 = vshll.u32 %v7198_v62, 16  ;;  %v2476_v20 = vshll.u32 %v1175_v3, 16 }
 0x311   : > { %v2030_v14 = vsel %vm924_vm3, %v1923_v43, %v1995_v57  ;;  %v1698_v41 = vpack.i.b16 %v5369_v4, %v6742_v35  ;;  %v2488_v36 = vshll.u32 %v1178_v55, 16  ;;  %v2520_v44 = vrot.slane %v1383_v59, 7 }
 0x312   : > { %v2033_v19 = vsel %vm924_vm3, %v1947_v27, %v1997_v30  ;;  %v7335_v62 = vrot.slane %v2540_v9, 7  ;;  %v2526_v38 = vrot.slane %v1386_v29, 7  ;;  %v7340_v57 = vrot.slane %v2558_v48, 7  ;;  %v7930_v48 = vld [vmem:[#allocation92_spill] sm:$0xff] }
 0x313   : > { %v2413_v37 = vpop.permute.xlu0 %2412  ;;  %v2415_v16 = vpop.permute.xlu1 %2414  ;;  %v2615_v8 = vshll.u32 %v2030_v14, 16  ;;  %v2633_v30 = vshll.u32 %v2033_v19, 16  ;;  %v2349_v29 = vpack.i.b16 %v5369_v4, %v7930_v48 }
 0x315   : > { %v7358_v14 = vrot.slane %v2615_v8, 6  ;;  %v2452_v19 = vsel %vm924_vm3, %v2349_v29, %v2413_v37 }
 0x317   : > { %v913_v7 = vpop.permute.xlu0 %912  ;;  %v915_v31 = vpop.permute.xlu1 %914 }
 0x318   : > { %v959_v1 = vsel %vm924_vm3, %v845_v22, %v913_v7  ;;  %v963_v52 = vsel %vm924_vm3, %v869_v21, %v915_v31  ;;  %v1722_v22 = vpack.i.b16 %v5369_v4, %v6727_v13  ;;  %v7931_v7 = vld [vmem:[#allocation93_spill] sm:$0xff] }
 0x319   : > { %v2727_v15 = vsel %vm6622_vm6, %v959_v1, %v2476_v20  ;;  %v2733_v35 = vsel %vm6622_vm6, %v963_v52, %v2488_v36  ;;  %v2373_v36 = vpack.i.b16 %v5369_v4, %v7931_v7 }
 0x31a   : > { %v2754_v3 = vsel %vm2720_vm4, %v2727_v15, %v2520_v44  ;;  %v2778_v51 = vsel %vm2720_vm4, %v2733_v35, %v2526_v38  ;;  %v7362_v44 = vrot.slane %v2633_v30, 6  ;;  %vm3587_vm4 = vcmask 1044484  }
 0x31b   : > { %v2791_v43 = vsel %vm6682_vm9, %v2754_v3, %v7335_v62  ;;  %v1770_v55 = vpop.permute.xlu0 %1769  ;;  %v2797_v9 = vsel %vm6682_vm9, %v2778_v51, %v7340_v57  ;;  %v1772_v59 = vpop.permute.xlu1 %1771  ;;  %v2455_v1 = vsel %vm924_vm3, %v2373_v36, %v2415_v16  ;;  %v2152_v36 = vpack.i.b16 %v5369_v4, %v7932_v10 }
 0x31c   : > { %v1805_v21 = vsel %vm924_vm3, %v1698_v41, %v1770_v55  ;;  %v1808_v27 = vsel %vm924_vm3, %v1722_v22, %v1772_v59  ;;  %v2699_v45 = vshll.u32 %v2455_v1, 16  ;;  %v2345_v22 = vpack.i.b16 %v5369_v4, %v6604_v56 }
 0x31d   : > { %v2593_v20 = vrot.slane %v1805_v21, 6  ;;  %v2599_v13 = vrot.slane %v1808_v27, 6 }
 0x31e   : > { %v2701_v35 = vrot.slane %v2699_v45, 5 }
 0x31f   : > { %v7371_v41 = vsel %vm2784_vm7, %v2792_v23, %v2593_v20  ;;  %v7373_v31 = vpop.permute.xlu0 %1986  ;;  %v7382_v62 = vsel %vm2784_vm7, %v2798_v12, %v2599_v13  ;;  %v7384_v37 = vpop.permute.xlu1 %1988  ;;  %v2681_v23 = vshll.u32 %v2452_v19, 16 }
 0x320   : > { %v2856_v6 = vsel %vm6936_vm12, %v7371_v41, %v7358_v14  ;;  %v2862_v58 = vsel %vm6936_vm12, %v7382_v62, %v7362_v44  ;;  %v7939_v62 = vld [vmem:[#allocation50_spill] sm:$0xff] }
 0x321   : > { %v2683_v57 = vrot.slane %v2681_v23, 5 }
 0x323   : > { %v2196_v12 = vpop.permute.xlu0 %2195  ;;  %v2198_v16 = vpop.permute.xlu1 %2197 }
 0x324   : > { %v2235_v38 = vsel %vm924_vm3, %v2132_v17, %v2196_v12  ;;  %v2238_v52 = vsel %vm924_vm3, %v2156_v34, %v2198_v16  ;;  %v2381_v16 = vpack.i.b16 %v5369_v4, %v6920_v32 }
 0x325   : > { %v2663_v15 = vrot.slane %v2235_v38, 5  ;;  %v2669_v8 = vrot.slane %v2238_v52, 5 }
 0x327   : > { %v2405_v3 = vpop.permute.xlu0 %2404  ;;  %v2878_v50 = vsel %vm2848_vm10, %v2854_v25, %v2663_v15  ;;  %v2407_v30 = vpop.permute.xlu1 %2406  ;;  %v2902_v61 = vsel %vm2848_vm10, %v2860_v2, %v2669_v8 }
 0x328   : > { %v2918_v51 = vsel %vm6976_vm15, %v2878_v50, %v2683_v57  ;;  %v2924_v55 = vsel %vm6976_vm15, %v2902_v61, %v2701_v35  ;;  %v2446_v18 = vsel %vm924_vm3, %v2345_v22, %v2405_v3  ;;  %v2449_v59 = vsel %vm924_vm3, %v2369_v53, %v2407_v30  ;;  %v7933_v35 = vld [vmem:[#allocation90_spill] sm:$0xff]  ;;  %v7935_v30 = vld [vmem:[#allocation91_spill] sm:$0xff] }
 0x329   : > { %v4474_v25 = vcombine.low %v2918_v51, %v2924_v55  ;;  %v2678_v26 = vshll.u32 %v2446_v18, 16  ;;  %v2696_v20 = vshll.u32 %v2449_v59, 16  ;;  %v1919_v33 = vpack.i.b16 %v5369_v4, %v7933_v35 }
 0x32a   : > { %v1943_v61 = vpack.i.b16 %v5369_v4, %v7935_v30  ;;  %v4882_v30 = vld [vmem:[%s5919_s12 + $0x30] sm:$0xff]  }
 0x32b   : > { %v1762_v2 = vpop.permute.xlu0 %1761  ;;  %v1764_v21 = vpop.permute.xlu1 %1763  ;;  %3427 = vmatprep.mubr.bf16.mxu1 %v4474_v25  ;;  %v2680_v34 = vrot.slane %v2678_v26, 5  ;;  %v2024_v55 = vsel %vm924_vm3, %v1919_v33, %v7373_v31  ;;  %v7937_v31 = vld [vmem:[#allocation49_spill] sm:$0xff] }
 0x32c   : > { %v1799_v56 = vsel %vm924_vm3, %v1694_v49, %v1762_v2  ;;  %v1802_v48 = vsel %vm924_vm3, %v1718_v46, %v1764_v21  ;;  %v2027_v49 = vsel %vm924_vm3, %v1943_v61, %v7384_v37  ;;  %v7936_v46 = vld [vmem:[#allocation95_spill] sm:$0xff]  ;;  %v4876_v33 = vld [vmem:[%s5919_s12] sm:$0xff]  }
 0x32d   : > { %v2592_v29 = vrot.slane %v1799_v56, 6  ;;  %v2598_v27 = vrot.slane %v1802_v48, 6  ;;  %v2353_v2 = vpack.i.b16 %v5369_v4, %v7936_v46  ;;  %v2377_v56 = vpack.i.b16 %v5369_v4, %v7937_v31  ;;  %v4883_v61 = vld [vmem:[%s5919_s12 + $0x38] sm:$0xff]  }
 0x32e   : > { %v2630_v41 = vshll.u32 %v2027_v49, 16 }
 0x32f   : > { %v7431_v7 = vsel %vm2784_vm7, %v2791_v43, %v2592_v29  ;;  %v2188_v13 = vpop.permute.xlu0 %2187  ;;  %v7436_v19 = vsel %vm2784_vm7, %v2797_v9, %v2598_v27  ;;  %v2190_v1 = vpop.permute.xlu1 %2189  ;;  %v2698_v43 = vrot.slane %v2696_v20, 5  ;;  %v2612_v29 = vshll.u32 %v2024_v55, 16 }
 0x330   : > { %v2229_v23 = vsel %vm924_vm3, %v2128_v42, %v2188_v13  ;;  %v2232_v17 = vsel %vm924_vm3, %v2152_v36, %v2190_v1  ;;  %v7938_v36 = vld [vmem:[#allocation85_spill] sm:$0xff]  ;;  %vm3875_vm7 = vcmask 1047559  }
 0x331   : > { %v2662_v45 = vrot.slane %v2229_v23, 5  ;;  %v2668_v12 = vrot.slane %v2232_v17, 5  ;;  %v2136_v13 = vpack.i.b16 %v5369_v4, %v7938_v36  ;;  %v2614_v23 = vrot.slane %v2612_v29, 6 }
 0x333   : > { %v2874_v9 = vsel %vm2848_vm10, %v2853_v60, %v2662_v45  ;;  %v2429_v38 = vpop.permute.xlu0 %2428  ;;  %v2898_v52 = vsel %vm2848_vm10, %v2859_v0, %v2668_v12  ;;  %v2431_v5 = vpop.permute.xlu1 %2430  ;;  %v2140_v60 = vpack.i.b16 %v5369_v4, %v6900_v24  ;;  %v7934_v0 = vld [vmem:[#allocation52_spill] sm:$0xff] }
 0x334   : > { %v2464_v15 = vsel %vm924_vm3, %v2357_v28, %v2429_v38  ;;  %v2917_v57 = vsel %vm6976_vm15, %v2874_v9, %v2680_v34  ;;  %v2467_v39 = vsel %vm924_vm3, %v2381_v16, %v2431_v5  ;;  %v2923_v54 = vsel %vm6976_vm15, %v2898_v52, %v2698_v43 }
 0x335   : > { %v2687_v32 = vshll.u32 %v2464_v15, 16  ;;  %v4473_v8 = vcombine.low %v2917_v57, %v2923_v54  ;;  %v2705_v11 = vshll.u32 %v2467_v39, 16  ;;  %v2164_v3 = vpack.i.b16 %v5369_v4, %v7934_v0  ;;  %v4879_v0 = vld [vmem:[%s5919_s12 + $0x18] sm:$0xff]  }
 0x336   : > { %v2632_v34 = vrot.slane %v2630_v41, 6  ;;  %v2855_v16 = vsel %vm6936_vm12, %v7431_v7, %v2614_v23 }
 0x337   : > { %v2212_v50 = vpop.permute.xlu0 %2211  ;;  %v2214_v51 = vpop.permute.xlu1 %2213  ;;  %3428 = vmatmul.mubr.bf16.vlgmr.msra.gmra.mrb[0].mxu1 %v4473_v8  ;;  %v2689_v25 = vrot.slane %v2687_v32, 5  ;;  %v2707_v59 = vrot.slane %v2705_v11, 5  ;;  %v4877_v11 = vld [vmem:[%s5919_s12 + $0x8] sm:$0xff]  }
 0x338   : > { %v2247_v22 = vsel %vm924_vm3, %v2140_v60, %v2212_v50  ;;  %v2250_v24 = vsel %vm924_vm3, %v2164_v3, %v2214_v51  ;;  %v2861_v52 = vsel %vm6936_vm12, %v7436_v19, %v2632_v34  ;;  %3765 = vmatpush1.bf16.msra.mxu1 %v4876_v33  ;;  %v4880_v3 = vld [vmem:[%s5919_s12 + $0x20] sm:$0xff]   ;;  %v4881_v50 = vld [vmem:[%s5919_s12 + $0x28] sm:$0xff]  }
 0x339   : > { %v2665_v53 = vrot.slane %v2247_v22, 5  ;;  %v2671_v18 = vrot.slane %v2250_v24, 5  ;;  %3766 = vmatprep.subr.bf16.mxu1 %v5369_v4  ;;  %v4884_v51 = vld [vmem:[%s5919_s12 + $0x40] sm:$0xff]   ;;  %v4470_v22 = vld [vmem:[%s632_s28] ss:$0 sm:$0xff] }
 0x33b   : > { %v2886_v21 = vsel %vm2848_vm10, %v2856_v6, %v2665_v53  ;;  %v2421_v48 = vpop.permute.xlu0 %2420  ;;  %v2910_v37 = vsel %vm2848_vm10, %v2862_v58, %v2671_v18  ;;  %v2423_v26 = vpop.permute.xlu1 %2422  ;;  %v2160_v58 = vpack.i.b16 %v5369_v4, %v7939_v62 }
 0x33c   : > { %v2458_v27 = vsel %vm924_vm3, %v2353_v2, %v2421_v48  ;;  %v2920_v14 = vsel %vm6976_vm15, %v2886_v21, %v2689_v25  ;;  %v2461_v6 = vsel %vm924_vm3, %v2377_v56, %v2423_v26  ;;  %v2926_v42 = vsel %vm6976_vm15, %v2910_v37, %v2707_v59  ;;  %3767 = vmatpush1.bf16.msra.mxu1 %v4877_v11 }
 0x33d   : > { %v2684_v20 = vshll.u32 %v2458_v27, 16  ;;  %v4476_v10 = vcombine.low %v2920_v14, %v2926_v42  ;;  %v2702_v44 = vshll.u32 %v2461_v6, 16  ;;  %3768 = vmatprep.subr.bf16.mxu1 %v5369_v4  ;;  %v7940_v42 = vld [vmem:[#allocation45_spill] sm:$0xff] }
 0x33f   : > { %v2204_v1 = vpop.permute.xlu0 %2203  ;;  %v2206_v17 = vpop.permute.xlu1 %2205  ;;  %3468 = vmatprep.mubr.bf16.mxu0 %v4476_v10  ;;  %v2686_v43 = vrot.slane %v2684_v20, 5  ;;  %v2704_v38 = vrot.slane %v2702_v44, 5 }
 0x340   : > { %v2241_v45 = vsel %vm924_vm3, %v2136_v13, %v2204_v1  ;;  %v2244_v12 = vsel %vm924_vm3, %v2160_v58, %v2206_v17  ;;  %3769 = vmatpush1.bf16.msra.mxu1 %v4878_v40 }
 0x341   : > { %v2664_v28 = vrot.slane %v2241_v45, 5  ;;  %v2670_v9 = vrot.slane %v2244_v12, 5  ;;  %3770 = vmatprep.subr.bf16.mxu1 %v5369_v4 }
 0x343   : > { %v2882_v5 = vsel %vm2848_vm10, %v2855_v16, %v2664_v28  ;;  %v2906_v15 = vsel %vm2848_vm10, %v2861_v52, %v2670_v9 }
 0x344   : > { %v2919_v57 = vsel %vm6976_vm15, %v2882_v5, %v2686_v43  ;;  %v2925_v39 = vsel %vm6976_vm15, %v2906_v15, %v2704_v38  ;;  %3771 = vmatpush1.bf16.msra.mxu1 %v4879_v0 }
 0x345   : > { %v4475_v54 = vcombine.low %v2919_v57, %v2925_v39  ;;  %3772 = vmatprep.subr.bf16.mxu1 %v5369_v4 }
 0x347   : > { %3469 = vmatmul.mubr.bf16.vlgmr.msra.gmra.mrb[4].mxu0 %v4475_v54 }
 0x348   : > { %3773 = vmatpush1.bf16.msra.mxu1 %v4880_v3 }
 0x349   : > { %3774 = vmatprep.subr.bf16.mxu1 %v5369_v4 }
 0x34c   : > { %3775 = vmatpush1.bf16.msra.mxu1 %v4881_v50 }
 0x34d   : > { %3776 = vmatprep.subr.bf16.mxu1 %v5369_v4 }
 0x350   : > { %3777 = vmatpush1.bf16.msra.mxu1 %v4882_v30 }
 0x351   : > { %3778 = vmatprep.subr.bf16.mxu1 %v5369_v4 }
 0x354   : > { %3779 = vmatpush1.bf16.msra.mxu1 %v4883_v61 }
 0x355   : > { %3780 = vmatprep.subr.bf16.mxu1 %v5369_v4 }
 0x358   : > { %3781 = vmatpush1.bf16.msra.mxu1 %v4884_v51 }
 0x359   : > { %3782 = vmatprep.subr.bf16.mxu1 %v5369_v4 }
 0x3af   : > { %v4584_v7 = vpop.f32.mrb[0].mxu0 }
 0x3b0   : > { %v4585_v32 = vpop.f32.mrb[1].mxu0 }
 0x3b1   : > { %v4586_v60 = vadd.f32 %v4585_v32, %v4584_v7  ;;  %v4587_v8 = vpop.f32.mrb[2].mxu0 }
 0x3b2   : > { %v4588_v19 = vpop.f32.mrb[3].mxu0 }
 0x3b3   : > { %v4589_v35 = vadd.f32 %v4588_v19, %v4587_v8  ;;  %v3389_v53 = vadd.f32 %v4586_v60, %v4470_v22 }
 0x3b5   : > { %v3392_v46 = vadd.f32 %v4589_v35, %v4470_v22 }
 0x40a   : > { %v4606_v55 = vpop.f32.mrb[0].mxu1 }
 0x40b   : > { %v4607_v24 = vpop.f32.mrb[1].mxu1 }
 0x40c   : > { %v4608_v49 = vadd.f32 %v4607_v24, %v4606_v55  ;;  %v4609_v25 = vpop.f32.mrb[2].mxu1 }
 0x40d   : > { %v4610_v18 = vpop.f32.mrb[3].mxu1 }
 0x40e   : > { %v3430_v2 = vadd.f32 %v4608_v49, %v3389_v53  ;;  %v4611_v59 = vadd.f32 %v4610_v18, %v4609_v25 }
 0x410   : > { %v3433_v21 = vadd.f32 %v4611_v59, %v3392_v46 }
 0x41a   : > { %v4628_v31 = vpop.f32.mrb[4].mxu0 }
 0x41b   : > { %v4629_v56 = vpop.f32.mrb[5].mxu0 }
 0x41c   : > { %v4630_v48 = vadd.f32 %v4629_v56, %v4628_v31  ;;  %v4631_v29 = vpop.f32.mrb[6].mxu0 }
 0x41d   : > { %v4632_v37 = vpop.f32.mrb[7].mxu0 }
 0x41e   : > { %v3471_v26 = vadd.f32 %v4630_v48, %v3430_v2  ;;  %v4633_v27 = vadd.f32 %v4632_v37, %v4631_v29 }
 0x420   : > { %v3477_v14 = vmax.f32 %v3471_v26, 0.0  ;;  %v3474_v41 = vadd.f32 %v4633_v27, %v3433_v21 }
 0x422   : > { %v3481_v6 = vcombine.high %v3477_v14, %v3477_v14  ;;  %v3488_v20 = vrot.slane %v3477_v14, %v7940_v42  ;;  %v3478_v10 = vmax.f32 %v3474_v41, 0.0 }
 0x424   : > { %v3495_v36 = vrot.slane %v3481_v6, %v7940_v42  ;;  %v3496_v13 = vcombine.high %v3488_v20, %v3488_v20  ;;  %v4525_v44 = vrot.slane %v3488_v20, 9  ;;  %v3498_v62 = vcombine.high %v3478_v10, %v3478_v10 }
 0x425   : > { %v3505_v58 = vrot.slane %v3478_v10, %v7940_v42 }
 0x426   : > { %v3497_v1 = vcombine.high %v3495_v36, %v3495_v36  ;;  %v4526_v23 = vrot.slane %v3496_v13, 9  ;;  %v4527_v17 = vrot.slane %v3495_v36, 9  ;;  %v3547_v45 = vmax.f32 %v3488_v20, %v4525_v44 }
 0x427   : > { %v3512_v34 = vrot.slane %v3498_v62, %v7940_v42  ;;  %v3513_v12 = vcombine.high %v3505_v58, %v3505_v58  ;;  %v4529_v28 = vrot.slane %v3505_v58, 9 }
 0x428   : > { %v4528_v43 = vrot.slane %v3497_v1, 9  ;;  %v3548_v9 = vmax.f32 %v3496_v13, %v4526_v23  ;;  %v3549_v16 = vmax.f32 %v3495_v36, %v4527_v17  ;;  %v3555_v38 = vpack.c.bf16 %v3547_v45, %v3547_v45  ;;  %v4886_v45 = vld [vmem:[%s5919_s12 + $0x50] sm:$0xff]  }
 0x429   : > { %v3514_v52 = vcombine.high %v3512_v34, %v3512_v34  ;;  %v4530_v5 = vrot.slane %v3513_v12, 9  ;;  %v4531_v15 = vrot.slane %v3512_v34, 9  ;;  %v3551_v57 = vmax.f32 %v3505_v58, %v4529_v28  ;;  %v4885_v58 = vld [vmem:[%s5919_s12 + $0x48] sm:$0xff]   ;;  %s7946_s12 = sld [smem:[#allocation102_spill]] }
 0x42a   : > { %v3550_v39 = vmax.f32 %v3497_v1, %v4528_v43  ;;  %v3556_v54 = vpack.c.bf16 %v3548_v9, %v3548_v9  ;;  %v3557_v7 = vpack.c.bf16 %v3549_v16, %v3549_v16  ;;  %v3571_v32 = vunpack.c.l.b16 %v3555_v38  ;;  %3783 = vmatpush1.bf16.msra.mxu1 %v4885_v58  ;;  %v7942_v58 = vld [vmem:[#allocation46_spill] sm:$0xff] }
 0x42b   : > { %v4532_v60 = vrot.slane %v3514_v52, 9  ;;  %v3552_v8 = vmax.f32 %v3513_v12, %v4530_v5  ;;  %v3553_v19 = vmax.f32 %v3512_v34, %v4531_v15  ;;  %v3559_v35 = vpack.c.bf16 %v3551_v57, %v3551_v57  ;;  %3784 = vmatprep.subr.bf16.mxu1 %v5369_v4 }
 0x42c   : > { %v3558_v33 = vpack.c.bf16 %v3550_v39, %v3550_v39  ;;  %v3572_v11 = vunpack.c.l.b16 %v3556_v54  ;;  %v3573_v40 = vunpack.c.l.b16 %v3557_v7  ;;  %v3579_v51 = vrot.slane %v3571_v32, 7  ;;  %v4888_v7 = vld [vmem:[#allocation15] sm:$0xff]   ;;  %v4889_v32 = vld [vmem:[#allocation15 + $0x8] sm:$0xff]  }
 0x42d   : > { %v3554_v0 = vmax.f32 %v3514_v52, %v4532_v60  ;;  %v3560_v3 = vpack.c.bf16 %v3552_v8, %v3552_v8  ;;  %v3561_v50 = vpack.c.bf16 %v3553_v19, %v3553_v19  ;;  %v3575_v30 = vunpack.c.l.b16 %v3559_v35  ;;  %v4890_v60 = vld [vmem:[#allocation15 + $0x10] sm:$0xff]  }
 0x42e   : > { %v3574_v61 = vunpack.c.l.b16 %v3558_v33  ;;  %v3580_v22 = vrot.slane %v3572_v11, 6  ;;  %v3583_v55 = vrot.slane %v3573_v40, 5  ;;  %3785 = vmatpush1.bf16.msra.mxu1 %v4886_v45  ;;  %v5378_v54 = vmov 0.0   ;;  %v4533_v8 = vld [vmem:[%s649_s18] ss:$0 sm:$0xff] }
 0x42f   : > { %v3562_v24 = vpack.c.bf16 %v3554_v0, %v3554_v0  ;;  %v3576_v53 = vunpack.c.l.b16 %v3560_v3  ;;  %v3577_v49 = vunpack.c.l.b16 %v3561_v50  ;;  %v3589_v46 = vrot.slane %v3575_v30, 7  ;;  %3786 = vmatprep.subr.bf16.mxu1 %v5369_v4  ;;  %4642 = vmatprep.subr.bf16.mxu0 %v5378_v54  ;;  %v4547_v35 = vld [vmem:[%s657_s7] ss:$0 sm:$0xff]  ;;  %s7947_s18 = smov %s7946_s12  ;;  %s7601_s1 = scalar_lea.hbm %s7946_s12, %s4564_s13 }
 0x430   : > { %v3582_v25 = vsel %vm3581_vm0, %v3580_v22, %v3579_v51  ;;  %v3586_v18 = vrot.slane %v3574_v61, 4  ;;  %4643 = vmatpush3.bf16.msra.mxu0 %v4888_v7  ;;  %v4548_v40 = vld [vmem:[%s665_s22] ss:$0 sm:$0xff]  ;;  %v3821_v61 = vstv %s757_s21  ;;  %4650 = vmatprep.mubr.msk.bf16.mxu0 %vm5379_vm8, %v5378_v54  ;;  %s4093_s7 = scalar_lea.sflag [#allocation5], %s5899_s14  ;;  %s5244_s22 = scalar_lea.vmem %s7603_s27, 16 }
 0x431   : > { %v3585_v2 = vsel %vm3584_vm1, %v3583_v55, %v3582_v25  ;;  %v3578_v59 = vunpack.c.l.b16 %v3562_v24  ;;  %v3590_v21 = vrot.slane %v3576_v53, 6  ;;  %v3592_v31 = vrot.slane %v3577_v49, 5  ;;  %4644 = vmatprep.subr.bf16.mxu0 %v5378_v54  ;;  %p5245_p7 = scmp.ne.s32.totalorder %s7603_s27, %s5244_s22  ;;  %p5252_p0 = scmp.lt.s32.totalorder %s5250_s25, %s5244_s22 }
 0x432   : > { %v3588_v56 = vsel %vm3587_vm4, %v3586_v18, %v3585_v2  ;;  %3787 = vmatpush1.bf16.msra.mxu1 %v4887_v47  ;;  %v4892_v47 = vld [vmem:[#allocation18] sm:$0xff]  }
 0x433   : > { %v3591_v48 = vsel %vm3581_vm0, %v3590_v21, %v3589_v46  ;;  %v3594_v29 = vrot.slane %v3578_v59, 4  ;;  %v3596_v37 = vpack.c.b16 %v3588_v56, %v3588_v56  ;;  %p5246_p3 = pnand %p5245_p7, %p7948_p10  ;;  %p5253_p4 = por %p5252_p0, %p5251_p13 }
 0x434   : > { %v3593_v26 = vsel %vm3584_vm1, %v3592_v31, %v3591_v48  ;;  %4645 = vmatpush3.bf16.msra.mxu0 %v4889_v32 }
 0x435   : > { %v3600_v27 = vsel %vm6622_vm6, 0, %v3596_v37  ;;  %v3595_v14 = vsel %vm3587_vm4, %v3594_v29, %v3593_v26  ;;  %4646 = vmatprep.subr.bf16.mxu0 %v5378_v54  ;;  %p5247_p8 = pneg %p5246_p3 }
 0x436   : > { %v3602_v41 = vsel %vm6936_vm12, %v3600_v27, 0  ;;  %v3597_v6 = vpack.c.b16 %v3595_v14, %v3595_v14 }
 0x437   : > { %v3607_v20 = vshll.u32 %v3602_v41, 16  ;;  %v3605_v36 = vshrl.u32 %v3602_v41, 16  ;;  %v3624_v12 = vrot.slane %v3602_v41, 1  ;;  %p5254_p9 = pnand %p5253_p4, %p5247_p8 }
 0x438   : > { %v3601_v10 = vsel %vm6622_vm6, 0, %v3597_v6  ;;  %4647 = vmatpush3.bf16.msra.mxu0 %v4890_v60  ;;  %vm3873_vm6 = vcmask 1045509  }
 0x439   : > { %v3609_v13 = vrot.slane %v3607_v20, 1  ;;  %v3603_v44 = vsel %vm6936_vm12, %v3601_v10, 0  ;;  %4648 = vmatprep.subr.bf16.mxu0 %v5378_v54  ;;  %v4891_v20 = vld [vmem:[#allocation15 + $0x18] sm:$0xff]  }
 0x43a   : > { %v3614_v62 = vshll.u32 %v3603_v44, 16  ;;  %v3612_v23 = vshrl.u32 %v3603_v44, 16  ;;  %v3625_v9 = vrot.slane %v3603_v44, 1 }
 0x43b   : > { %v3610_v1 = vor.u32 %v3609_v13, %v3605_v36 }
 0x43c   : > { %v3616_v17 = vrot.slane %v3614_v62, 1  ;;  %4649 = vmatpush3.bf16.msra.mxu0 %v4891_v20 }
 0x43d   : > { %3618 = vrot.lane.b32.xlu0 %v3610_v1, %s5377_s4  ;;  %4654 = vmatprep.subr.bf16.mxu0 %v5378_v54 }
 0x43e   : > { %v3617_v34 = vor.u32 %v3616_v17, %v3612_v23 }
 0x440   : > { %3620 = vrot.lane.b32.xlu1 %v3617_v34, %s5377_s4 }
 0x4af   : > { %v3619_v63 = vpop.permute.xlu0 %3618 }
 0x4b0   : > { %v3627_v28 = vsel %vm924_vm3, %v3602_v41, %v3619_v63 }
 0x4b1   : > { %v3632_v43 = vcombine.low %v3627_v28, %v3624_v12  ;;  %v4893_v12 = vld [vmem:[#allocation18 + $0x8] sm:$0xff]   ;;  %v4553_v28 = vld [vmem:[#allocation17] ss:$0 sm:$0xff] }
 0x4b2   : > { %v3621_v16 = vpop.permute.xlu1 %3620 }
 0x4b3   : > { %v3629_v38 = vsel %vm924_vm3, %v3603_v44, %v3621_v16  ;;  %v3639_v5 = vrot.slane %v3632_v43, %v7940_v42 }
 0x4b4   : > { %v3640_v52 = vcombine.low %v3629_v38, %v3625_v9 }
 0x4b6   : > { %v3647_v15 = vrot.slane %v3640_v52, %v7940_v42 }
 0x4b8   : > { %v3679_v57 = vcombine.low %v3639_v5, %v3647_v15  ;;  %v4071_v5 = vld [vmem:[#allocation2] sm:$0x1]  ;;  %v4559_v15 = vld [vmem:[#allocation20] ss:$0 sm:$0xff] }
 0x4ba   : > { %v3686_v39 = vrot.slane %v3679_v57, %v7940_v42 }
 0x4bc   : > { %v3687_v4 = vcombine.high %v3686_v39, %v3686_v39 }
 0x4be   : > { %4546 = vmatprep.mubr.msk.bf16.mxu1 %vm924_vm3, %v3687_v4 }
 0x4bf   : > { %3797 = vmatmul.mubr.bf16.vlgmr.msra.gmra.mrb[4].mxu1 %v3686_v39 }
 0x592   : > { %v3798_v19 = vpop.f32.mrb[4].mxu1 }
 0x593   : > { %v3799_v33 = vadd.f32 %v4533_v8, %v3798_v19  ;;  %v3800_v11 = vpop.f32.mrb[5].mxu1 }
 0x594   : > { %v3801_v0 = vpop.f32.mrb[6].mxu1 }
 0x595   : > { %v3811_v3 = vmul.f32 %v4547_v35, %v3799_v33  ;;  %v3802_v50 = vpop.f32.mrb[7].mxu1  ;;  %v7943_v35 = vld [vmem:[#allocation44_spill] sm:$0xff] }
 0x596   : > { %v4079_v33 = vsub.s32 0, %v7943_v35 }
 0x597   : > { %v3819_v30 = vadd.f32 %v4548_v40, %v3811_v3  ;;  %v7944_v40 = vlaneseq }
 0x599   : > { %v3820_v51 = vmin.f32 %v3819_v30, 0.0  ;;  %v4084_v0 = vand.u32 127, %v7944_v40 }
 0x59b   : > { %v3822_v22 = vmul.f32 %v3821_v61, %v3820_v51  ;;  %v4087_v50 = vsub.s32 %v4084_v0, %v7943_v35 }
 0x59d   : > { %v3823_v55 = vsub.f32 %v3819_v30, %v3822_v22 }
 0x59f   : > { %v3825_v24 = vcombine.high %v3823_v55, %v3823_v55  ;;  %v3832_v53 = vrot.slane %v3823_v55, %v7940_v42 }
 0x5a1   : > { %v3839_v49 = vrot.slane %v3825_v24, %v7940_v42  ;;  %v3840_v25 = vcombine.high %v3832_v53, %v3832_v53  ;;  %v4549_v46 = vrot.slane %v3832_v53, 9 }
 0x5a3   : > { %v3841_v18 = vcombine.high %v3839_v49, %v3839_v49  ;;  %v4550_v2 = vrot.slane %v3840_v25, 9  ;;  %v4551_v59 = vrot.slane %v3839_v49, 9  ;;  %v3858_v56 = vmax.f32 %v3832_v53, %v4549_v46 }
 0x5a5   : > { %v4552_v21 = vrot.slane %v3841_v18, 9  ;;  %v3859_v31 = vmax.f32 %v3840_v25, %v4550_v2  ;;  %v3860_v37 = vmax.f32 %v3839_v49, %v4551_v59 }
 0x5a7   : > { %v3861_v48 = vmax.f32 %v3841_v18, %v4552_v21  ;;  %v3869_v29 = vrot.slane %v3859_v31, 7 }
 0x5a9   : > { %v3871_v26 = vsel %vm3870_vm5, %v3869_v29, %v3858_v56  ;;  %v3879_v27 = vrot.slane %v3861_v48, 7 }
 0x5aa   : > { %v3872_v14 = vsel %vm3584_vm1, %v3869_v29, %v3871_v26 }
 0x5ab   : > { %v3880_v41 = vsel %vm3870_vm5, %v3879_v27, %v3860_v37  ;;  %v3874_v6 = vsel %vm3873_vm6, %v3869_v29, %v3872_v14 }
 0x5ac   : > { %v3881_v10 = vsel %vm3584_vm1, %v3879_v27, %v3880_v41  ;;  %v3876_v13 = vsel %vm3875_vm7, %v3869_v29, %v3874_v6 }
 0x5ad   : > { %v3882_v36 = vsel %vm3873_vm6, %v3879_v27, %v3881_v10 }
 0x5ae   : > { %v3883_v44 = vsel %vm3875_vm7, %v3879_v27, %v3882_v36 }
 0x5af   : > { %v3886_v62 = vcombine.low %v3876_v13, %v3883_v44 }
 0x5b1   : > { %v3893_v1 = vrot.slane %v3886_v62, %v7942_v58 }
 0x5b3   : > { %v3894_v23 = vcombine.high %v3893_v1, %v5378_v54 }
 0x5b5   : > { %v3902_v17 = vrot.slane %v3894_v23, %v7940_v42 }
 0x5b7   : > { %3903 = vrot.lane.b32.xlu0 %v3902_v17, %s5376_s26 }
 0x5bb   : > { %4074 = vperm.xlu0 %4827, %v4071_v5  }
 0x629   : > { %v3904_v45 = vpop.permute.xlu0 %3903 }
 0x62a   : > { %v3907_v34 = vsel %vm2046_vm2, %v3893_v1, %v3904_v45 }
 0x62b   : > { %v3908_v63 = vpack.c.bf16 %v3907_v34, %v3907_v34 }
 0x62d   : > { %4651 = vmatmul.mubr.msk.bf16.vlgmr.msra.gmra.mrb[8].mxu0 %vm924_vm3, %v3908_v63  ;;  %vm4067_vm3 = vcmask 33792  }
 0x62e   : > { %4655 = vmatpush3.bf16.msra.mxu0 %v4892_v47  ;;  %4658 = vmatprep.mubr.msk.bf16.mxu0 %vm5379_vm8, %v5378_v54 }
 0x62f   : > { %4656 = vmatprep.subr.bf16.mxu0 %v5378_v54  ;;  %v4563_v54 = vld [vmem:[#allocation21] ss:$0 sm:$0xff] }
 0x632   : > { %4657 = vmatpush3.bf16.msra.mxu0 %v4893_v12 }
 0x63a   : > { %v4075_v11 = vpop.permute.xlu0 %4074 }
 0x63b   : > { %v4080_v3 = vrot.slane %v4075_v11, %v4079_v33 }
 0x700   : > { %v3985_v43 = vpop.f32.mrb[8].mxu0 }
 0x701   : > { %v3986_v42 = vadd.f32 %v4553_v28, %v3985_v43  ;;  %v4652_v9 = vpop.f32.mrb[9].mxu0 }
 0x702   : > { %v3988_v16 = vpop.f32.mrb[10].mxu0 }
 0x703   : > { %v3991_v38 = vpack.c.bf16 %v3986_v42, %v3986_v42  ;;  %v4653_v52 = vpop.f32.mrb[11].mxu0 }
 0x705   : > { %4659 = vmatmul.mubr.msk.bf16.vlgmr.msra.gmra.mrb[12].mxu0 %vm2046_vm2, %v3991_v38  ;;  %vm4090_vm2 = vcmask 8192  }
 0x7d8   : > { %v4052_v57 = vpop.f32.mrb[12].mxu0 }
 0x7d9   : > { %v4053_v39 = vadd.f32 %v4559_v15, %v4052_v57  ;;  %v4660_v4 = vpop.f32.mrb[13].mxu0 }
 0x7da   : > { %v4055_v7 = vpop.f32.mrb[14].mxu0 }
 0x7db   : > { %v4058_v32 = vmax.f32 %v4053_v39, 0.0  ;;  %v4661_v60 = vpop.f32.mrb[15].mxu0 }
 0x7dd   : > { %v4066_v8 = vmul.f32 %v4563_v54, %v4058_v32 }
 0x7df   : > { %v4068_v19 = vsel %vm4067_vm3, %v4066_v8, 0.0 }
 0x7e0   : > { %4069 = vadd.xlane.f32.xlu1 %v4068_v19 }
 0x86d   : > { %v4070_v30 = vpop.xlane.xlu1 %4069 }
 0x86e   : > { %v4081_v61 = vadd.f32 %v4080_v3, %v4070_v30 }
 0x870   : > { %v4088_v51 = vrot.slane %v4081_v61, %v4087_v50 }
 0x872   : > { %4091 = vst.msk [vmem:[%s752_s6] sm:$0x1] %vm4090_vm2, %v4088_v51 }
 0x873   : > { %5257 = shalt.err (!%p5254_p9)
}
 0x874   : > { %s5258_s14 = scalar_lea.hbm %s7601_s1, 16  ;;  %s5262_s26 = scalar_lea.hbm %s7947_s18, 32 }
 0x875   : > { %p5259_p5 = scmp.ne.s32.totalorder %s7601_s1, %s5258_s14  ;;  %p5263_p1 = scmp.lt.u32.totalorder %s7601_s1, %s7947_s18 }
 0x876   : > { %p5264_p6 = scmp.lt.u32.totalorder %s5262_s26, %s5258_s14  ;;  %p5266_p7 = scmp.lt.u32.totalorder %s5258_s14, %s7601_s1 }
 0x877   : > { %p5260_p11 = pnand %p5259_p5, %p7948_p10 }
 0x878   : > { %p5265_p2 = por %p5264_p6, %p5263_p1 }
 0x879   : > { %p5261_p12 = pneg %p5260_p11 }
 0x87a   : > { %p5267_p3 = por %p5266_p7, %p5265_p2 }
 0x87c   : > { %p5268_p8 = pnand %p5267_p3, %p5261_p12 }
 0x87e   : > { %5271 = shalt.err (!%p5268_p8)
}
 0x87f   : > { %4702 = dma.vmem_to_hbm [thread:$0]  (%p7948_p10), %s7603_s27, 16, %s7601_s1, %s4093_s7  }
 0x880 PF: > { %s7949_s17 = sld [smem:[#allocation32_spill]]  ;;  %s7950_s21 = sld [smem:[#allocation40_spill]] }
 0x881   : > { %s7951_s13 = sld [smem:[#allocation36_spill]] }
 0x886   : > { %s4118_s6 = sand.u32 1, %s7949_s17   ;;  %p7952_p13 = scmp.ne.s32.totalorder %s7950_s21, 0 }
 0x887   : > { %p7953_p0 = scmp.ge.s32.totalorder %s7951_s13, 2  ;;  %s4119_s28 = scalar_lea.sflag [#allocation5], %s4118_s6 }
 0x889   : > { %p4743_p4 = pnand %p7953_p0, %p7952_p13 }
 0x88b   : > { %5325 = dma.done.wait (!%p4743_p4), %s4119_s28, 16  }
 0x88c   : > { %5327 = vsyncadd (!%p4743_p4), %s4119_s28, 4294967280  ;;  %s43_s14 = sadd.s32 1, %s7951_s13   ;;  %s7954_s27 = sld [smem:[#allocation33_spill]] }
 0x88d   : > { %p40_p9 = scmp.ge.s32.totalorder %s43_s14, 4   ;;  %s7955_s28 = sld [smem:[#allocation34_spill]] }
 0x88e   : > { %s7956_s29 = sld [smem:[#allocation43_spill]]  ;;  %s7957_s16 = sld [smem:[#allocation42_spill]] }
 0x88f   : > { %s7958_s12 = smov %s5346_s30  ;;  %42 = sbr.rel (!%p40_p9) target bundleno = 23 (0x17), region = 209 }
 0x894   : > { %s7959_s30 = smov %s7957_s16 }
 0x896   :  { %4123 = vsyncpa [#allocation4], 1 }
 0x897   :  { %4125 = vsyncpa [#allocation4 + $0x1], 1 }
 0x898   :  { %4126 = vsyncpa [#allocation7], 1 }
 0x899   :  { %4128 = vsyncpa [#allocation7 + $0x1], 1 }
 0x89a   :  { %4129 = vsyncpa [#allocation10], 1 }
 0x89b   :  { %4131 = vsyncpa [#allocation10 + $0x1], 1 }
 0x89c   :  { %4132 = vsyncpa [#allocation13], 1 }
 0x89d   :  { %4134 = vsyncpa [#allocation13 + $0x1], 1 }
 0x89e   :  { %4135 = vsyncpa [#allocation16], 1 }
 0x89f   :  { %4136 = vsyncpa [#allocation19], 1 }
 0x8a0   :  { %4137 = vsyncpa [#allocation22], 1 }
 0x8a1   :  { %4138 = vsyncpa [#allocation5], 1 }
 0x8a2   :  { %4140 = vsyncpa [#allocation5 + $0x1], 1 }

</bundles_post_ra>
